<compile_context>
chip_gen: v7x
topology: tpu7x:2x2x1
jax: 0.10.0
libtpu: 0.0.40
codegen_flags: <defaults>
</compile_context>

<pallas_src>
import jax
import jax.numpy as jnp
from jax.experimental import pallas as pl
from jax.experimental.pallas import tpu as pltpu

EPS = 1e-5
LANE = 128


def _ceil_to(x, m):
    return (x + m - 1) // m * m


# ----------------------------------------------------------------------------
# Pass 1 kernel: 3x3 VALID conv as 9 per-tap (TM, Cin_p) x (Cin_p, Cout_p) bf16
# MXU dots on a flattened row stream + per-channel sum / sumsq accumulation.
# ----------------------------------------------------------------------------
def _make_conv_stats_kernel(offsets, tme):
    def kernel(x_ref, w_ref, mask_ref, y_ref, sum_ref, ssq_ref):
        n = pl.program_id(0)
        t = pl.program_id(1)
        tm = y_ref.shape[0]

        @pl.when(jnp.logical_and(n == 0, t == 0))
        def _init():
            sum_ref[...] = jnp.zeros_like(sum_ref)
            ssq_ref[...] = jnp.zeros_like(ssq_ref)

        # 8-aligned dynamic window over the per-sample flattened rows; the nine
        # tap shifts are static slices of the loaded window.
        p0 = pl.multiple_of(t * tm, 8)
        win = x_ref[pl.ds(p0, tme), :]                      # (TME, Cin_p) bf16

        acc = jnp.zeros(y_ref.shape, jnp.float32)
        for k, off in enumerate(offsets):
            xk = win[off:off + tm, :]                       # (TM, Cin_p) bf16
            acc = acc + jnp.dot(xk, w_ref[k],
                                preferred_element_type=jnp.float32)
        y_ref[...] = acc

        # BN batch statistics over VALID output pixels only (mask kills the
        # wrap-around / padded rows of the flattened output grid).
        m = mask_ref[...]                                   # (TM, 1) f32
        am = acc * m
        sum_ref[...] += jnp.sum(am, axis=0, keepdims=True)
        ssq_ref[...] += jnp.sum(am * acc, axis=0, keepdims=True)

    return kernel


# ----------------------------------------------------------------------------
# Pass 2 kernel: y * scale + shift, ReLU (scale/shift fold mean/var/gamma/beta)
# ----------------------------------------------------------------------------
def _bn_relu_kernel(y_ref, scale_ref, shift_ref, o_ref):
    y = y_ref[...] * scale_ref[...] + shift_ref[...]
    o_ref[...] = jnp.maximum(y, 0.0).astype(o_ref.dtype)


# ----------------------------------------------------------------------------
# Fused 3x3 VALID conv + BatchNorm(batch stats) + ReLU, channels-last in/out.
# x_nhwc: (N, H, W, Cin_p) with channel axis zero-padded to a multiple of 128.
# Returns (N, H-2, W-2, Cout_p) with Cout_p = 128-padded Cout, dtype out_dtype.
# Conv bias is intentionally dropped: a per-channel constant cancels exactly
# under BatchNorm with batch statistics.
# ----------------------------------------------------------------------------
def conv3x3_bn_relu(x_nhwc, w, gamma, beta, *, out_dtype=jnp.float32,
                    tm_max=512):
    N, H, W, cin_p = x_nhwc.shape
    cout, cin = w.shape[0], w.shape[1]
    ho, wo = H - 2, W - 2
    cout_p = _ceil_to(cout, LANE)

    # PyTorch weight (Cout, Cin, 3, 3) -> taps (9, Cin_p, Cout_p) bf16, zero-pad
    wt = jnp.transpose(w, (2, 3, 1, 0)).reshape(9, cin, cout)
    wt = jnp.pad(wt, ((0, 0), (0, cin_p - cin), (0, cout_p - cout)))
    wt = wt.astype(jnp.bfloat16)

    hw = H * W
    tm = min(tm_max, _ceil_to(hw, 16))        # row tile (mult. of 16 for bf16)
    n_t = pl.cdiv(hw, tm)
    ppad = n_t * tm
    offsets = tuple(kh * W + kw for kh in range(3) for kw in range(3))
    tme = _ceil_to(tm + offsets[-1], 8)       # window = tile + 2*W + 2 halo
    hw_in = (ppad - tm) + tme

    x_flat = x_nhwc.astype(jnp.bfloat16).reshape(N, hw, cin_p)
    x_flat = jnp.pad(x_flat, ((0, 0), (0, hw_in - hw), (0, 0)))

    # rows of the flattened output grid that are real VALID-conv outputs
    p = jnp.arange(ppad, dtype=jnp.int32)
    valid = (p < hw) & ((p % W) < wo) & ((p // W) < ho)
    mask = valid.astype(jnp.float32)[:, None]               # (Ppad, 1)

    kern = _make_conv_stats_kernel(offsets, tme)
    y, s1, s2 = pl.pallas_call(
        kern,
        grid=(N, n_t),
        in_specs=[
            pl.BlockSpec((None, hw_in, cin_p), lambda n, t: (n, 0, 0)),
            pl.BlockSpec((9, cin_p, cout_p), lambda n, t: (0, 0, 0)),
            pl.BlockSpec((tm, 1), lambda n, t: (t, 0)),
        ],
        out_specs=(
            pl.BlockSpec((None, tm, cout_p), lambda n, t: (n, t, 0)),
            pl.BlockSpec((1, cout_p), lambda n, t: (0, 0)),
            pl.BlockSpec((1, cout_p), lambda n, t: (0, 0)),
        ),
        out_shape=(
            jax.ShapeDtypeStruct((N, ppad, cout_p), jnp.float32),
            jax.ShapeDtypeStruct((1, cout_p), jnp.float32),
            jax.ShapeDtypeStruct((1, cout_p), jnp.float32),
        ),
        compiler_params=pltpu.CompilerParams(
            # stats accumulator is resident across the whole grid -> arbitrary
            dimension_semantics=("arbitrary", "arbitrary"),
            vmem_limit_bytes=64 * 1024 * 1024),
    )(x_flat, wt, mask)

    # Batch statistics (biased variance, matching BatchNorm2d training-mode
    # normalization). Tiny per-channel math, done in the wrapper.
    cnt = jnp.float32(N * ho * wo)
    mean = s1[0] / cnt
    var = jnp.maximum(s2[0] / cnt - mean * mean, 0.0)
    inv = jax.lax.rsqrt(var + EPS)
    gamma_p = jnp.pad(gamma.astype(jnp.float32), (0, cout_p - cout))
    beta_p = jnp.pad(beta.astype(jnp.float32), (0, cout_p - cout))
    scale = (gamma_p * inv)[None, :]
    shift = (beta_p - mean * gamma_p * inv)[None, :]

    out_flat = pl.pallas_call(
        _bn_relu_kernel,
        grid=(N, n_t),
        in_specs=[
            pl.BlockSpec((None, tm, cout_p), lambda n, t: (n, t, 0)),
            pl.BlockSpec((1, cout_p), lambda n, t: (0, 0)),
            pl.BlockSpec((1, cout_p), lambda n, t: (0, 0)),
        ],
        out_specs=pl.BlockSpec((None, tm, cout_p), lambda n, t: (n, t, 0)),
        out_shape=jax.ShapeDtypeStruct((N, ppad, cout_p), out_dtype),
        compiler_params=pltpu.CompilerParams(
            dimension_semantics=("parallel", "parallel"),
            vmem_limit_bytes=64 * 1024 * 1024),
    )(y, scale, shift)

    # Drop the wrap-around rows of the flattened output grid -> NHWC
    # (channel padding is kept so conv2 consumes a lane-dense bf16 layout).
    out = out_flat[:, :hw, :].reshape(N, H, W, cout_p)[:, :ho, :wo, :]
    return out


# ----------------------------------------------------------------------------
# Glue (plain JAX): bilinear x2 upsample (align_corners=True) as gather+lerp,
# torchvision-style CenterCrop, concat, boundary transposes.
# TODO(synk): upsample / crop / concat / row compaction stay as JAX layout glue.
# ----------------------------------------------------------------------------
def _lerp_axis_x2(x, axis):
    n_in = x.shape[axis]
    n_out = 2 * n_in
    pos = jnp.arange(n_out, dtype=jnp.float32) * (n_in - 1) / (n_out - 1)
    i0 = jnp.clip(jnp.floor(pos).astype(jnp.int32), 0, max(n_in - 2, 0))
    frac = pos - i0.astype(jnp.float32)
    x0 = jnp.take(x, i0, axis=axis)
    x1 = jnp.take(x, jnp.minimum(i0 + 1, n_in - 1), axis=axis)
    shape = [1] * x.ndim
    shape[axis] = n_out
    return x0 * (1.0 - frac.reshape(shape)) + x1 * frac.reshape(shape)


def _center_crop(x, axis_h, axis_w, out_h, out_w):
    hs, ws = x.shape[axis_h], x.shape[axis_w]
    top = int(round((hs - out_h) / 2.0))
    left = int(round((ws - out_w) / 2.0))
    idx = [slice(None)] * x.ndim
    idx[axis_h] = slice(top, top + out_h)
    idx[axis_w] = slice(left, left + out_w)
    return x[tuple(idx)]


# ----------------------------------------------------------------------------
# DecoderBlock forward (bilinear=True branch). NCHW in / NCHW out; everything
# between the boundaries runs channels-last so the channel axis stays on lanes.
# ----------------------------------------------------------------------------
def decoder_block_forward(params, x_nchw, skip_nchw):
    x = jnp.transpose(x_nchw, (0, 2, 3, 1))
    skip = jnp.transpose(skip_nchw, (0, 2, 3, 1))

    x = _lerp_axis_x2(x, 1)
    x = _lerp_axis_x2(x, 2)
    skip = _center_crop(skip, 1, 2, x.shape[1], x.shape[2])
    xcat = jnp.concatenate([skip, x], axis=-1)       # torch.cat((crop(skip), x))

    cin = xcat.shape[-1]
    cin_p = _ceil_to(cin, LANE)
    xcat = jnp.pad(xcat, ((0, 0), (0, 0), (0, 0), (0, cin_p - cin)))

    # conv biases (b1/b2) are intentionally unused: they cancel under BN with
    # batch statistics (same cancellation happens in the reference).
    y = conv3x3_bn_relu(xcat, params['w1'], params['g1'], params['bb1'],
                        out_dtype=jnp.bfloat16)      # bf16 feeds conv2 directly
    y = conv3x3_bn_relu(y, params['w2'], params['g2'], params['bb2'],
                        out_dtype=jnp.float32)
    cout = params['w2'].shape[0]
    return jnp.transpose(y[..., :cout], (0, 3, 1, 2))


# ----------------------------------------------------------------------------
# Pure-JAX reference for validation (independent NCHW path, f32 HIGHEST conv)
# ----------------------------------------------------------------------------
def _ref_conv_bn_relu(x_nchw, w, b, gamma, beta):
    y = jax.lax.conv_general_dilated(
        x_nchw, w, window_strides=(1, 1), padding='VALID',
        dimension_numbers=('NCHW', 'OIHW', 'NCHW'),
        precision=jax.lax.Precision.HIGHEST)
    y = y + b[None, :, None, None]
    mean = jnp.mean(y, axis=(0, 2, 3), keepdims=True)
    var = jnp.mean(jnp.square(y - mean), axis=(0, 2, 3), keepdims=True)
    y = (y - mean) * jax.lax.rsqrt(var + EPS)
    y = y * gamma[None, :, None, None] + beta[None, :, None, None]
    return jnp.maximum(y, 0.0)


def _ref_decoder_forward(params, x_nchw, skip_nchw):
    x = _lerp_axis_x2(x_nchw, 2)
    x = _lerp_axis_x2(x, 3)
    skip = _center_crop(skip_nchw, 2, 3, x.shape[2], x.shape[3])
    xcat = jnp.concatenate([skip, x], axis=1)
    y = _ref_conv_bn_relu(xcat, params['w1'], params['b1'], params['g1'],
                          params['bb1'])
    y = _ref_conv_bn_relu(y, params['w2'], params['b2'], params['g2'],
                          params['bb2'])
    return y


if __name__ == "__main__":
    key = jax.random.PRNGKey(0)
    in_channels, out_channels = 8, 8          # DecoderBlock(8, 8, bilinear=True)
    mid = in_channels // 2                    # ConvBlock(in, out, mid=in//2)
    ks = jax.random.split(key, 10)

    # x from the layer below (in_channels//2 channels), skip from the encoder
    x = jax.random.normal(ks[0], (2, in_channels // 2, 8, 8), jnp.float32)
    skip = jax.random.normal(ks[1], (2, in_channels - in_channels // 2, 18, 18),
                             jnp.float32)

    params = dict(
        w1=0.1 * jax.random.normal(ks[2], (mid, in_channels, 3, 3), jnp.float32),
        b1=0.1 * jax.random.normal(ks[3], (mid,), jnp.float32),
        g1=1.0 + 0.1 * jax.random.normal(ks[4], (mid,), jnp.float32),
        bb1=0.1 * jax.random.normal(ks[5], (mid,), jnp.float32),
        w2=0.1 * jax.random.normal(ks[6], (out_channels, mid, 3, 3), jnp.float32),
        b2=0.1 * jax.random.normal(ks[7], (out_channels,), jnp.float32),
        g2=1.0 + 0.1 * jax.random.normal(ks[8], (out_channels,), jnp.float32),
        bb2=0.1 * jax.random.normal(ks[9], (out_channels,), jnp.float32),
    )

    fwd = jax.jit(decoder_block_forward)
    out = jax.block_until_ready(fwd(params, x, skip))
    ref = jax.block_until_ready(_ref_decoder_forward(params, x, skip))

    # x: (2,4,8,8) -> up (2,4,16,16) -> cat (2,8,16,16) -> conv1 (2,4,14,14)
    # -> conv2 (2,8,12,12)
    assert out.shape == (2, out_channels, 12, 12), out.shape
    assert bool(jnp.all(jnp.isfinite(out)))
    max_err = float(jnp.max(jnp.abs(out - ref)))
    assert max_err < 5e-2, f"max_err={max_err}"   # bf16 MXU vs f32-HIGHEST ref
    print("KERNEL_OK")
</pallas_src>

<mosaic_0001>
module attributes {stable_mosaic.version = 11 : i64} {
  func.func @kernel(%arg0: i32, %arg1: i32, %arg2: memref<1x296x128xbf16, #tpu.memory_space<vmem>>, %arg3: memref<9x128x128xbf16, #tpu.memory_space<vmem>>, %arg4: memref<256x1xf32, #tpu.memory_space<vmem>>, %arg5: memref<1x256x128xf32, #tpu.memory_space<vmem>>, %arg6: memref<1x128xf32, #tpu.memory_space<vmem>>, %arg7: memref<1x128xf32, #tpu.memory_space<vmem>>) attributes {dimension_semantics = [#tpu.dimension_semantics<arbitrary>, #tpu.dimension_semantics<arbitrary>], iteration_bounds = array<i64: 2, 1>, scalar_prefetch = 0 : i64, scratch_operands = 0 : i64, tpu.core_type = #tpu.core_type<tc>, window_params = [{transform_indices = @transform_0, window_bounds = array<i64: 1, 296, 128>}, {pipeline_mode = #tpu.pipeline_mode<synchronous>, transform_indices = @transform_1, window_bounds = array<i64: 9, 128, 128>}, {transform_indices = @transform_2, window_bounds = array<i64: 256, 1>}, {transform_indices = @transform_3, window_bounds = array<i64: 1, 256, 128>}, {pipeline_mode = #tpu.pipeline_mode<synchronous>, transform_indices = @transform_4, window_bounds = array<i64: 1, 128>}, {pipeline_mode = #tpu.pipeline_mode<synchronous>, transform_indices = @transform_5, window_bounds = array<i64: 1, 128>}]} {
    %c0_i32 = arith.constant 0 : i32
    %0 = arith.cmpi eq, %arg0, %c0_i32 : i32
    %c0_i32_0 = arith.constant 0 : i32
    %1 = arith.cmpi eq, %arg1, %c0_i32_0 : i32
    %2 = arith.andi %0, %1 : i1
    %3 = arith.extui %2 : i1 to i32
    %c0_i32_1 = arith.constant 0 : i32
    %4 = arith.cmpi ne, %3, %c0_i32_1 : i32
    scf.if %4 {
      %cst_46 = arith.constant 0.000000e+00 : f32
      %73 = vector.broadcast %cst_46 : f32 to vector<1x128xf32>
      %c0_47 = arith.constant 0 : index
      %c0_48 = arith.constant 0 : index
      %74 = vector.load %arg6[%c0_47, %c0_48] : memref<1x128xf32, #tpu.memory_space<vmem>>, vector<1x128xf32>
      tpu.vector_store %arg6[%c0_47, %c0_48], %73 {strides = array<i32>} : memref<1x128xf32, #tpu.memory_space<vmem>>, vector<1x128xf32>,
      %cst_49 = arith.constant 0.000000e+00 : f32
      %75 = vector.broadcast %cst_49 : f32 to vector<1x128xf32>
      %c0_50 = arith.constant 0 : index
      %c0_51 = arith.constant 0 : index
      %76 = vector.load %arg7[%c0_50, %c0_51] : memref<1x128xf32, #tpu.memory_space<vmem>>, vector<1x128xf32>
      tpu.vector_store %arg7[%c0_50, %c0_51], %75 {strides = array<i32>} : memref<1x128xf32, #tpu.memory_space<vmem>>, vector<1x128xf32>,
    } else {
    }
    %c256_i32 = arith.constant 256 : i32
    %5 = arith.muli %arg1, %c256_i32 : i32
    %6 = tpu.assume_multiple %5, 8 : i32
    %c0 = arith.constant 0 : index
    %7 = arith.index_cast %6 : i32 to index
    %c0_2 = arith.constant 0 : index
    %8 = vector.load %arg2[%c0, %7, %c0_2] : memref<1x296x128xbf16, #tpu.memory_space<vmem>>, vector<1x296x128xbf16>
    %9 = vector.shape_cast %8 : vector<1x296x128xbf16> to vector<296x128xbf16>
    %cst = arith.constant 0.000000e+00 : f32
    %10 = vector.broadcast %cst : f32 to vector<256x128xf32>
    %11 = vector.extract_strided_slice %9 {offsets = [0, 0], sizes = [256, 128], strides = [1, 1]} : vector<296x128xbf16> to vector<256x128xbf16>
    %c0_3 = arith.constant 0 : index
    %c0_4 = arith.constant 0 : index
    %c0_5 = arith.constant 0 : index
    %12 = vector.load %arg3[%c0_3, %c0_4, %c0_5] : memref<9x128x128xbf16, #tpu.memory_space<vmem>>, vector<1x128x128xbf16>
    %13 = vector.shape_cast %12 : vector<1x128x128xbf16> to vector<128x128xbf16>
    %cst_6 = arith.constant dense<0.000000e+00> : vector<256x128xf32>
    %14 = tpu.matmul %11, %13, %cst_6 {dimension_numbers = #tpu.dot_dimension_numbers<[1], [0], [0], [1], [0, 0, 1, 1], [], []>} : vector<256x128xbf16>, vector<128x128xbf16>, vector<256x128xf32> -> vector<256x128xf32>
    %15 = arith.addf %10, %14 : vector<256x128xf32>
    %16 = vector.extract_strided_slice %9 {offsets = [1, 0], sizes = [256, 128], strides = [1, 1]} : vector<296x128xbf16> to vector<256x128xbf16>
    %c1 = arith.constant 1 : index
    %c0_7 = arith.constant 0 : index
    %c0_8 = arith.constant 0 : index
    %17 = vector.load %arg3[%c1, %c0_7, %c0_8] : memref<9x128x128xbf16, #tpu.memory_space<vmem>>, vector<1x128x128xbf16>
    %18 = vector.shape_cast %17 : vector<1x128x128xbf16> to vector<128x128xbf16>
    %cst_9 = arith.constant dense<0.000000e+00> : vector<256x128xf32>
    %19 = tpu.matmul %16, %18, %cst_9 {dimension_numbers = #tpu.dot_dimension_numbers<[1], [0], [0], [1], [0, 0, 1, 1], [], []>} : vector<256x128xbf16>, vector<128x128xbf16>, vector<256x128xf32> -> vector<256x128xf32>
    %20 = arith.addf %15, %19 : vector<256x128xf32>
    %21 = vector.extract_strided_slice %9 {offsets = [2, 0], sizes = [256, 128], strides = [1, 1]} : vector<296x128xbf16> to vector<256x128xbf16>
    %c2 = arith.constant 2 : index
    %c0_10 = arith.constant 0 : index
    %c0_11 = arith.constant 0 : index
    %22 = vector.load %arg3[%c2, %c0_10, %c0_11] : memref<9x128x128xbf16, #tpu.memory_space<vmem>>, vector<1x128x128xbf16>
    %23 = vector.shape_cast %22 : vector<1x128x128xbf16> to vector<128x128xbf16>
    %cst_12 = arith.constant dense<0.000000e+00> : vector<256x128xf32>
    %24 = tpu.matmul %21, %23, %cst_12 {dimension_numbers = #tpu.dot_dimension_numbers<[1], [0], [0], [1], [0, 0, 1, 1], [], []>} : vector<256x128xbf16>, vector<128x128xbf16>, vector<256x128xf32> -> vector<256x128xf32>
    %25 = arith.addf %20, %24 : vector<256x128xf32>
    %26 = vector.extract_strided_slice %9 {offsets = [16, 0], sizes = [256, 128], strides = [1, 1]} : vector<296x128xbf16> to vector<256x128xbf16>
    %c3 = arith.constant 3 : index
    %c0_13 = arith.constant 0 : index
    %c0_14 = arith.constant 0 : index
    %27 = vector.load %arg3[%c3, %c0_13, %c0_14] : memref<9x128x128xbf16, #tpu.memory_space<vmem>>, vector<1x128x128xbf16>
    %28 = vector.shape_cast %27 : vector<1x128x128xbf16> to vector<128x128xbf16>
    %cst_15 = arith.constant dense<0.000000e+00> : vector<256x128xf32>
    %29 = tpu.matmul %26, %28, %cst_15 {dimension_numbers = #tpu.dot_dimension_numbers<[1], [0], [0], [1], [0, 0, 1, 1], [], []>} : vector<256x128xbf16>, vector<128x128xbf16>, vector<256x128xf32> -> vector<256x128xf32>
    %30 = arith.addf %25, %29 : vector<256x128xf32>
    %31 = vector.extract_strided_slice %9 {offsets = [17, 0], sizes = [256, 128], strides = [1, 1]} : vector<296x128xbf16> to vector<256x128xbf16>
    %c4 = arith.constant 4 : index
    %c0_16 = arith.constant 0 : index
    %c0_17 = arith.constant 0 : index
    %32 = vector.load %arg3[%c4, %c0_16, %c0_17] : memref<9x128x128xbf16, #tpu.memory_space<vmem>>, vector<1x128x128xbf16>
    %33 = vector.shape_cast %32 : vector<1x128x128xbf16> to vector<128x128xbf16>
    %cst_18 = arith.constant dense<0.000000e+00> : vector<256x128xf32>
    %34 = tpu.matmul %31, %33, %cst_18 {dimension_numbers = #tpu.dot_dimension_numbers<[1], [0], [0], [1], [0, 0, 1, 1], [], []>} : vector<256x128xbf16>, vector<128x128xbf16>, vector<256x128xf32> -> vector<256x128xf32>
    %35 = arith.addf %30, %34 : vector<256x128xf32>
    %36 = vector.extract_strided_slice %9 {offsets = [18, 0], sizes = [256, 128], strides = [1, 1]} : vector<296x128xbf16> to vector<256x128xbf16>
    %c5 = arith.constant 5 : index
    %c0_19 = arith.constant 0 : index
    %c0_20 = arith.constant 0 : index
    %37 = vector.load %arg3[%c5, %c0_19, %c0_20] : memref<9x128x128xbf16, #tpu.memory_space<vmem>>, vector<1x128x128xbf16>
    %38 = vector.shape_cast %37 : vector<1x128x128xbf16> to vector<128x128xbf16>
    %cst_21 = arith.constant dense<0.000000e+00> : vector<256x128xf32>
    %39 = tpu.matmul %36, %38, %cst_21 {dimension_numbers = #tpu.dot_dimension_numbers<[1], [0], [0], [1], [0, 0, 1, 1], [], []>} : vector<256x128xbf16>, vector<128x128xbf16>, vector<256x128xf32> -> vector<256x128xf32>
    %40 = arith.addf %35, %39 : vector<256x128xf32>
    %41 = vector.extract_strided_slice %9 {offsets = [32, 0], sizes = [256, 128], strides = [1, 1]} : vector<296x128xbf16> to vector<256x128xbf16>
    %c6 = arith.constant 6 : index
    %c0_22 = arith.constant 0 : index
    %c0_23 = arith.constant 0 : index
    %42 = vector.load %arg3[%c6, %c0_22, %c0_23] : memref<9x128x128xbf16, #tpu.memory_space<vmem>>, vector<1x128x128xbf16>
    %43 = vector.shape_cast %42 : vector<1x128x128xbf16> to vector<128x128xbf16>
    %cst_24 = arith.constant dense<0.000000e+00> : vector<256x128xf32>
    %44 = tpu.matmul %41, %43, %cst_24 {dimension_numbers = #tpu.dot_dimension_numbers<[1], [0], [0], [1], [0, 0, 1, 1], [], []>} : vector<256x128xbf16>, vector<128x128xbf16>, vector<256x128xf32> -> vector<256x128xf32>
    %45 = arith.addf %40, %44 : vector<256x128xf32>
    %46 = vector.extract_strided_slice %9 {offsets = [33, 0], sizes = [256, 128], strides = [1, 1]} : vector<296x128xbf16> to vector<256x128xbf16>
    %c7 = arith.constant 7 : index
    %c0_25 = arith.constant 0 : index
    %c0_26 = arith.constant 0 : index
    %47 = vector.load %arg3[%c7, %c0_25, %c0_26] : memref<9x128x128xbf16, #tpu.memory_space<vmem>>, vector<1x128x128xbf16>
    %48 = vector.shape_cast %47 : vector<1x128x128xbf16> to vector<128x128xbf16>
    %cst_27 = arith.constant dense<0.000000e+00> : vector<256x128xf32>
    %49 = tpu.matmul %46, %48, %cst_27 {dimension_numbers = #tpu.dot_dimension_numbers<[1], [0], [0], [1], [0, 0, 1, 1], [], []>} : vector<256x128xbf16>, vector<128x128xbf16>, vector<256x128xf32> -> vector<256x128xf32>
    %50 = arith.addf %45, %49 : vector<256x128xf32>
    %51 = vector.extract_strided_slice %9 {offsets = [34, 0], sizes = [256, 128], strides = [1, 1]} : vector<296x128xbf16> to vector<256x128xbf16>
    %c8 = arith.constant 8 : index
    %c0_28 = arith.constant 0 : index
    %c0_29 = arith.constant 0 : index
    %52 = vector.load %arg3[%c8, %c0_28, %c0_29] : memref<9x128x128xbf16, #tpu.memory_space<vmem>>, vector<1x128x128xbf16>
    %53 = vector.shape_cast %52 : vector<1x128x128xbf16> to vector<128x128xbf16>
    %cst_30 = arith.constant dense<0.000000e+00> : vector<256x128xf32>
    %54 = tpu.matmul %51, %53, %cst_30 {dimension_numbers = #tpu.dot_dimension_numbers<[1], [0], [0], [1], [0, 0, 1, 1], [], []>} : vector<256x128xbf16>, vector<128x128xbf16>, vector<256x128xf32> -> vector<256x128xf32>
    %55 = arith.addf %50, %54 : vector<256x128xf32>
    %c0_31 = arith.constant 0 : index
    %c0_32 = arith.constant 0 : index
    %c0_33 = arith.constant 0 : index
    %56 = vector.load %arg5[%c0_31, %c0_32, %c0_33] : memref<1x256x128xf32, #tpu.memory_space<vmem>>, vector<1x256x128xf32>
    %57 = vector.shape_cast %56 : vector<1x256x128xf32> to vector<256x128xf32>
    %58 = vector.shape_cast %55 : vector<256x128xf32> to vector<1x256x128xf32>
    tpu.vector_store %arg5[%c0_31, %c0_32, %c0_33], %58 {strides = array<i32>} : memref<1x256x128xf32, #tpu.memory_space<vmem>>, vector<1x256x128xf32>,
    %c0_34 = arith.constant 0 : index
    %c0_35 = arith.constant 0 : index
    %59 = vector.load %arg4[%c0_34, %c0_35] : memref<256x1xf32, #tpu.memory_space<vmem>>, vector<256x1xf32>
    %60 = vector.broadcast %59 : vector<256x1xf32> to vector<256x128xf32>
    %61 = arith.mulf %55, %60 : vector<256x128xf32>
    %c0_36 = arith.constant 0 : index
    %c0_37 = arith.constant 0 : index
    %62 = vector.load %arg6[%c0_36, %c0_37] : memref<1x128xf32, #tpu.memory_space<vmem>>, vector<1x128xf32>
    %cst_38 = arith.constant dense<0.000000e+00> : vector<128xf32>
    %63 = vector.multi_reduction <add>, %61, %cst_38 [0] : vector<256x128xf32> to vector<128xf32>
    %64 = vector.shape_cast %63 : vector<128xf32> to vector<1x128xf32>
    %65 = arith.addf %62, %64 : vector<1x128xf32>
    %c0_39 = arith.constant 0 : index
    %c0_40 = arith.constant 0 : index
    %66 = vector.load %arg6[%c0_39, %c0_40] : memref<1x128xf32, #tpu.memory_space<vmem>>, vector<1x128xf32>
    tpu.vector_store %arg6[%c0_39, %c0_40], %65 {strides = array<i32>} : memref<1x128xf32, #tpu.memory_space<vmem>>, vector<1x128xf32>,
    %c0_41 = arith.constant 0 : index
    %c0_42 = arith.constant 0 : index
    %67 = vector.load %arg7[%c0_41, %c0_42] : memref<1x128xf32, #tpu.memory_space<vmem>>, vector<1x128xf32>
    %68 = arith.mulf %61, %55 : vector<256x128xf32>
    %cst_43 = arith.constant dense<0.000000e+00> : vector<128xf32>
    %69 = vector.multi_reduction <add>, %68, %cst_43 [0] : vector<256x128xf32> to vector<128xf32>
    %70 = vector.shape_cast %69 : vector<128xf32> to vector<1x128xf32>
    %71 = arith.addf %67, %70 : vector<1x128xf32>
    %c0_44 = arith.constant 0 : index
    %c0_45 = arith.constant 0 : index
    %72 = vector.load %arg7[%c0_44, %c0_45] : memref<1x128xf32, #tpu.memory_space<vmem>>, vector<1x128xf32>
    tpu.vector_store %arg7[%c0_44, %c0_45], %71 {strides = array<i32>} : memref<1x128xf32, #tpu.memory_space<vmem>>, vector<1x128xf32>,
    return
  }
  func.func @transform_0(%arg0: i32, %arg1: i32) -> (i32, i32, i32) {
    %c0_i32 = arith.constant 0 : i32
    %c0_i32_0 = arith.constant 0 : i32
    %c0_i32_1 = arith.constant 0 : i32
    return %arg0, %c0_i32, %c0_i32_0 : i32, i32, i32
  }
  func.func @transform_1(%arg0: i32, %arg1: i32) -> (i32, i32, i32) {
    %c0_i32 = arith.constant 0 : i32
    %c0_i32_0 = arith.constant 0 : i32
    %c0_i32_1 = arith.constant 0 : i32
    %c0_i32_2 = arith.constant 0 : i32
    return %c0_i32, %c0_i32_0, %c0_i32_1 : i32, i32, i32
  }
  func.func @transform_2(%arg0: i32, %arg1: i32) -> (i32, i32) {
    %c0_i32 = arith.constant 0 : i32
    %c0_i32_0 = arith.constant 0 : i32
    return %arg1, %c0_i32 : i32, i32
  }
  func.func @transform_3(%arg0: i32, %arg1: i32) -> (i32, i32, i32) {
    %c0_i32 = arith.constant 0 : i32
    %c0_i32_0 = arith.constant 0 : i32
    return %arg0, %arg1, %c0_i32 : i32, i32, i32
  }
  func.func @transform_4(%arg0: i32, %arg1: i32) -> (i32, i32) {
    %c0_i32 = arith.constant 0 : i32
    %c0_i32_0 = arith.constant 0 : i32
    %c0_i32_1 = arith.constant 0 : i32
    return %c0_i32, %c0_i32_0 : i32, i32
  }
  func.func @transform_5(%arg0: i32, %arg1: i32) -> (i32, i32) {
    %c0_i32 = arith.constant 0 : i32
    %c0_i32_0 = arith.constant 0 : i32
    %c0_i32_1 = arith.constant 0 : i32
    return %c0_i32, %c0_i32_0 : i32, i32
  }
}

module attributes {stable_mosaic.version = 11 : i64} {
  func.func @_bn_relu_kernel(%arg0: i32, %arg1: i32, %arg2: memref<1x256x128xf32, #tpu.memory_space<vmem>>, %arg3: memref<1x128xf32, #tpu.memory_space<vmem>>, %arg4: memref<1x128xf32, #tpu.memory_space<vmem>>, %arg5: memref<1x256x128xbf16, #tpu.memory_space<vmem>>) attributes {dimension_semantics = [#tpu.dimension_semantics<parallel>, #tpu.dimension_semantics<parallel>], iteration_bounds = array<i64: 2, 1>, scalar_prefetch = 0 : i64, scratch_operands = 0 : i64, tpu.core_type = #tpu.core_type<tc>, window_params = [{transform_indices = @transform_0, window_bounds = array<i64: 1, 256, 128>}, {pipeline_mode = #tpu.pipeline_mode<synchronous>, transform_indices = @transform_1, window_bounds = array<i64: 1, 128>}, {pipeline_mode = #tpu.pipeline_mode<synchronous>, transform_indices = @transform_2, window_bounds = array<i64: 1, 128>}, {transform_indices = @transform_3, window_bounds = array<i64: 1, 256, 128>}]} {
    %c0 = arith.constant 0 : index
    %c0_0 = arith.constant 0 : index
    %c0_1 = arith.constant 0 : index
    %0 = vector.load %arg2[%c0, %c0_0, %c0_1] : memref<1x256x128xf32, #tpu.memory_space<vmem>>, vector<1x256x128xf32>
    %1 = vector.shape_cast %0 : vector<1x256x128xf32> to vector<256x128xf32>
    %c0_2 = arith.constant 0 : index
    %c0_3 = arith.constant 0 : index
    %2 = vector.load %arg3[%c0_2, %c0_3] : memref<1x128xf32, #tpu.memory_space<vmem>>, vector<1x128xf32>
    %3 = vector.broadcast %2 : vector<1x128xf32> to vector<256x128xf32>
    %4 = arith.mulf %1, %3 : vector<256x128xf32>
    %c0_4 = arith.constant 0 : index
    %c0_5 = arith.constant 0 : index
    %5 = vector.load %arg4[%c0_4, %c0_5] : memref<1x128xf32, #tpu.memory_space<vmem>>, vector<1x128xf32>
    %6 = vector.broadcast %5 : vector<1x128xf32> to vector<256x128xf32>
    %7 = arith.addf %4, %6 : vector<256x128xf32>
    %cst = arith.constant 0.000000e+00 : f32
    %8 = vector.broadcast %cst : f32 to vector<256x128xf32>
    %9 = arith.maximumf %7, %8 : vector<256x128xf32>
    %10 = arith.truncf %9 : vector<256x128xf32> to vector<256x128xbf16>
    %c0_6 = arith.constant 0 : index
    %c0_7 = arith.constant 0 : index
    %c0_8 = arith.constant 0 : index
    %11 = vector.load %arg5[%c0_6, %c0_7, %c0_8] : memref<1x256x128xbf16, #tpu.memory_space<vmem>>, vector<1x256x128xbf16>
    %12 = vector.shape_cast %11 : vector<1x256x128xbf16> to vector<256x128xbf16>
    %13 = vector.shape_cast %10 : vector<256x128xbf16> to vector<1x256x128xbf16>
    tpu.vector_store %arg5[%c0_6, %c0_7, %c0_8], %13 {strides = array<i32>} : memref<1x256x128xbf16, #tpu.memory_space<vmem>>, vector<1x256x128xbf16>,
    return
  }
  func.func @transform_0(%arg0: i32, %arg1: i32) -> (i32, i32, i32) {
    %c0_i32 = arith.constant 0 : i32
    %c0_i32_0 = arith.constant 0 : i32
    return %arg0, %arg1, %c0_i32 : i32, i32, i32
  }
  func.func @transform_1(%arg0: i32, %arg1: i32) -> (i32, i32) {
    %c0_i32 = arith.constant 0 : i32
    %c0_i32_0 = arith.constant 0 : i32
    %c0_i32_1 = arith.constant 0 : i32
    return %c0_i32, %c0_i32_0 : i32, i32
  }
  func.func @transform_2(%arg0: i32, %arg1: i32) -> (i32, i32) {
    %c0_i32 = arith.constant 0 : i32
    %c0_i32_0 = arith.constant 0 : i32
    %c0_i32_1 = arith.constant 0 : i32
    return %c0_i32, %c0_i32_0 : i32, i32
  }
  func.func @transform_3(%arg0: i32, %arg1: i32) -> (i32, i32, i32) {
    %c0_i32 = arith.constant 0 : i32
    %c0_i32_0 = arith.constant 0 : i32
    return %arg0, %arg1, %c0_i32 : i32, i32, i32
  }
}

module attributes {stable_mosaic.version = 11 : i64} {
  func.func @kernel(%arg0: i32, %arg1: i32, %arg2: memref<1x240x128xbf16, #tpu.memory_space<vmem>>, %arg3: memref<9x128x128xbf16, #tpu.memory_space<vmem>>, %arg4: memref<208x1xf32, #tpu.memory_space<vmem>>, %arg5: memref<1x208x128xf32, #tpu.memory_space<vmem>>, %arg6: memref<1x128xf32, #tpu.memory_space<vmem>>, %arg7: memref<1x128xf32, #tpu.memory_space<vmem>>) attributes {dimension_semantics = [#tpu.dimension_semantics<arbitrary>, #tpu.dimension_semantics<arbitrary>], iteration_bounds = array<i64: 2, 1>, scalar_prefetch = 0 : i64, scratch_operands = 0 : i64, tpu.core_type = #tpu.core_type<tc>, window_params = [{transform_indices = @transform_0, window_bounds = array<i64: 1, 240, 128>}, {pipeline_mode = #tpu.pipeline_mode<synchronous>, transform_indices = @transform_1, window_bounds = array<i64: 9, 128, 128>}, {transform_indices = @transform_2, window_bounds = array<i64: 208, 1>}, {transform_indices = @transform_3, window_bounds = array<i64: 1, 208, 128>}, {pipeline_mode = #tpu.pipeline_mode<synchronous>, transform_indices = @transform_4, window_bounds = array<i64: 1, 128>}, {pipeline_mode = #tpu.pipeline_mode<synchronous>, transform_indices = @transform_5, window_bounds = array<i64: 1, 128>}]} {
    %c0_i32 = arith.constant 0 : i32
    %0 = arith.cmpi eq, %arg0, %c0_i32 : i32
    %c0_i32_0 = arith.constant 0 : i32
    %1 = arith.cmpi eq, %arg1, %c0_i32_0 : i32
    %2 = arith.andi %0, %1 : i1
    %3 = arith.extui %2 : i1 to i32
    %c0_i32_1 = arith.constant 0 : i32
    %4 = arith.cmpi ne, %3, %c0_i32_1 : i32
    scf.if %4 {
      %cst_46 = arith.constant 0.000000e+00 : f32
      %73 = vector.broadcast %cst_46 : f32 to vector<1x128xf32>
      %c0_47 = arith.constant 0 : index
      %c0_48 = arith.constant 0 : index
      %74 = vector.load %arg6[%c0_47, %c0_48] : memref<1x128xf32, #tpu.memory_space<vmem>>, vector<1x128xf32>
      tpu.vector_store %arg6[%c0_47, %c0_48], %73 {strides = array<i32>} : memref<1x128xf32, #tpu.memory_space<vmem>>, vector<1x128xf32>,
      %cst_49 = arith.constant 0.000000e+00 : f32
      %75 = vector.broadcast %cst_49 : f32 to vector<1x128xf32>
      %c0_50 = arith.constant 0 : index
      %c0_51 = arith.constant 0 : index
      %76 = vector.load %arg7[%c0_50, %c0_51] : memref<1x128xf32, #tpu.memory_space<vmem>>, vector<1x128xf32>
      tpu.vector_store %arg7[%c0_50, %c0_51], %75 {strides = array<i32>} : memref<1x128xf32, #tpu.memory_space<vmem>>, vector<1x128xf32>,
    } else {
    }
    %c208_i32 = arith.constant 208 : i32
    %5 = arith.muli %arg1, %c208_i32 : i32
    %6 = tpu.assume_multiple %5, 8 : i32
    %c0 = arith.constant 0 : index
    %7 = arith.index_cast %6 : i32 to index
    %c0_2 = arith.constant 0 : index
    %8 = vector.load %arg2[%c0, %7, %c0_2] : memref<1x240x128xbf16, #tpu.memory_space<vmem>>, vector<1x240x128xbf16>
    %9 = vector.shape_cast %8 : vector<1x240x128xbf16> to vector<240x128xbf16>
    %cst = arith.constant 0.000000e+00 : f32
    %10 = vector.broadcast %cst : f32 to vector<208x128xf32>
    %11 = vector.extract_strided_slice %9 {offsets = [0, 0], sizes = [208, 128], strides = [1, 1]} : vector<240x128xbf16> to vector<208x128xbf16>
    %c0_3 = arith.constant 0 : index
    %c0_4 = arith.constant 0 : index
    %c0_5 = arith.constant 0 : index
    %12 = vector.load %arg3[%c0_3, %c0_4, %c0_5] : memref<9x128x128xbf16, #tpu.memory_space<vmem>>, vector<1x128x128xbf16>
    %13 = vector.shape_cast %12 : vector<1x128x128xbf16> to vector<128x128xbf16>
    %cst_6 = arith.constant dense<0.000000e+00> : vector<208x128xf32>
    %14 = tpu.matmul %11, %13, %cst_6 {dimension_numbers = #tpu.dot_dimension_numbers<[1], [0], [0], [1], [0, 0, 1, 1], [], []>} : vector<208x128xbf16>, vector<128x128xbf16>, vector<208x128xf32> -> vector<208x128xf32>
    %15 = arith.addf %10, %14 : vector<208x128xf32>
    %16 = vector.extract_strided_slice %9 {offsets = [1, 0], sizes = [208, 128], strides = [1, 1]} : vector<240x128xbf16> to vector<208x128xbf16>
    %c1 = arith.constant 1 : index
    %c0_7 = arith.constant 0 : index
    %c0_8 = arith.constant 0 : index
    %17 = vector.load %arg3[%c1, %c0_7, %c0_8] : memref<9x128x128xbf16, #tpu.memory_space<vmem>>, vector<1x128x128xbf16>
    %18 = vector.shape_cast %17 : vector<1x128x128xbf16> to vector<128x128xbf16>
    %cst_9 = arith.constant dense<0.000000e+00> : vector<208x128xf32>
    %19 = tpu.matmul %16, %18, %cst_9 {dimension_numbers = #tpu.dot_dimension_numbers<[1], [0], [0], [1], [0, 0, 1, 1], [], []>} : vector<208x128xbf16>, vector<128x128xbf16>, vector<208x128xf32> -> vector<208x128xf32>
    %20 = arith.addf %15, %19 : vector<208x128xf32>
    %21 = vector.extract_strided_slice %9 {offsets = [2, 0], sizes = [208, 128], strides = [1, 1]} : vector<240x128xbf16> to vector<208x128xbf16>
    %c2 = arith.constant 2 : index
    %c0_10 = arith.constant 0 : index
    %c0_11 = arith.constant 0 : index
    %22 = vector.load %arg3[%c2, %c0_10, %c0_11] : memref<9x128x128xbf16, #tpu.memory_space<vmem>>, vector<1x128x128xbf16>
    %23 = vector.shape_cast %22 : vector<1x128x128xbf16> to vector<128x128xbf16>
    %cst_12 = arith.constant dense<0.000000e+00> : vector<208x128xf32>
    %24 = tpu.matmul %21, %23, %cst_12 {dimension_numbers = #tpu.dot_dimension_numbers<[1], [0], [0], [1], [0, 0, 1, 1], [], []>} : vector<208x128xbf16>, vector<128x128xbf16>, vector<208x128xf32> -> vector<208x128xf32>
    %25 = arith.addf %20, %24 : vector<208x128xf32>
    %26 = vector.extract_strided_slice %9 {offsets = [14, 0], sizes = [208, 128], strides = [1, 1]} : vector<240x128xbf16> to vector<208x128xbf16>
    %c3 = arith.constant 3 : index
    %c0_13 = arith.constant 0 : index
    %c0_14 = arith.constant 0 : index
    %27 = vector.load %arg3[%c3, %c0_13, %c0_14] : memref<9x128x128xbf16, #tpu.memory_space<vmem>>, vector<1x128x128xbf16>
    %28 = vector.shape_cast %27 : vector<1x128x128xbf16> to vector<128x128xbf16>
    %cst_15 = arith.constant dense<0.000000e+00> : vector<208x128xf32>
    %29 = tpu.matmul %26, %28, %cst_15 {dimension_numbers = #tpu.dot_dimension_numbers<[1], [0], [0], [1], [0, 0, 1, 1], [], []>} : vector<208x128xbf16>, vector<128x128xbf16>, vector<208x128xf32> -> vector<208x128xf32>
    %30 = arith.addf %25, %29 : vector<208x128xf32>
    %31 = vector.extract_strided_slice %9 {offsets = [15, 0], sizes = [208, 128], strides = [1, 1]} : vector<240x128xbf16> to vector<208x128xbf16>
    %c4 = arith.constant 4 : index
    %c0_16 = arith.constant 0 : index
    %c0_17 = arith.constant 0 : index
    %32 = vector.load %arg3[%c4, %c0_16, %c0_17] : memref<9x128x128xbf16, #tpu.memory_space<vmem>>, vector<1x128x128xbf16>
    %33 = vector.shape_cast %32 : vector<1x128x128xbf16> to vector<128x128xbf16>
    %cst_18 = arith.constant dense<0.000000e+00> : vector<208x128xf32>
    %34 = tpu.matmul %31, %33, %cst_18 {dimension_numbers = #tpu.dot_dimension_numbers<[1], [0], [0], [1], [0, 0, 1, 1], [], []>} : vector<208x128xbf16>, vector<128x128xbf16>, vector<208x128xf32> -> vector<208x128xf32>
    %35 = arith.addf %30, %34 : vector<208x128xf32>
    %36 = vector.extract_strided_slice %9 {offsets = [16, 0], sizes = [208, 128], strides = [1, 1]} : vector<240x128xbf16> to vector<208x128xbf16>
    %c5 = arith.constant 5 : index
    %c0_19 = arith.constant 0 : index
    %c0_20 = arith.constant 0 : index
    %37 = vector.load %arg3[%c5, %c0_19, %c0_20] : memref<9x128x128xbf16, #tpu.memory_space<vmem>>, vector<1x128x128xbf16>
    %38 = vector.shape_cast %37 : vector<1x128x128xbf16> to vector<128x128xbf16>
    %cst_21 = arith.constant dense<0.000000e+00> : vector<208x128xf32>
    %39 = tpu.matmul %36, %38, %cst_21 {dimension_numbers = #tpu.dot_dimension_numbers<[1], [0], [0], [1], [0, 0, 1, 1], [], []>} : vector<208x128xbf16>, vector<128x128xbf16>, vector<208x128xf32> -> vector<208x128xf32>
    %40 = arith.addf %35, %39 : vector<208x128xf32>
    %41 = vector.extract_strided_slice %9 {offsets = [28, 0], sizes = [208, 128], strides = [1, 1]} : vector<240x128xbf16> to vector<208x128xbf16>
    %c6 = arith.constant 6 : index
    %c0_22 = arith.constant 0 : index
    %c0_23 = arith.constant 0 : index
    %42 = vector.load %arg3[%c6, %c0_22, %c0_23] : memref<9x128x128xbf16, #tpu.memory_space<vmem>>, vector<1x128x128xbf16>
    %43 = vector.shape_cast %42 : vector<1x128x128xbf16> to vector<128x128xbf16>
    %cst_24 = arith.constant dense<0.000000e+00> : vector<208x128xf32>
    %44 = tpu.matmul %41, %43, %cst_24 {dimension_numbers = #tpu.dot_dimension_numbers<[1], [0], [0], [1], [0, 0, 1, 1], [], []>} : vector<208x128xbf16>, vector<128x128xbf16>, vector<208x128xf32> -> vector<208x128xf32>
    %45 = arith.addf %40, %44 : vector<208x128xf32>
    %46 = vector.extract_strided_slice %9 {offsets = [29, 0], sizes = [208, 128], strides = [1, 1]} : vector<240x128xbf16> to vector<208x128xbf16>
    %c7 = arith.constant 7 : index
    %c0_25 = arith.constant 0 : index
    %c0_26 = arith.constant 0 : index
    %47 = vector.load %arg3[%c7, %c0_25, %c0_26] : memref<9x128x128xbf16, #tpu.memory_space<vmem>>, vector<1x128x128xbf16>
    %48 = vector.shape_cast %47 : vector<1x128x128xbf16> to vector<128x128xbf16>
    %cst_27 = arith.constant dense<0.000000e+00> : vector<208x128xf32>
    %49 = tpu.matmul %46, %48, %cst_27 {dimension_numbers = #tpu.dot_dimension_numbers<[1], [0], [0], [1], [0, 0, 1, 1], [], []>} : vector<208x128xbf16>, vector<128x128xbf16>, vector<208x128xf32> -> vector<208x128xf32>
    %50 = arith.addf %45, %49 : vector<208x128xf32>
    %51 = vector.extract_strided_slice %9 {offsets = [30, 0], sizes = [208, 128], strides = [1, 1]} : vector<240x128xbf16> to vector<208x128xbf16>
    %c8 = arith.constant 8 : index
    %c0_28 = arith.constant 0 : index
    %c0_29 = arith.constant 0 : index
    %52 = vector.load %arg3[%c8, %c0_28, %c0_29] : memref<9x128x128xbf16, #tpu.memory_space<vmem>>, vector<1x128x128xbf16>
    %53 = vector.shape_cast %52 : vector<1x128x128xbf16> to vector<128x128xbf16>
    %cst_30 = arith.constant dense<0.000000e+00> : vector<208x128xf32>
    %54 = tpu.matmul %51, %53, %cst_30 {dimension_numbers = #tpu.dot_dimension_numbers<[1], [0], [0], [1], [0, 0, 1, 1], [], []>} : vector<208x128xbf16>, vector<128x128xbf16>, vector<208x128xf32> -> vector<208x128xf32>
    %55 = arith.addf %50, %54 : vector<208x128xf32>
    %c0_31 = arith.constant 0 : index
    %c0_32 = arith.constant 0 : index
    %c0_33 = arith.constant 0 : index
    %56 = vector.load %arg5[%c0_31, %c0_32, %c0_33] : memref<1x208x128xf32, #tpu.memory_space<vmem>>, vector<1x208x128xf32>
    %57 = vector.shape_cast %56 : vector<1x208x128xf32> to vector<208x128xf32>
    %58 = vector.shape_cast %55 : vector<208x128xf32> to vector<1x208x128xf32>
    tpu.vector_store %arg5[%c0_31, %c0_32, %c0_33], %58 {strides = array<i32>} : memref<1x208x128xf32, #tpu.memory_space<vmem>>, vector<1x208x128xf32>,
    %c0_34 = arith.constant 0 : index
    %c0_35 = arith.constant 0 : index
    %59 = vector.load %arg4[%c0_34, %c0_35] : memref<208x1xf32, #tpu.memory_space<vmem>>, vector<208x1xf32>
    %60 = vector.broadcast %59 : vector<208x1xf32> to vector<208x128xf32>
    %61 = arith.mulf %55, %60 : vector<208x128xf32>
    %c0_36 = arith.constant 0 : index
    %c0_37 = arith.constant 0 : index
    %62 = vector.load %arg6[%c0_36, %c0_37] : memref<1x128xf32, #tpu.memory_space<vmem>>, vector<1x128xf32>
    %cst_38 = arith.constant dense<0.000000e+00> : vector<128xf32>
    %63 = vector.multi_reduction <add>, %61, %cst_38 [0] : vector<208x128xf32> to vector<128xf32>
    %64 = vector.shape_cast %63 : vector<128xf32> to vector<1x128xf32>
    %65 = arith.addf %62, %64 : vector<1x128xf32>
    %c0_39 = arith.constant 0 : index
    %c0_40 = arith.constant 0 : index
    %66 = vector.load %arg6[%c0_39, %c0_40] : memref<1x128xf32, #tpu.memory_space<vmem>>, vector<1x128xf32>
    tpu.vector_store %arg6[%c0_39, %c0_40], %65 {strides = array<i32>} : memref<1x128xf32, #tpu.memory_space<vmem>>, vector<1x128xf32>,
    %c0_41 = arith.constant 0 : index
    %c0_42 = arith.constant 0 : index
    %67 = vector.load %arg7[%c0_41, %c0_42] : memref<1x128xf32, #tpu.memory_space<vmem>>, vector<1x128xf32>
    %68 = arith.mulf %61, %55 : vector<208x128xf32>
    %cst_43 = arith.constant dense<0.000000e+00> : vector<128xf32>
    %69 = vector.multi_reduction <add>, %68, %cst_43 [0] : vector<208x128xf32> to vector<128xf32>
    %70 = vector.shape_cast %69 : vector<128xf32> to vector<1x128xf32>
    %71 = arith.addf %67, %70 : vector<1x128xf32>
    %c0_44 = arith.constant 0 : index
    %c0_45 = arith.constant 0 : index
    %72 = vector.load %arg7[%c0_44, %c0_45] : memref<1x128xf32, #tpu.memory_space<vmem>>, vector<1x128xf32>
    tpu.vector_store %arg7[%c0_44, %c0_45], %71 {strides = array<i32>} : memref<1x128xf32, #tpu.memory_space<vmem>>, vector<1x128xf32>,
    return
  }
  func.func @transform_0(%arg0: i32, %arg1: i32) -> (i32, i32, i32) {
    %c0_i32 = arith.constant 0 : i32
    %c0_i32_0 = arith.constant 0 : i32
    %c0_i32_1 = arith.constant 0 : i32
    return %arg0, %c0_i32, %c0_i32_0 : i32, i32, i32
  }
  func.func @transform_1(%arg0: i32, %arg1: i32) -> (i32, i32, i32) {
    %c0_i32 = arith.constant 0 : i32
    %c0_i32_0 = arith.constant 0 : i32
    %c0_i32_1 = arith.constant 0 : i32
    %c0_i32_2 = arith.constant 0 : i32
    return %c0_i32, %c0_i32_0, %c0_i32_1 : i32, i32, i32
  }
  func.func @transform_2(%arg0: i32, %arg1: i32) -> (i32, i32) {
    %c0_i32 = arith.constant 0 : i32
    %c0_i32_0 = arith.constant 0 : i32
    return %arg1, %c0_i32 : i32, i32
  }
  func.func @transform_3(%arg0: i32, %arg1: i32) -> (i32, i32, i32) {
    %c0_i32 = arith.constant 0 : i32
    %c0_i32_0 = arith.constant 0 : i32
    return %arg0, %arg1, %c0_i32 : i32, i32, i32
  }
  func.func @transform_4(%arg0: i32, %arg1: i32) -> (i32, i32) {
    %c0_i32 = arith.constant 0 : i32
    %c0_i32_0 = arith.constant 0 : i32
    %c0_i32_1 = arith.constant 0 : i32
    return %c0_i32, %c0_i32_0 : i32, i32
  }
  func.func @transform_5(%arg0: i32, %arg1: i32) -> (i32, i32) {
    %c0_i32 = arith.constant 0 : i32
    %c0_i32_0 = arith.constant 0 : i32
    %c0_i32_1 = arith.constant 0 : i32
    return %c0_i32, %c0_i32_0 : i32, i32
  }
}

module attributes {stable_mosaic.version = 11 : i64} {
  func.func @_bn_relu_kernel(%arg0: i32, %arg1: i32, %arg2: memref<1x208x128xf32, #tpu.memory_space<vmem>>, %arg3: memref<1x128xf32, #tpu.memory_space<vmem>>, %arg4: memref<1x128xf32, #tpu.memory_space<vmem>>, %arg5: memref<1x208x128xf32, #tpu.memory_space<vmem>>) attributes {dimension_semantics = [#tpu.dimension_semantics<parallel>, #tpu.dimension_semantics<parallel>], iteration_bounds = array<i64: 2, 1>, scalar_prefetch = 0 : i64, scratch_operands = 0 : i64, tpu.core_type = #tpu.core_type<tc>, window_params = [{transform_indices = @transform_0, window_bounds = array<i64: 1, 208, 128>}, {pipeline_mode = #tpu.pipeline_mode<synchronous>, transform_indices = @transform_1, window_bounds = array<i64: 1, 128>}, {pipeline_mode = #tpu.pipeline_mode<synchronous>, transform_indices = @transform_2, window_bounds = array<i64: 1, 128>}, {transform_indices = @transform_3, window_bounds = array<i64: 1, 208, 128>}]} {
    %c0 = arith.constant 0 : index
    %c0_0 = arith.constant 0 : index
    %c0_1 = arith.constant 0 : index
    %0 = vector.load %arg2[%c0, %c0_0, %c0_1] : memref<1x208x128xf32, #tpu.memory_space<vmem>>, vector<1x208x128xf32>
    %1 = vector.shape_cast %0 : vector<1x208x128xf32> to vector<208x128xf32>
    %c0_2 = arith.constant 0 : index
    %c0_3 = arith.constant 0 : index
    %2 = vector.load %arg3[%c0_2, %c0_3] : memref<1x128xf32, #tpu.memory_space<vmem>>, vector<1x128xf32>
    %3 = vector.broadcast %2 : vector<1x128xf32> to vector<208x128xf32>
    %4 = arith.mulf %1, %3 : vector<208x128xf32>
    %c0_4 = arith.constant 0 : index
    %c0_5 = arith.constant 0 : index
    %5 = vector.load %arg4[%c0_4, %c0_5] : memref<1x128xf32, #tpu.memory_space<vmem>>, vector<1x128xf32>
    %6 = vector.broadcast %5 : vector<1x128xf32> to vector<208x128xf32>
    %7 = arith.addf %4, %6 : vector<208x128xf32>
    %cst = arith.constant 0.000000e+00 : f32
    %8 = vector.broadcast %cst : f32 to vector<208x128xf32>
    %9 = arith.maximumf %7, %8 : vector<208x128xf32>
    %c0_6 = arith.constant 0 : index
    %c0_7 = arith.constant 0 : index
    %c0_8 = arith.constant 0 : index
    %10 = vector.load %arg5[%c0_6, %c0_7, %c0_8] : memref<1x208x128xf32, #tpu.memory_space<vmem>>, vector<1x208x128xf32>
    %11 = vector.shape_cast %10 : vector<1x208x128xf32> to vector<208x128xf32>
    %12 = vector.shape_cast %9 : vector<208x128xf32> to vector<1x208x128xf32>
    tpu.vector_store %arg5[%c0_6, %c0_7, %c0_8], %12 {strides = array<i32>} : memref<1x208x128xf32, #tpu.memory_space<vmem>>, vector<1x208x128xf32>,
    return
  }
  func.func @transform_0(%arg0: i32, %arg1: i32) -> (i32, i32, i32) {
    %c0_i32 = arith.constant 0 : i32
    %c0_i32_0 = arith.constant 0 : i32
    return %arg0, %arg1, %c0_i32 : i32, i32, i32
  }
  func.func @transform_1(%arg0: i32, %arg1: i32) -> (i32, i32) {
    %c0_i32 = arith.constant 0 : i32
    %c0_i32_0 = arith.constant 0 : i32
    %c0_i32_1 = arith.constant 0 : i32
    return %c0_i32, %c0_i32_0 : i32, i32
  }
  func.func @transform_2(%arg0: i32, %arg1: i32) -> (i32, i32) {
    %c0_i32 = arith.constant 0 : i32
    %c0_i32_0 = arith.constant 0 : i32
    %c0_i32_1 = arith.constant 0 : i32
    return %c0_i32, %c0_i32_0 : i32, i32
  }
  func.func @transform_3(%arg0: i32, %arg1: i32) -> (i32, i32, i32) {
    %c0_i32 = arith.constant 0 : i32
    %c0_i32_0 = arith.constant 0 : i32
    return %arg0, %arg1, %c0_i32 : i32, i32, i32
  }
}

</mosaic_0001>

<bundles_post_ra>
// kernel: decoder_block_forward.5
= control target key start
LH: loop header
LB: loop body
LE: loop exit
PB: predicated region body
PF: predicated region fallthrough
CT: control target
= control target key end

     0   :  { %8 = vsyncpa [#allocation3], 0  ;;  %s1502_s0 = inlined_call_operand.hbm [shape: f32[2,256,128], index: 0, kind: input, shape index: {}]   ;;  %s1503_s1 = inlined_call_operand.hbm [shape: f32[1,128], index: 1, kind: input, shape index: {}]   ;;  %s1504_s2 = inlined_call_operand.hbm [shape: f32[1,128], index: 2, kind: input, shape index: {}]   ;;  %s1505_s3 = inlined_call_operand.hbm [shape: bf16[2,256,128], index: 3, kind: output, shape index: {}]  }
   0x1   :  { %10 = vsyncpa [#allocation3 + $0x1], 0 }
   0x2   :  { %11 = vsyncpa [#allocation6], 0 }
   0x3   :  { %12 = vsyncpa [#allocation4], 0 }
   0x4   :  { %14 = vsyncpa [#allocation4 + $0x1], 0  ;;  %s1129_s12 = smov 0   ;;  %s1131_s13 = smov 0  }
   0x5   :  { %s1133_s14 = smov 0   ;;  %s1135_s15 = smov 0  }
   0x6   :  { %s1137_s16 = smov 0   ;;  %s1139_s17 = smov 0  }
   0x7 LB: > { %s658_s18 = sadd.s32 4294967295, %s1099_s17   ;;  %s659_s19 = sadd.s32 4294967294, %s1099_s17   ;;  %s1099_s17 = sphi %s1139_s17, %s20_s17   ;;  %s1095_s16 = sphi %s1137_s16, %s1531_s16   ;;  %s1091_s15 = sphi %s1135_s15, %s1530_s15   ;;  %s1087_s14 = sphi %s1133_s14, %s1529_s14   ;;  %s1083_s13 = sphi %s1131_s13, %s1528_s13   ;;  %s1079_s12 = sphi %s1129_s12, %s1527_s12  }
   0x8   : > { %s41_s20 = sadd.s32 1, %s1087_s14  ;;  %p48_p0 = scmp.ne.s32.totalorder %s1087_s14, %s1083_s13 }
   0x9   : > { %p49_p1 = scmp.eq.s32.totalorder %s1099_s17, 0  ;;  %p54_p2 = scmp.ne.s32.totalorder %s1083_s13, %s1079_s12 }
   0xa   : > { %p1167_p3 = scmp.eq.s32.totalorder %s658_s18, 0  ;;  %p122_p4 = scmp.eq.s32.totalorder %s658_s18, 1 }
   0xb   : > { %p1171_p5 = por %p49_p1, %p48_p0  ;;  %p128_p6 = scmp.eq.s32.totalorder %s659_s19, 1 }
   0xc   : > { %s1512_s21 = scalar_select %p1167_p3, 1, 0 }
   0xd   : > { %p1177_p7 = por %p1167_p3, %p54_p2  ;;  %p1181_p8 = por %p122_p4, %p48_p0 }
   0xe   : > { %p1185_p9 = por %p128_p6, %p54_p2  ;;  %p660_p10 = scmp.ge.s32.totalorder %s1099_s17, 1 }
   0xf   : > { %s1514_s23 = scalar_select %p1177_p7, 1, 0 }
  0x10   : > { %s1515_s24 = scalar_select %p1181_p8, 1, 0 }
  0x11   : > { %s1516_s25 = scalar_select %p1185_p9, 1, 0 }
  0x12   : > { %p135_p11 = scmp.lt.s32.totalorder %s1099_s17, 3  ;;  %s1101_s27 = smov [#allocation5]  }
  0x13   : > { %s148_s28 = sshll.u32 %s1101_s27, 4  ;;  %p869_p1 = scmp.lt.s32.totalorder %s1099_s17, 2  ;;  %s149_s28 = int_to_ptr.vmem [resolvable:$true] %s148_s28 }
  0x14   : > { %p1192_p13 = pnand %p660_p10, %p135_p11  ;;  %s1102_s30 = smov [#allocation7]  }
  0x15   : > { %p1201_p4 = pnand %p869_p1, %p1171_p5  ;;  %s159_s4 = sshll.u32 %s1102_s30, 4  ;;  %s1211_s4 = int_to_ptr.vmem [resolvable:$true] %s159_s4 }
  0x16   : > { %s1517_s26 = scalar_select %p1192_p13, 1, 0 }
  0x17   : > { %p852_p0 = pneg %p1192_p13  ;;  %s927_s8 = scalar_lea.hbm %s1503_s1, 16 }
  0x18   : > { %s1518_s29 = scalar_select %p1201_p4, 1, 0 }
  0x19   : > { %p1207_p2 = pnand %p852_p0, %p1167_p3  ;;  %p928_p5 = scmp.ne.s32.totalorder %s1503_s1, %s927_s8 }
  0x1a   : > { %p934_p1 = scmp.lt.u32.totalorder %s927_s8, %s1503_s1 }
  0x1b   : > { %p929_p6 = pneg %p1207_p2 }
  0x1d   : > { %p930_p10 = pnand %p929_p6, %p928_p5 }
  0x1f   : > { %p931_p11 = pneg %p930_p10 }
  0x21   : > { %p936_p0 = pnand %p934_p1, %p931_p11 }
  0x23   : > { %939 = shalt.err (!%p936_p0)
}
  0x24   : > { %s940_s19 = scalar_lea.vmem %s149_s28, 16  ;;  %s947_s22 = scalar_lea.vmem %s149_s28, 32 }
  0x25   : > { %p941_p12 = scmp.ne.s32.totalorder %s149_s28, %s940_s19  ;;  %p948_p3 = scmp.lt.s32.totalorder %s149_s28, %s149_s28 }
  0x26   : > { %p949_p7 = scmp.lt.s32.totalorder %s947_s22, %s940_s19 }
  0x27   : > { %p943_p9 = pnand %p941_p12, %p929_p6 }
  0x28   : > { %p950_p13 = por %p949_p7, %p948_p3 }
  0x29   : > { %p944_p8 = pneg %p943_p9 }
  0x2b   : > { %p951_p4 = pnand %p950_p13, %p944_p8 }
  0x2d   : > { %954 = shalt.err (!%p951_p4)
}
  0x2e   : > { %855 = dma.hbm_to_vmem [thread:$0]  (!%p1207_p2), %s1503_s1, 16, %s149_s28, [#allocation6]  }
  0x2f   : > { %s955_s8 = scalar_lea.hbm %s1504_s2, 16 }
  0x30   : > { %p956_p9 = scmp.ne.s32.totalorder %s1504_s2, %s955_s8  ;;  %p962_p8 = scmp.lt.u32.totalorder %s955_s8, %s1504_s2 }
  0x32   : > { %p958_p3 = pnand %p956_p9, %p929_p6 }
  0x34   : > { %p959_p7 = pneg %p958_p3 }
  0x36   : > { %p964_p12 = pnand %p962_p8, %p959_p7 }
  0x38   : > { %967 = shalt.err (!%p964_p12)
}
  0x39   : > { %s968_s28 = scalar_lea.vmem %s1211_s4, 16  ;;  %s975_s19 = scalar_lea.vmem %s1211_s4, 32 }
  0x3a   : > { %p969_p13 = scmp.ne.s32.totalorder %s1211_s4, %s968_s28  ;;  %p976_p10 = scmp.lt.s32.totalorder %s1211_s4, %s1211_s4 }
  0x3b   : > { %p977_p11 = scmp.lt.s32.totalorder %s975_s19, %s968_s28 }
  0x3c   : > { %p971_p4 = pnand %p969_p13, %p929_p6 }
  0x3d   : > { %p978_p1 = por %p977_p11, %p976_p10 }
  0x3e   : > { %p972_p5 = pneg %p971_p4 }
  0x40   : > { %p979_p0 = pnand %p978_p1, %p972_p5 }
  0x42   : > { %982 = shalt.err (!%p979_p0)
}
  0x43   : > { %858 = dma.hbm_to_vmem [thread:$0]  (!%p1207_p2), %s1504_s2, 16, %s1211_s4, [#allocation6]  }
  0x44   : > { %s32_s30 = sadd.s32 1, %s1095_s16  ;;  %s170_s6 = sand.u32 1, %s1087_s14  }
  0x45   : > { %p34_p6 = scmp.ge.s32.totalorder %s32_s30, 2  ;;  %s664_s7 = sshll.u32 %s170_s6, 8 }
  0x46   : > { %s711_s8 = sshll.u32 %s1095_s16, 12  ;;  %s174_s4 = scalar_lea.vmem [#allocation2], %s664_s7 }
  0x47   : > { %s1533_s30 = smov (%p34_p6, %s32_s30), 0  ;;  %s1269_s10 = scalar_lea.hbm %s1502_s0, %s711_s8 }
  0x48   : > { %s36_s11 = ssub.s32 %s1095_s16, %s1533_s30  ;;  %s183_s18 = sshll.u32 %s174_s4, 4  ;;  %s1273_s18 = int_to_ptr.vmem [resolvable:$true] %s183_s18 }
  0x49   : > { %p39_p2 = scmp.eq.s32.totalorder %s36_s11, 0  ;;  %s1280_s19 = scalar_lea.sflag [#allocation3], %s170_s6 }
  0x4a   : > { %s983_s22 = scalar_lea.hbm %s1269_s10, 4096  ;;  %p1520_p3 = scmp.ne.s32.totalorder %s1518_s29, 0 }
  0x4b   : > { %s1278_s28 = scalar_select %p39_p2, %s1087_s14, %s41_s20  }
  0x4c   : > { %p984_p9 = scmp.ne.s32.totalorder %s1269_s10, %s983_s22  ;;  %p985_p7 = pneg %p1520_p3 }
  0x4d   : > { %s988_s7 = scalar_lea.hbm %s1502_s0, 8192  ;;  %p989_p13 = scmp.lt.u32.totalorder %s1269_s10, %s1502_s0 }
  0x4e   : > { %p986_p8 = pnand %p985_p7, %p984_p9  ;;  %p990_p4 = scmp.lt.u32.totalorder %s988_s7, %s983_s22 }
  0x4f   : > { %p992_p10 = scmp.lt.u32.totalorder %s983_s22, %s1269_s10 }
  0x50   : > { %p987_p12 = pneg %p986_p8  ;;  %p991_p5 = por %p990_p4, %p989_p13 }
  0x52   : > { %p993_p11 = por %p992_p10, %p991_p5 }
  0x54   : > { %p994_p1 = pnand %p993_p11, %p987_p12 }
  0x56   : > { %997 = shalt.err (!%p994_p1)
}
  0x57   : > { %s998_s20 = scalar_lea.vmem %s1273_s18, 4096  ;;  %s1103_s6 = smov [#allocation2]  }
  0x58   : > { %p999_p0 = scmp.ne.s32.totalorder %s1273_s18, %s998_s20  ;;  %s1003_s11 = sshll.u32 %s1103_s6, 4  ;;  %s1004_s11 = int_to_ptr.vmem [resolvable:$false] %s1003_s11 }
  0x59   : > { %s1005_s4 = scalar_lea.vmem %s1004_s11, 8192  ;;  %p1006_p9 = scmp.lt.s32.totalorder %s1273_s18, %s1004_s11 }
  0x5a   : > { %p1001_p6 = pnand %p999_p0, %p985_p7  ;;  %p1007_p8 = scmp.lt.s32.totalorder %s1005_s4, %s998_s20 }
  0x5c   : > { %p1002_p2 = pneg %p1001_p6  ;;  %p1008_p13 = por %p1007_p8, %p1006_p9 }
  0x5e   : > { %p1009_p4 = pnand %p1008_p13, %p1002_p2 }
  0x60   : > { %1012 = shalt.err (!%p1009_p4)
}
  0x61   : > { %s1104_s22 = smov 128   ;;  %s1105_s27 = smov 8  }
  0x62   : > { %862 = dma.hbm_to_vmem [thread:$0]  (!%p1520_p3), %s1269_s10, 4096, %s1273_s18, %s1280_s19, %s1104_s22, %s1104_s22, %s1105_s27  }
  0x63   : > { %p1521_p7 = scmp.ne.s32.totalorder %s1517_s26, 0 }
  0x64   : > { %s1311_s8 = sand.u32 (!%p1521_p7), 1, %s1083_s13   ;;  %p1522_p12 = scmp.ne.s32.totalorder (!%p1521_p7), %s1514_s23, 0 }
  0x65   : > { %195 = sbr.rel (%p1521_p7) target bundleno = 162 (0xa2), region = 32  ;;  %s668_s7 = sshll.u32 (!%p1521_p7), %s1311_s8, 8 }
  0x66   : > { %s198_s5 = scalar_lea.sflag (!%p1521_p7), [#allocation3], %s1311_s8  ;;  %s1315_s9 = scalar_lea.vmem (!%p1521_p7), [#allocation2], %s668_s7 }
  0x6c   : > { %1066 = dma.done.wait (%p1522_p12), %s198_s5, 4096  }
  0x6d   : > { %1068 = vsyncadd (%p1522_p12), %s198_s5, 4294963200  ;;  %p1523_p3 = scmp.ne.s32.totalorder %s1512_s21, 0 }
  0x6f   : > { %1070 = dma.done.wait (%p1523_p3), [#allocation6], 32  }
  0x70   : > { %1072 = vsyncadd (%p1523_p3), [#allocation6], 4294967264  ;;  %v234_v0 = vld [vmem:[%s1315_s9] sm:$0xff]  ;;  %v235_v1 = vld [vmem:[%s1315_s9 + $0x8] sm:$0xff]  ;;  %s671_s21 = sshll.u32 %s1311_s8, 7  ;;  %s744_s26 = sshll.u32 %s1091_s15, 11 }
  0x71   : > { %v1327_v2 = vld [vmem:[#allocation5] ss:$0 sm:$0xff]  ;;  %v1331_v5 = vld [vmem:[#allocation7] ss:$0 sm:$0xff]  ;;  %v236_v6 = vld [vmem:[%s1315_s9 + $0x10] sm:$0xff]  ;;  %s1365_s23 = scalar_lea.vmem [#allocation8], %s671_s21  ;;  %s1449_s19 = scalar_lea.hbm %s1505_s3, %s744_s26 }
  0x72   : > { %v273_v3 = vmul.f32 %v1327_v2, %v234_v0  ;;  %v274_v4 = vmul.f32 %v1327_v2, %v235_v1  ;;  %v237_v7 = vld [vmem:[%s1315_s9 + $0x18] sm:$0xff]  ;;  %v275_v8 = vmul.f32 %v1327_v2, %v236_v6  ;;  %v238_v10 = vld [vmem:[%s1315_s9 + $0x20] sm:$0xff]  ;;  %v239_v11 = vld [vmem:[%s1315_s9 + $0x28] sm:$0xff]  ;;  %s552_s29 = sshll.u32 %s1365_s23, 4  ;;  %s537_s15 = scalar_lea.sflag [#allocation4], %s1311_s8  ;;  %s1451_s29 = int_to_ptr.vmem [resolvable:$true] %s552_s29 }
  0x73   : > { %v276_v9 = vmul.f32 %v1327_v2, %v237_v7  ;;  %v240_v12 = vld [vmem:[%s1315_s9 + $0x30] sm:$0xff]  ;;  %v277_v15 = vmul.f32 %v1327_v2, %v238_v10  ;;  %v278_v16 = vmul.f32 %v1327_v2, %v239_v11  ;;  %v241_v17 = vld [vmem:[%s1315_s9 + $0x38] sm:$0xff]  ;;  %v242_v22 = vld [vmem:[%s1315_s9 + $0x40] sm:$0xff]  ;;  %s1013_s20 = scalar_lea.vmem %s1451_s29, 2048  ;;  %p1524_p10 = scmp.ne.s32.totalorder %s1515_s24, 0 }
  0x74   : > { %v312_v13 = vadd.f32 %v1331_v5, %v273_v3  ;;  %v313_v14 = vadd.f32 %v1331_v5, %v274_v4  ;;  %v314_v18 = vadd.f32 %v1331_v5, %v275_v8  ;;  %v279_v20 = vmul.f32 %v1327_v2, %v240_v12  ;;  %v243_v27 = vld [vmem:[%s1315_s9 + $0x48] sm:$0xff]  ;;  %v244_v32 = vld [vmem:[%s1315_s9 + $0x50] sm:$0xff]  ;;  %v245_v33 = vld [vmem:[%s1315_s9 + $0x58] sm:$0xff]  ;;  %p1014_p5 = scmp.ne.s32.totalorder %s1451_s29, %s1013_s20  ;;  %s1106_s6 = smov [#allocation8]  }
  0x75   : > { %v315_v19 = vadd.f32 %v1331_v5, %v276_v9  ;;  %v280_v21 = vmul.f32 %v1327_v2, %v241_v17  ;;  %v316_v25 = vadd.f32 %v1331_v5, %v277_v15  ;;  %v317_v26 = vadd.f32 %v1331_v5, %v278_v16  ;;  %v246_v38 = vld [vmem:[%s1315_s9 + $0x60] sm:$0xff]  ;;  %v247_v39 = vld [vmem:[%s1315_s9 + $0x68] sm:$0xff]  ;;  %v248_v44 = vld [vmem:[%s1315_s9 + $0x70] sm:$0xff]  ;;  %s1017_s11 = sshll.u32 %s1106_s6, 4  ;;  %s1018_s11 = int_to_ptr.vmem [resolvable:$false] %s1017_s11 }
  0x76   : > { %v344_v23 = vmax.f32 %v312_v13, 0.0  ;;  %v345_v24 = vmax.f32 %v313_v14, 0.0  ;;  %v346_v28 = vmax.f32 %v314_v18, 0.0  ;;  %v318_v30 = vadd.f32 %v1331_v5, %v279_v20  ;;  %v249_v49 = vld [vmem:[%s1315_s9 + $0x78] sm:$0xff]  ;;  %v250_v54 = vld [vmem:[%s1315_s9 + $0x80] sm:$0xff]  ;;  %v251_v63 = vld [vmem:[%s1315_s9 + $0x88] sm:$0xff]  ;;  %p1015_p11 = pnand %p1014_p5, %p1524_p10  ;;  %p1020_p0 = scmp.lt.s32.totalorder %s1451_s29, %s1018_s11 }
  0x77   : > { %v347_v29 = vmax.f32 %v315_v19, 0.0  ;;  %v319_v31 = vadd.f32 %v1331_v5, %v280_v21  ;;  %v348_v35 = vmax.f32 %v316_v25, 0.0  ;;  %v349_v36 = vmax.f32 %v317_v26, 0.0  ;;  %v252_v6 = vld [vmem:[%s1315_s9 + $0x90] sm:$0xff]  ;;  %v253_v7 = vld [vmem:[%s1315_s9 + $0x98] sm:$0xff]  ;;  %v254_v12 = vld [vmem:[%s1315_s9 + $0xa0] sm:$0xff] }
  0x78   : > { %v748_v34 = vpack.c.bf16 %v345_v24, %v344_v23  ;;  %v281_v37 = vmul.f32 %v1327_v2, %v242_v22  ;;  %v350_v41 = vmax.f32 %v318_v30, 0.0  ;;  %v282_v43 = vmul.f32 %v1327_v2, %v243_v27  ;;  %v255_v13 = vld [vmem:[%s1315_s9 + $0xa8] sm:$0xff]  ;;  %v256_v18 = vld [vmem:[%s1315_s9 + $0xb0] sm:$0xff]  ;;  %v257_v23 = vld [vmem:[%s1315_s9 + $0xb8] sm:$0xff]  ;;  %p1016_p1 = pneg %p1015_p11  ;;  %s1019_s4 = scalar_lea.vmem %s1018_s11, 4096 }
  0x79   : > { %v753_v40 = vpack.c.bf16 %v347_v29, %v346_v28  ;;  %v351_v42 = vmax.f32 %v319_v31, 0.0  ;;  %v758_v45 = vpack.c.bf16 %v349_v36, %v348_v35  ;;  %v283_v47 = vmul.f32 %v1327_v2, %v244_v32  ;;  %v258_v28 = vld [vmem:[%s1315_s9 + $0xc0] sm:$0xff]  ;;  %p1021_p6 = scmp.lt.s32.totalorder %s1019_s4, %s1013_s20 }
  0x7a   : > { %749 = vst [vmem:[%s1365_s23] sm:$0xff] %v748_v34   ;;  %v320_v46 = vadd.f32 %v1331_v5, %v281_v37  ;;  %v284_v48 = vmul.f32 %v1327_v2, %v245_v33  ;;  %v321_v51 = vadd.f32 %v1331_v5, %v282_v43  ;;  %v285_v52 = vmul.f32 %v1327_v2, %v246_v38  ;;  %v259_v37 = vld [vmem:[%s1315_s9 + $0xc8] sm:$0xff]  ;;  %v261_v43 = vld [vmem:[%s1315_s9 + $0xd8] sm:$0xff] }
  0x7b   : > { %825 = vst [vmem:[%s1365_s23 + $0x8] sm:$0xff] %v753_v40   ;;  %v763_v50 = vpack.c.bf16 %v351_v42, %v350_v41  ;;  %v286_v53 = vmul.f32 %v1327_v2, %v247_v39  ;;  %826 = vst [vmem:[%s1365_s23 + $0x10] sm:$0xff] %v758_v45   ;;  %v322_v56 = vadd.f32 %v1331_v5, %v283_v47  ;;  %v260_v42 = vld [vmem:[%s1315_s9 + $0xd0] sm:$0xff]  ;;  %p1022_p2 = por %p1021_p6, %p1020_p0 }
  0x7c   : > { %v352_v55 = vmax.f32 %v320_v46, 0.0  ;;  %v323_v57 = vadd.f32 %v1331_v5, %v284_v48  ;;  %v287_v58 = vmul.f32 %v1327_v2, %v248_v44  ;;  %v353_v59 = vmax.f32 %v321_v51, 0.0  ;;  %v262_v48 = vld [vmem:[%s1315_s9 + $0xe0] sm:$0xff] }
  0x7d   : > { %827 = vst [vmem:[%s1365_s23 + $0x18] sm:$0xff] %v763_v50   ;;  %v324_v60 = vadd.f32 %v1331_v5, %v285_v52  ;;  %v325_v61 = vadd.f32 %v1331_v5, %v286_v53  ;;  %v288_v62 = vmul.f32 %v1327_v2, %v249_v49  ;;  %v354_v0 = vmax.f32 %v322_v56, 0.0  ;;  %v263_v49 = vld [vmem:[%s1315_s9 + $0xe8] sm:$0xff]  ;;  %p1023_p9 = pnand %p1022_p2, %p1016_p1 }
  0x7e   : > { %v355_v1 = vmax.f32 %v323_v57, 0.0  ;;  %v326_v3 = vadd.f32 %v1331_v5, %v287_v58  ;;  %v289_v4 = vmul.f32 %v1327_v2, %v250_v54  ;;  %v768_v8 = vpack.c.bf16 %v353_v59, %v352_v55  ;;  %v264_v54 = vld [vmem:[%s1315_s9 + $0xf0] sm:$0xff]  ;;  %v265_v59 = vld [vmem:[%s1315_s9 + $0xf8] sm:$0xff] }
  0x7f   : > { %v356_v9 = vmax.f32 %v324_v60, 0.0  ;;  %v357_v10 = vmax.f32 %v325_v61, 0.0  ;;  %v327_v11 = vadd.f32 %v1331_v5, %v288_v62  ;;  %v290_v16 = vmul.f32 %v1327_v2, %v251_v63 }
  0x80   : > { %v773_v14 = vpack.c.bf16 %v355_v1, %v354_v0  ;;  %v358_v15 = vmax.f32 %v326_v3, 0.0  ;;  %v328_v17 = vadd.f32 %v1331_v5, %v289_v4  ;;  %828 = vst [vmem:[%s1365_s23 + $0x20] sm:$0xff] %v768_v8   ;;  %v291_v21 = vmul.f32 %v1327_v2, %v252_v6 }
  0x81   : > { %v778_v19 = vpack.c.bf16 %v357_v10, %v356_v9  ;;  %v359_v20 = vmax.f32 %v327_v11, 0.0  ;;  %v292_v22 = vmul.f32 %v1327_v2, %v253_v7  ;;  %v329_v24 = vadd.f32 %v1331_v5, %v290_v16 }
  0x82   : > { %829 = vst [vmem:[%s1365_s23 + $0x28] sm:$0xff] %v773_v14   ;;  %v360_v25 = vmax.f32 %v328_v17, 0.0  ;;  %v293_v26 = vmul.f32 %v1327_v2, %v254_v12  ;;  %v294_v27 = vmul.f32 %v1327_v2, %v255_v13  ;;  %v330_v30 = vadd.f32 %v1331_v5, %v291_v21 }
  0x83   : > { %830 = vst [vmem:[%s1365_s23 + $0x30] sm:$0xff] %v778_v19   ;;  %v783_v29 = vpack.c.bf16 %v359_v20, %v358_v15  ;;  %v331_v31 = vadd.f32 %v1331_v5, %v292_v22  ;;  %v295_v32 = vmul.f32 %v1327_v2, %v256_v18  ;;  %v361_v33 = vmax.f32 %v329_v24, 0.0 }
  0x84   : > { %v332_v34 = vadd.f32 %v1331_v5, %v293_v26  ;;  %v333_v35 = vadd.f32 %v1331_v5, %v294_v27  ;;  %v296_v36 = vmul.f32 %v1327_v2, %v257_v23  ;;  %v362_v38 = vmax.f32 %v330_v30, 0.0 }
  0x85   : > { %831 = vst [vmem:[%s1365_s23 + $0x38] sm:$0xff] %v783_v29   ;;  %v363_v39 = vmax.f32 %v331_v31, 0.0  ;;  %v334_v40 = vadd.f32 %v1331_v5, %v295_v32  ;;  %v297_v41 = vmul.f32 %v1327_v2, %v258_v28  ;;  %v788_v44 = vpack.c.bf16 %v361_v33, %v360_v25 }
  0x86   : > { %v364_v45 = vmax.f32 %v332_v34, 0.0  ;;  %v365_v46 = vmax.f32 %v333_v35, 0.0  ;;  %v335_v47 = vadd.f32 %v1331_v5, %v296_v36  ;;  %v298_v52 = vmul.f32 %v1327_v2, %v259_v37 }
  0x87   : > { %v793_v50 = vpack.c.bf16 %v363_v39, %v362_v38  ;;  %v366_v51 = vmax.f32 %v334_v40, 0.0  ;;  %v336_v53 = vadd.f32 %v1331_v5, %v297_v41  ;;  %832 = vst [vmem:[%s1365_s23 + $0x40] sm:$0xff] %v788_v44   ;;  %v299_v57 = vmul.f32 %v1327_v2, %v260_v42 }
  0x88   : > { %v798_v55 = vpack.c.bf16 %v365_v46, %v364_v45  ;;  %v367_v56 = vmax.f32 %v335_v47, 0.0  ;;  %v300_v58 = vmul.f32 %v1327_v2, %v261_v43  ;;  %v337_v60 = vadd.f32 %v1331_v5, %v298_v52 }
  0x89   : > { %833 = vst [vmem:[%s1365_s23 + $0x48] sm:$0xff] %v793_v50   ;;  %v368_v61 = vmax.f32 %v336_v53, 0.0  ;;  %v301_v62 = vmul.f32 %v1327_v2, %v262_v48  ;;  %v302_v63 = vmul.f32 %v1327_v2, %v263_v49  ;;  %v338_v1 = vadd.f32 %v1331_v5, %v299_v57 }
  0x8a   : > { %834 = vst [vmem:[%s1365_s23 + $0x50] sm:$0xff] %v798_v55   ;;  %v803_v0 = vpack.c.bf16 %v367_v56, %v366_v51  ;;  %v339_v3 = vadd.f32 %v1331_v5, %v300_v58  ;;  %v303_v4 = vmul.f32 %v1327_v2, %v264_v54  ;;  %v369_v6 = vmax.f32 %v337_v60, 0.0 }
  0x8b   : > { %v340_v7 = vadd.f32 %v1331_v5, %v301_v62  ;;  %v341_v8 = vadd.f32 %v1331_v5, %v302_v63  ;;  %v304_v9 = vmul.f32 %v1327_v2, %v265_v59  ;;  %v370_v10 = vmax.f32 %v338_v1, 0.0 }
  0x8c   : > { %835 = vst [vmem:[%s1365_s23 + $0x58] sm:$0xff] %v803_v0   ;;  %v371_v11 = vmax.f32 %v339_v3, 0.0  ;;  %v342_v12 = vadd.f32 %v1331_v5, %v303_v4  ;;  %v808_v13 = vpack.c.bf16 %v369_v6, %v368_v61 }
  0x8d   : > { %v372_v14 = vmax.f32 %v340_v7, 0.0  ;;  %v373_v15 = vmax.f32 %v341_v8, 0.0  ;;  %v343_v16 = vadd.f32 %v1331_v5, %v304_v9 }
  0x8e   : > { %v813_v17 = vpack.c.bf16 %v371_v11, %v370_v10  ;;  %v374_v18 = vmax.f32 %v342_v12, 0.0  ;;  %836 = vst [vmem:[%s1365_s23 + $0x60] sm:$0xff] %v808_v13  }
  0x8f   : > { %v818_v2 = vpack.c.bf16 %v373_v15, %v372_v14  ;;  %v375_v19 = vmax.f32 %v343_v16, 0.0 }
  0x90   : > { %837 = vst [vmem:[%s1365_s23 + $0x68] sm:$0xff] %v813_v17  }
  0x91   : > { %838 = vst [vmem:[%s1365_s23 + $0x70] sm:$0xff] %v818_v2   ;;  %v823_v5 = vpack.c.bf16 %v375_v19, %v374_v18 }
  0x93   : > { %839 = vst [vmem:[%s1365_s23 + $0x78] sm:$0xff] %v823_v5  }
  0x94   : > { %1026 = shalt.err (!%p1023_p9)
}
  0x95   : > { %s1027_s22 = scalar_lea.hbm %s1449_s19, 2048  ;;  %s1031_s5 = scalar_lea.hbm %s1505_s3, 4096 }
  0x96   : > { %p1028_p8 = scmp.ne.s32.totalorder %s1449_s19, %s1027_s22  ;;  %p1032_p7 = scmp.lt.u32.totalorder %s1449_s19, %s1505_s3 }
  0x97   : > { %p1033_p12 = scmp.lt.u32.totalorder %s1031_s5, %s1027_s22  ;;  %p1035_p5 = scmp.lt.u32.totalorder %s1027_s22, %s1449_s19 }
  0x98   : > { %p1029_p13 = pnand %p1028_p8, %p1524_p10 }
  0x99   : > { %p1034_p3 = por %p1033_p12, %p1032_p7 }
  0x9a   : > { %p1030_p4 = pneg %p1029_p13 }
  0x9b   : > { %p1036_p11 = por %p1035_p5, %p1034_p3 }
  0x9d   : > { %p1037_p1 = pnand %p1036_p11, %p1030_p4 }
  0x9f   : > { %1040 = shalt.err (!%p1037_p1)
}
  0xa0   : > { %s1107_s23 = smov 64   ;;  %s1108_s26 = smov 4  }
  0xa1   : > { %850 = dma.vmem_to_hbm [thread:$0]  (%p1524_p10), %s1451_s29, 2048, %s1449_s19, %s537_s15, %s1107_s23, %s1107_s23, %s1108_s26  }
  0xa2 PF: > { %s567_s10 = sand.u32 1, %s1079_s12   ;;  %p1525_p0 = scmp.ne.s32.totalorder %s1516_s25, 0 }
  0xa3   : > { %p1526_p6 = scmp.ge.s32.totalorder %s1099_s17, 2  ;;  %s568_s18 = scalar_lea.sflag [#allocation4], %s567_s10 }
  0xa5   : > { %p864_p2 = pnand %p1526_p6, %p1525_p0 }
  0xa7   : > { %1074 = dma.done.wait (!%p864_p2), %s568_s18, 2048  }
  0xa8   : > { %1076 = vsyncadd (!%p864_p2), %s568_s18, 4294965248  ;;  %s20_s17 = sadd.s32 1, %s1099_s17   ;;  %s1527_s12 = smov %s1083_s13 }
  0xa9   : > { %p17_p9 = scmp.ge.s32.totalorder %s20_s17, 4   ;;  %s1528_s13 = smov %s1087_s14 }
  0xaa   : > { %s1529_s14 = smov %s1278_s28  ;;  %s1530_s15 = smov %s1095_s16 }
  0xab   : > { %s1531_s16 = smov %s1533_s30  ;;  %19 = sbr.rel (!%p17_p9) target bundleno = 7 (0x7), region = 85 }
  0xb2   :  { %573 = vsyncpa [#allocation3], 1 }
  0xb3   :  { %575 = vsyncpa [#allocation3 + $0x1], 1 }
  0xb4   :  { %576 = vsyncpa [#allocation6], 1 }
  0xb5   :  { %577 = vsyncpa [#allocation4], 1 }
  0xb6   :  { %579 = vsyncpa [#allocation4 + $0x1], 1 }

// kernel: decoder_block_forward.7
= control target key start
LH: loop header
LB: loop body
LE: loop exit
PB: predicated region body
PF: predicated region fallthrough
CT: control target
= control target key end

     0   :  { %8 = vsyncpa [#allocation3], 0  ;;  %s1174_s0 = inlined_call_operand.hbm [shape: f32[2,208,128], index: 0, kind: input, shape index: {}]   ;;  %s1175_s1 = inlined_call_operand.hbm [shape: f32[1,128], index: 1, kind: input, shape index: {}]   ;;  %s1176_s2 = inlined_call_operand.hbm [shape: f32[1,128], index: 2, kind: input, shape index: {}]   ;;  %s1177_s3 = inlined_call_operand.hbm [shape: f32[2,208,128], index: 3, kind: output, shape index: {}]  }
   0x1   :  { %10 = vsyncpa [#allocation3 + $0x1], 0 }
   0x2   :  { %11 = vsyncpa [#allocation6], 0 }
   0x3   :  { %12 = vsyncpa [#allocation4], 0 }
   0x4   :  { %14 = vsyncpa [#allocation4 + $0x1], 0  ;;  %s808_s12 = smov 0   ;;  %s810_s13 = smov 0  }
   0x5   :  { %s812_s14 = smov 0   ;;  %s814_s15 = smov 0  }
   0x6   :  { %s816_s16 = smov 0   ;;  %s818_s17 = smov 0  }
   0x7 LB: > { %s500_s18 = sadd.s32 4294967295, %s778_s17   ;;  %s501_s19 = sadd.s32 4294967294, %s778_s17   ;;  %s778_s17 = sphi %s818_s17, %s20_s17   ;;  %s774_s16 = sphi %s816_s16, %s1203_s16   ;;  %s770_s15 = sphi %s814_s15, %s1202_s15   ;;  %s766_s14 = sphi %s812_s14, %s1201_s14   ;;  %s762_s13 = sphi %s810_s13, %s1200_s13   ;;  %s758_s12 = sphi %s808_s12, %s1199_s12  }
   0x8   : > { %s41_s20 = sadd.s32 1, %s766_s14  ;;  %p48_p0 = scmp.ne.s32.totalorder %s766_s14, %s762_s13 }
   0x9   : > { %p49_p1 = scmp.eq.s32.totalorder %s778_s17, 0  ;;  %p54_p2 = scmp.ne.s32.totalorder %s762_s13, %s758_s12 }
   0xa   : > { %p846_p3 = scmp.eq.s32.totalorder %s500_s18, 0  ;;  %p122_p4 = scmp.eq.s32.totalorder %s500_s18, 1 }
   0xb   : > { %p850_p5 = por %p49_p1, %p48_p0  ;;  %p128_p6 = scmp.eq.s32.totalorder %s501_s19, 1 }
   0xc   : > { %s1184_s21 = scalar_select %p846_p3, 1, 0 }
   0xd   : > { %p856_p7 = por %p846_p3, %p54_p2  ;;  %p860_p8 = por %p122_p4, %p48_p0 }
   0xe   : > { %p864_p9 = por %p128_p6, %p54_p2  ;;  %p502_p10 = scmp.ge.s32.totalorder %s778_s17, 1 }
   0xf   : > { %s1186_s23 = scalar_select %p856_p7, 1, 0 }
  0x10   : > { %s1187_s24 = scalar_select %p860_p8, 1, 0 }
  0x11   : > { %s1188_s25 = scalar_select %p864_p9, 1, 0 }
  0x12   : > { %p135_p11 = scmp.lt.s32.totalorder %s778_s17, 3  ;;  %s780_s27 = smov [#allocation5]  }
  0x13   : > { %s148_s28 = sshll.u32 %s780_s27, 4  ;;  %p548_p1 = scmp.lt.s32.totalorder %s778_s17, 2  ;;  %s149_s28 = int_to_ptr.vmem [resolvable:$true] %s148_s28 }
  0x14   : > { %p871_p13 = pnand %p502_p10, %p135_p11  ;;  %s781_s30 = smov [#allocation7]  }
  0x15   : > { %p880_p4 = pnand %p548_p1, %p850_p5  ;;  %s159_s4 = sshll.u32 %s781_s30, 4  ;;  %s890_s4 = int_to_ptr.vmem [resolvable:$true] %s159_s4 }
  0x16   : > { %s1189_s26 = scalar_select %p871_p13, 1, 0 }
  0x17   : > { %p531_p0 = pneg %p871_p13  ;;  %s606_s8 = scalar_lea.hbm %s1175_s1, 16 }
  0x18   : > { %s1190_s29 = scalar_select %p880_p4, 1, 0 }
  0x19   : > { %p886_p2 = pnand %p531_p0, %p846_p3  ;;  %p607_p5 = scmp.ne.s32.totalorder %s1175_s1, %s606_s8 }
  0x1a   : > { %p613_p1 = scmp.lt.u32.totalorder %s606_s8, %s1175_s1 }
  0x1b   : > { %p608_p6 = pneg %p886_p2 }
  0x1d   : > { %p609_p10 = pnand %p608_p6, %p607_p5 }
  0x1f   : > { %p610_p11 = pneg %p609_p10 }
  0x21   : > { %p615_p0 = pnand %p613_p1, %p610_p11 }
  0x23   : > { %618 = shalt.err (!%p615_p0)
}
  0x24   : > { %s619_s19 = scalar_lea.vmem %s149_s28, 16  ;;  %s626_s22 = scalar_lea.vmem %s149_s28, 32 }
  0x25   : > { %p620_p12 = scmp.ne.s32.totalorder %s149_s28, %s619_s19  ;;  %p627_p3 = scmp.lt.s32.totalorder %s149_s28, %s149_s28 }
  0x26   : > { %p628_p7 = scmp.lt.s32.totalorder %s626_s22, %s619_s19 }
  0x27   : > { %p622_p9 = pnand %p620_p12, %p608_p6 }
  0x28   : > { %p629_p13 = por %p628_p7, %p627_p3 }
  0x29   : > { %p623_p8 = pneg %p622_p9 }
  0x2b   : > { %p630_p4 = pnand %p629_p13, %p623_p8 }
  0x2d   : > { %633 = shalt.err (!%p630_p4)
}
  0x2e   : > { %534 = dma.hbm_to_vmem [thread:$0]  (!%p886_p2), %s1175_s1, 16, %s149_s28, [#allocation6]  }
  0x2f   : > { %s634_s8 = scalar_lea.hbm %s1176_s2, 16 }
  0x30   : > { %p635_p9 = scmp.ne.s32.totalorder %s1176_s2, %s634_s8  ;;  %p641_p8 = scmp.lt.u32.totalorder %s634_s8, %s1176_s2 }
  0x32   : > { %p637_p3 = pnand %p635_p9, %p608_p6 }
  0x34   : > { %p638_p7 = pneg %p637_p3 }
  0x36   : > { %p643_p12 = pnand %p641_p8, %p638_p7 }
  0x38   : > { %646 = shalt.err (!%p643_p12)
}
  0x39   : > { %s647_s28 = scalar_lea.vmem %s890_s4, 16  ;;  %s654_s19 = scalar_lea.vmem %s890_s4, 32 }
  0x3a   : > { %p648_p13 = scmp.ne.s32.totalorder %s890_s4, %s647_s28  ;;  %p655_p10 = scmp.lt.s32.totalorder %s890_s4, %s890_s4 }
  0x3b   : > { %p656_p11 = scmp.lt.s32.totalorder %s654_s19, %s647_s28 }
  0x3c   : > { %p650_p4 = pnand %p648_p13, %p608_p6 }
  0x3d   : > { %p657_p1 = por %p656_p11, %p655_p10 }
  0x3e   : > { %p651_p5 = pneg %p650_p4 }
  0x40   : > { %p658_p0 = pnand %p657_p1, %p651_p5 }
  0x42   : > { %661 = shalt.err (!%p658_p0)
}
  0x43   : > { %537 = dma.hbm_to_vmem [thread:$0]  (!%p886_p2), %s1176_s2, 16, %s890_s4, [#allocation6]  }
  0x44   : > { %s32_s30 = sadd.s32 1, %s774_s16  ;;  %s170_s6 = sand.u32 1, %s766_s14  }
  0x45   : > { %p34_p6 = scmp.ge.s32.totalorder %s32_s30, 2  ;;  %s515_s7 = smul.u32 208, %s170_s6 }
  0x46   : > { %s516_s5 = smul.u32 3328, %s774_s16  ;;  %s959_s19 = scalar_lea.sflag [#allocation3], %s170_s6 }
  0x47   : > { %s1205_s30 = smov (%p34_p6, %s32_s30), 0  ;;  %s174_s9 = scalar_lea.vmem [#allocation2], %s515_s7 }
  0x48   : > { %s36_s8 = ssub.s32 %s774_s16, %s1205_s30  ;;  %s183_s10 = sshll.u32 %s174_s9, 4  ;;  %s952_s10 = int_to_ptr.vmem [resolvable:$true] %s183_s10 }
  0x49   : > { %p39_p9 = scmp.eq.s32.totalorder %s36_s8, 0  ;;  %s950_s28 = scalar_lea.hbm %s1174_s0, %s516_s5 }
  0x4a   : > { %s662_s22 = scalar_lea.hbm %s950_s28, 3328  ;;  %p1192_p3 = scmp.ne.s32.totalorder %s1190_s29, 0 }
  0x4b   : > { %s957_s4 = scalar_select %p39_p9, %s766_s14, %s41_s20  }
  0x4c   : > { %p663_p2 = scmp.ne.s32.totalorder %s950_s28, %s662_s22  ;;  %p664_p7 = pneg %p1192_p3 }
  0x4d   : > { %s667_s5 = scalar_lea.hbm %s1174_s0, 6656  ;;  %p668_p13 = scmp.lt.u32.totalorder %s950_s28, %s1174_s0 }
  0x4e   : > { %p665_p8 = pnand %p664_p7, %p663_p2  ;;  %p669_p4 = scmp.lt.u32.totalorder %s667_s5, %s662_s22 }
  0x4f   : > { %p671_p10 = scmp.lt.u32.totalorder %s662_s22, %s950_s28 }
  0x50   : > { %p666_p12 = pneg %p665_p8  ;;  %p670_p5 = por %p669_p4, %p668_p13 }
  0x52   : > { %p672_p11 = por %p671_p10, %p670_p5 }
  0x54   : > { %p673_p1 = pnand %p672_p11, %p666_p12 }
  0x56   : > { %676 = shalt.err (!%p673_p1)
}
  0x57   : > { %s677_s20 = scalar_lea.vmem %s952_s10, 3328  ;;  %s782_s6 = smov [#allocation2]  }
  0x58   : > { %p678_p0 = scmp.ne.s32.totalorder %s952_s10, %s677_s20  ;;  %s682_s11 = sshll.u32 %s782_s6, 4  ;;  %s683_s11 = int_to_ptr.vmem [resolvable:$false] %s682_s11 }
  0x59   : > { %s684_s18 = scalar_lea.vmem %s683_s11, 6656  ;;  %p685_p2 = scmp.lt.s32.totalorder %s952_s10, %s683_s11 }
  0x5a   : > { %p680_p6 = pnand %p678_p0, %p664_p7  ;;  %p686_p8 = scmp.lt.s32.totalorder %s684_s18, %s677_s20 }
  0x5c   : > { %p681_p9 = pneg %p680_p6  ;;  %p687_p13 = por %p686_p8, %p685_p2 }
  0x5e   : > { %p688_p4 = pnand %p687_p13, %p681_p9 }
  0x60   : > { %691 = shalt.err (!%p688_p4)
}
  0x61   : > { %s783_s22 = smov 128   ;;  %s784_s27 = smov 8  }
  0x62   : > { %541 = dma.hbm_to_vmem [thread:$0]  (!%p1192_p3), %s950_s28, 3328, %s952_s10, %s959_s19, %s783_s22, %s783_s22, %s784_s27  }
  0x63   : > { %p1193_p7 = scmp.ne.s32.totalorder %s1189_s26, 0 }
  0x64   : > { %s990_s7 = sand.u32 (!%p1193_p7), 1, %s762_s13   ;;  %p1194_p12 = scmp.ne.s32.totalorder (!%p1193_p7), %s1186_s23, 0 }
  0x65   : > { %195 = sbr.rel (%p1193_p7) target bundleno = 154 (0x9a), region = 32  ;;  %s198_s8 = scalar_lea.sflag (!%p1193_p7), [#allocation3], %s990_s7 }
  0x66   : > { %s517_s5 = smul.u32 (!%p1193_p7), 208, %s990_s7 }
  0x68   : > { %s996_s9 = scalar_lea.vmem (!%p1193_p7), [#allocation2], %s517_s5 }
  0x6c   : > { %745 = dma.done.wait (%p1194_p12), %s198_s8, 3328  }
  0x6d   : > { %747 = vsyncadd (%p1194_p12), %s198_s8, 4294963968  ;;  %p1195_p3 = scmp.ne.s32.totalorder %s1184_s21, 0 }
  0x6f   : > { %749 = dma.done.wait (%p1195_p3), [#allocation6], 32  }
  0x70   : > { %751 = vsyncadd (%p1195_p3), [#allocation6], 4294967264  ;;  %v234_v0 = vld [vmem:[%s996_s9] sm:$0xff]  ;;  %v235_v4 = vld [vmem:[%s996_s9 + $0x8] sm:$0xff]  ;;  %s1043_s21 = scalar_lea.vmem [#allocation8], %s517_s5  ;;  %s518_s23 = smul.u32 3328, %s770_s15 }
  0x71   : > { %v1007_v1 = vld [vmem:[#allocation5] ss:$0 sm:$0xff]  ;;  %v1009_v2 = vld [vmem:[#allocation7] ss:$0 sm:$0xff]  ;;  %v237_v6 = vld [vmem:[%s996_s9 + $0x18] sm:$0xff]  ;;  %s394_s26 = sshll.u32 %s1043_s21, 4  ;;  %s1118_s26 = int_to_ptr.vmem [resolvable:$true] %s394_s26 }
  0x72   : > { %v267_v3 = vmul.f32 %v1007_v1, %v234_v0  ;;  %v236_v5 = vld [vmem:[%s996_s9 + $0x10] sm:$0xff]  ;;  %v268_v7 = vmul.f32 %v1007_v1, %v235_v4  ;;  %v270_v9 = vmul.f32 %v1007_v1, %v237_v6  ;;  %v238_v10 = vld [vmem:[%s996_s9 + $0x20] sm:$0xff]  ;;  %v239_v11 = vld [vmem:[%s996_s9 + $0x28] sm:$0xff]  ;;  %s1123_s15 = scalar_lea.hbm %s1177_s3, %s518_s23  ;;  %s379_s28 = scalar_lea.sflag [#allocation4], %s990_s7 }
  0x73   : > { %v269_v8 = vmul.f32 %v1007_v1, %v236_v5  ;;  %v240_v12 = vld [vmem:[%s996_s9 + $0x30] sm:$0xff]  ;;  %v271_v14 = vmul.f32 %v1007_v1, %v238_v10  ;;  %v272_v15 = vmul.f32 %v1007_v1, %v239_v11  ;;  %v241_v17 = vld [vmem:[%s996_s9 + $0x38] sm:$0xff]  ;;  %v242_v22 = vld [vmem:[%s996_s9 + $0x40] sm:$0xff]  ;;  %s692_s19 = scalar_lea.vmem %s1118_s26, 3328  ;;  %p1196_p10 = scmp.ne.s32.totalorder %s1187_s24, 0 }
  0x74   : > { %v300_v13 = vadd.f32 %v1009_v2, %v267_v3  ;;  %v273_v16 = vmul.f32 %v1007_v1, %v240_v12  ;;  %v301_v18 = vadd.f32 %v1009_v2, %v268_v7  ;;  %v303_v20 = vadd.f32 %v1009_v2, %v270_v9  ;;  %v243_v27 = vld [vmem:[%s996_s9 + $0x48] sm:$0xff]  ;;  %v244_v28 = vld [vmem:[%s996_s9 + $0x50] sm:$0xff]  ;;  %v245_v29 = vld [vmem:[%s996_s9 + $0x58] sm:$0xff]  ;;  %p693_p5 = scmp.ne.s32.totalorder %s1118_s26, %s692_s19  ;;  %s785_s20 = smov [#allocation8]  }
  0x75   : > { %v302_v19 = vadd.f32 %v1009_v2, %v269_v8  ;;  %v274_v21 = vmul.f32 %v1007_v1, %v241_v17  ;;  %v304_v24 = vadd.f32 %v1009_v2, %v271_v14  ;;  %v305_v25 = vadd.f32 %v1009_v2, %v272_v15  ;;  %v246_v34 = vld [vmem:[%s996_s9 + $0x60] sm:$0xff]  ;;  %v247_v35 = vld [vmem:[%s996_s9 + $0x68] sm:$0xff]  ;;  %v248_v36 = vld [vmem:[%s996_s9 + $0x70] sm:$0xff]  ;;  %s696_s6 = sshll.u32 %s785_s20, 4  ;;  %s697_s6 = int_to_ptr.vmem [resolvable:$false] %s696_s6 }
  0x76   : > { %v326_v23 = vmax.f32 %v300_v13, 0.0  ;;  %v306_v26 = vadd.f32 %v1009_v2, %v273_v16  ;;  %v327_v30 = vmax.f32 %v301_v18, 0.0  ;;  %v329_v32 = vmax.f32 %v303_v20, 0.0  ;;  %v249_v41 = vld [vmem:[%s996_s9 + $0x78] sm:$0xff]  ;;  %v250_v54 = vld [vmem:[%s996_s9 + $0x80] sm:$0xff]  ;;  %v251_v59 = vld [vmem:[%s996_s9 + $0x88] sm:$0xff]  ;;  %p694_p11 = pnand %p693_p5, %p1196_p10  ;;  %p699_p0 = scmp.lt.s32.totalorder %s1118_s26, %s697_s6 }
  0x77   : > { %v328_v31 = vmax.f32 %v302_v19, 0.0  ;;  %v307_v33 = vadd.f32 %v1009_v2, %v274_v21  ;;  %v330_v37 = vmax.f32 %v304_v24, 0.0  ;;  %v331_v38 = vmax.f32 %v305_v25, 0.0  ;;  %v252_v60 = vld [vmem:[%s996_s9 + $0x90] sm:$0xff]  ;;  %v253_v61 = vld [vmem:[%s996_s9 + $0x98] sm:$0xff]  ;;  %v254_v4 = vld [vmem:[%s996_s9 + $0xa0] sm:$0xff] }
  0x78   : > { %352 = vst [vmem:[%s1043_s21] sm:$0xff] %v326_v23  ;;  %v332_v39 = vmax.f32 %v306_v26, 0.0  ;;  %v275_v40 = vmul.f32 %v1007_v1, %v242_v22  ;;  %353 = vst [vmem:[%s1043_s21 + $0x8] sm:$0xff] %v327_v30  ;;  %v276_v43 = vmul.f32 %v1007_v1, %v243_v27  ;;  %v277_v44 = vmul.f32 %v1007_v1, %v244_v28  ;;  %v255_v5 = vld [vmem:[%s996_s9 + $0xa8] sm:$0xff]  ;;  %v256_v6 = vld [vmem:[%s996_s9 + $0xb0] sm:$0xff]  ;;  %p695_p1 = pneg %p694_p11  ;;  %s698_s11 = scalar_lea.vmem %s697_s6, 6656 }
  0x79   : > { %354 = vst [vmem:[%s1043_s21 + $0x10] sm:$0xff] %v328_v31  ;;  %355 = vst [vmem:[%s1043_s21 + $0x18] sm:$0xff] %v329_v32  ;;  %v333_v42 = vmax.f32 %v307_v33, 0.0  ;;  %v278_v45 = vmul.f32 %v1007_v1, %v245_v29  ;;  %v279_v47 = vmul.f32 %v1007_v1, %v246_v34  ;;  %v280_v48 = vmul.f32 %v1007_v1, %v247_v35  ;;  %v257_v11 = vld [vmem:[%s996_s9 + $0xb8] sm:$0xff]  ;;  %v258_v24 = vld [vmem:[%s996_s9 + $0xc0] sm:$0xff]  ;;  %p700_p6 = scmp.lt.s32.totalorder %s698_s11, %s692_s19 }
  0x7a   : > { %356 = vst [vmem:[%s1043_s21 + $0x20] sm:$0xff] %v330_v37  ;;  %357 = vst [vmem:[%s1043_s21 + $0x28] sm:$0xff] %v331_v38  ;;  %v308_v46 = vadd.f32 %v1009_v2, %v275_v40  ;;  %v281_v49 = vmul.f32 %v1007_v1, %v248_v36  ;;  %v309_v50 = vadd.f32 %v1009_v2, %v276_v43  ;;  %v259_v29 = vld [vmem:[%s996_s9 + $0xc8] sm:$0xff] }
  0x7b   : > { %358 = vst [vmem:[%s1043_s21 + $0x30] sm:$0xff] %v332_v39  ;;  %359 = vst [vmem:[%s1043_s21 + $0x38] sm:$0xff] %v333_v42  ;;  %v310_v51 = vadd.f32 %v1009_v2, %v277_v44  ;;  %v311_v52 = vadd.f32 %v1009_v2, %v278_v45  ;;  %v282_v53 = vmul.f32 %v1007_v1, %v249_v41  ;;  %p701_p9 = por %p700_p6, %p699_p0 }
  0x7c   : > { %v334_v55 = vmax.f32 %v308_v46, 0.0  ;;  %v312_v56 = vadd.f32 %v1009_v2, %v279_v47  ;;  %v313_v57 = vadd.f32 %v1009_v2, %v280_v48  ;;  %v314_v58 = vadd.f32 %v1009_v2, %v281_v49 }
  0x7d   : > { %v335_v62 = vmax.f32 %v309_v50, 0.0  ;;  %v336_v63 = vmax.f32 %v310_v51, 0.0  ;;  %v337_v0 = vmax.f32 %v311_v52, 0.0  ;;  %v315_v3 = vadd.f32 %v1009_v2, %v282_v53  ;;  %p702_p2 = pnand %p701_p9, %p695_p1 }
  0x7e   : > { %360 = vst [vmem:[%s1043_s21 + $0x40] sm:$0xff] %v334_v55  ;;  %v338_v7 = vmax.f32 %v312_v56, 0.0  ;;  %v339_v8 = vmax.f32 %v313_v57, 0.0  ;;  %v340_v9 = vmax.f32 %v314_v58, 0.0  ;;  %v283_v10 = vmul.f32 %v1007_v1, %v250_v54 }
  0x7f   : > { %361 = vst [vmem:[%s1043_s21 + $0x48] sm:$0xff] %v335_v62  ;;  %362 = vst [vmem:[%s1043_s21 + $0x50] sm:$0xff] %v336_v63  ;;  %v341_v12 = vmax.f32 %v315_v3, 0.0  ;;  %v284_v13 = vmul.f32 %v1007_v1, %v251_v59  ;;  %v285_v14 = vmul.f32 %v1007_v1, %v252_v60  ;;  %v286_v15 = vmul.f32 %v1007_v1, %v253_v61 }
  0x80   : > { %363 = vst [vmem:[%s1043_s21 + $0x58] sm:$0xff] %v337_v0  ;;  %364 = vst [vmem:[%s1043_s21 + $0x60] sm:$0xff] %v338_v7  ;;  %v316_v16 = vadd.f32 %v1009_v2, %v283_v10  ;;  %v287_v17 = vmul.f32 %v1007_v1, %v254_v4  ;;  %v288_v18 = vmul.f32 %v1007_v1, %v255_v5 }
  0x81   : > { %365 = vst [vmem:[%s1043_s21 + $0x68] sm:$0xff] %v339_v8  ;;  %366 = vst [vmem:[%s1043_s21 + $0x70] sm:$0xff] %v340_v9  ;;  %v289_v19 = vmul.f32 %v1007_v1, %v256_v6  ;;  %v317_v20 = vadd.f32 %v1009_v2, %v284_v13  ;;  %v318_v21 = vadd.f32 %v1009_v2, %v285_v14 }
  0x82   : > { %367 = vst [vmem:[%s1043_s21 + $0x78] sm:$0xff] %v341_v12  ;;  %v319_v22 = vadd.f32 %v1009_v2, %v286_v15  ;;  %v290_v23 = vmul.f32 %v1007_v1, %v257_v11  ;;  %v342_v25 = vmax.f32 %v316_v16, 0.0  ;;  %v320_v26 = vadd.f32 %v1009_v2, %v287_v17 }
  0x83   : > { %v321_v27 = vadd.f32 %v1009_v2, %v288_v18  ;;  %v322_v28 = vadd.f32 %v1009_v2, %v289_v19  ;;  %v343_v30 = vmax.f32 %v317_v20, 0.0  ;;  %v344_v31 = vmax.f32 %v318_v21, 0.0 }
  0x84   : > { %v345_v32 = vmax.f32 %v319_v22, 0.0  ;;  %v323_v33 = vadd.f32 %v1009_v2, %v290_v23  ;;  %368 = vst [vmem:[%s1043_s21 + $0x80] sm:$0xff] %v342_v25  ;;  %v346_v34 = vmax.f32 %v320_v26, 0.0  ;;  %v291_v37 = vmul.f32 %v1007_v1, %v258_v24 }
  0x85   : > { %v347_v35 = vmax.f32 %v321_v27, 0.0  ;;  %v348_v36 = vmax.f32 %v322_v28, 0.0  ;;  %369 = vst [vmem:[%s1043_s21 + $0x88] sm:$0xff] %v343_v30  ;;  %370 = vst [vmem:[%s1043_s21 + $0x90] sm:$0xff] %v344_v31  ;;  %v292_v39 = vmul.f32 %v1007_v1, %v259_v29 }
  0x86   : > { %371 = vst [vmem:[%s1043_s21 + $0x98] sm:$0xff] %v345_v32  ;;  %v349_v38 = vmax.f32 %v323_v33, 0.0  ;;  %372 = vst [vmem:[%s1043_s21 + $0xa0] sm:$0xff] %v346_v34  ;;  %v324_v40 = vadd.f32 %v1009_v2, %v291_v37 }
  0x87   : > { %373 = vst [vmem:[%s1043_s21 + $0xa8] sm:$0xff] %v347_v35  ;;  %374 = vst [vmem:[%s1043_s21 + $0xb0] sm:$0xff] %v348_v36  ;;  %v325_v41 = vadd.f32 %v1009_v2, %v292_v39 }
  0x88   : > { %375 = vst [vmem:[%s1043_s21 + $0xb8] sm:$0xff] %v349_v38  ;;  %v350_v42 = vmax.f32 %v324_v40, 0.0 }
  0x89   : > { %v351_v43 = vmax.f32 %v325_v41, 0.0 }
  0x8a   : > { %376 = vst [vmem:[%s1043_s21 + $0xc0] sm:$0xff] %v350_v42 }
  0x8b   : > { %377 = vst [vmem:[%s1043_s21 + $0xc8] sm:$0xff] %v351_v43 }
  0x8c   : > { %705 = shalt.err (!%p702_p2)
}
  0x8d   : > { %s706_s18 = scalar_lea.hbm %s1123_s15, 3328  ;;  %s710_s5 = scalar_lea.hbm %s1177_s3, 6656 }
  0x8e   : > { %p707_p8 = scmp.ne.s32.totalorder %s1123_s15, %s706_s18  ;;  %p711_p7 = scmp.lt.u32.totalorder %s1123_s15, %s1177_s3 }
  0x8f   : > { %p712_p12 = scmp.lt.u32.totalorder %s710_s5, %s706_s18  ;;  %p714_p5 = scmp.lt.u32.totalorder %s706_s18, %s1123_s15 }
  0x90   : > { %p708_p13 = pnand %p707_p8, %p1196_p10 }
  0x91   : > { %p713_p3 = por %p712_p12, %p711_p7 }
  0x92   : > { %p709_p4 = pneg %p708_p13 }
  0x93   : > { %p715_p11 = por %p714_p5, %p713_p3 }
  0x95   : > { %p716_p1 = pnand %p715_p11, %p709_p4 }
  0x97   : > { %719 = shalt.err (!%p716_p1)
}
  0x98   : > { %s786_s21 = smov 128   ;;  %s787_s23 = smov 8  }
  0x99   : > { %529 = dma.vmem_to_hbm [thread:$0]  (%p1196_p10), %s1118_s26, 3328, %s1123_s15, %s379_s28, %s786_s21, %s786_s21, %s787_s23  }
  0x9a PF: > { %s409_s29 = sand.u32 1, %s758_s12   ;;  %p1197_p0 = scmp.ne.s32.totalorder %s1188_s25, 0 }
  0x9b   : > { %p1198_p6 = scmp.ge.s32.totalorder %s778_s17, 2  ;;  %s410_s10 = scalar_lea.sflag [#allocation4], %s409_s29 }
  0x9d   : > { %p543_p9 = pnand %p1198_p6, %p1197_p0 }
  0x9f   : > { %753 = dma.done.wait (!%p543_p9), %s410_s10, 3328  }
  0xa0   : > { %755 = vsyncadd (!%p543_p9), %s410_s10, 4294963968  ;;  %s20_s17 = sadd.s32 1, %s778_s17   ;;  %s1199_s12 = smov %s762_s13 }
  0xa1   : > { %p17_p2 = scmp.ge.s32.totalorder %s20_s17, 4   ;;  %s1200_s13 = smov %s766_s14 }
  0xa2   : > { %s1201_s14 = smov %s957_s4  ;;  %s1202_s15 = smov %s774_s16 }
  0xa3   : > { %s1203_s16 = smov %s1205_s30  ;;  %19 = sbr.rel (!%p17_p2) target bundleno = 7 (0x7), region = 85 }
  0xaa   :  { %415 = vsyncpa [#allocation3], 1 }
  0xab   :  { %417 = vsyncpa [#allocation3 + $0x1], 1 }
  0xac   :  { %418 = vsyncpa [#allocation6], 1 }
  0xad   :  { %419 = vsyncpa [#allocation4], 1 }
  0xae   :  { %421 = vsyncpa [#allocation4 + $0x1], 1 }

// kernel: decoder_block_forward.4
= control target key start
LH: loop header
LB: loop body
LE: loop exit
PB: predicated region body
PF: predicated region fallthrough
CT: control target
= control target key end

     0   :  { %s5833_s0 = inlined_call_operand.hbm [shape: bf16[2,296,128], index: 0, kind: input, shape index: {}]   ;;  %s5834_s1 = inlined_call_operand.hbm [shape: bf16[9,128,128], index: 1, kind: input, shape index: {}]   ;;  %s5835_s2 = inlined_call_operand.hbm [shape: f32[256,1], index: 2, kind: input, shape index: {}]   ;;  %s5836_s3 = inlined_call_operand.hbm [shape: f32[2,256,128], index: 3, kind: output, shape index: {0}]   ;;  %s5837_s4 = inlined_call_operand.hbm [shape: f32[1,128], index: 4, kind: output, shape index: {1}]   ;;  %s5838_s5 = inlined_call_operand.hbm [shape: f32[1,128], index: 5, kind: output, shape index: {2}]  }
   0x1   :  { %5847 = sst [smem:[#allocation16_spill]] %s5834_s1 }
   0x2   :  { %11 = vsyncpa [#allocation3], 0 }
   0x3   :  { %13 = vsyncpa [#allocation3 + $0x1], 0 }
   0x4   :  { %14 = vsyncpa [#allocation6], 0 }
   0x5   :  { %15 = vsyncpa [#allocation4], 0 }
   0x6   :  { %17 = vsyncpa [#allocation4 + $0x1], 0 }
   0x7   :  { %18 = vsyncpa [#allocation10], 0  ;;  %s5019_s18 = smov 0   ;;  %s5021_s19 = smov 0  }
   0x8   :  { %s5023_s20 = smov 0   ;;  %s5025_s21 = smov 0  }
   0x9   :  { %s5027_s22 = smov 0   ;;  %s5029_s23 = smov 0  }
   0xa LB: > { %s3488_s24 = sadd.s32 4294967295, %s4973_s23   ;;  %s3489_s25 = sadd.s32 4294967294, %s4973_s23   ;;  %s4973_s23 = sphi %s5029_s23, %s24_s23   ;;  %s4969_s22 = sphi %s5027_s22, %s5869_s22   ;;  %s4965_s21 = sphi %s5025_s21, %s5868_s21   ;;  %s4961_s20 = sphi %s5023_s20, %s5867_s20   ;;  %s4957_s19 = sphi %s5021_s19, %s5866_s19   ;;  %s4953_s18 = sphi %s5019_s18, %s5865_s18  }
   0xb   : > { %p56_p0 = scmp.ne.s32.totalorder %s4957_s19, %s4953_s18  ;;  %p5053_p1 = scmp.eq.s32.totalorder %s3488_s24, 0 }
   0xc   : > { %p5057_p2 = scmp.eq.s32.totalorder %s3488_s24, 1  ;;  %p135_p3 = scmp.eq.s32.totalorder %s3489_s25, 1 }
   0xd   : > { %s5848_s26 = scalar_select %p5053_p1, 1, 0 }
   0xe   : > { %s5849_s27 = scalar_select %p5057_p2, 1, 0 }
   0xf   : > { %p5063_p4 = por %p5053_p1, %p56_p0  ;;  %p3490_p5 = scmp.ge.s32.totalorder %s4973_s23, 1 }
  0x10   : > { %p5068_p6 = por %p135_p3, %p56_p0  ;;  %p184_p7 = scmp.lt.s32.totalorder %s4973_s23, 3 }
  0x11   : > { %s5850_s28 = scalar_select %p5063_p4, 1, 0 }
  0x12   : > { %s5851_s29 = scalar_select %p5068_p6, 1, 0 }
  0x13   : > { %p5073_p8 = pnand %p3490_p5, %p184_p7  ;;  %s4975_s6 = smov [#allocation5]  }
  0x14   : > { %s196_s7 = sshll.u32 %s4975_s6, 4  ;;  %s4976_s9 = smov [#allocation7]   ;;  %s5077_s7 = int_to_ptr.vmem [resolvable:$true] %s196_s7 }
  0x15   : > { %p4547_p9 = pneg %p5073_p8  ;;  %s212_s10 = sshll.u32 %s4976_s9, 4  ;;  %s5088_s10 = int_to_ptr.vmem [resolvable:$true] %s212_s10 }
  0x16   : > { %s5854_s1 = sld [smem:[#allocation16_spill]] }
  0x17   : > { %p5084_p11 = pnand %p4547_p9, %p5053_p1 }
  0x19   : > { %p4747_p13 = pneg %p5084_p11 }
  0x1c   : > { %s4745_s13 = scalar_lea.hbm %s5854_s1, 9216 }
  0x1d   : > { %p4746_p12 = scmp.ne.s32.totalorder %s5854_s1, %s4745_s13  ;;  %p4752_p5 = scmp.lt.u32.totalorder %s4745_s13, %s5854_s1 }
  0x1f   : > { %p4748_p0 = pnand %p4747_p13, %p4746_p12 }
  0x21   : > { %p4749_p3 = pneg %p4748_p0 }
  0x23   : > { %p4754_p7 = pnand %p4752_p5, %p4749_p3 }
  0x25   : > { %4757 = shalt.err (!%p4754_p7)
}
  0x26   : > { %s4758_s24 = scalar_lea.vmem %s5077_s7, 9216  ;;  %p4766_p1 = scmp.lt.s32.totalorder %s5077_s7, %s5077_s7 }
  0x27   : > { %p4759_p9 = scmp.ne.s32.totalorder %s5077_s7, %s4758_s24  ;;  %p4767_p12 = scmp.lt.s32.totalorder %s4758_s24, %s4758_s24 }
  0x29   : > { %p4761_p10 = pnand %p4759_p9, %p4747_p13  ;;  %p4768_p0 = por %p4767_p12, %p4766_p1 }
  0x2b   : > { %p4762_p6 = pneg %p4761_p10 }
  0x2d   : > { %p4769_p4 = pnand %p4768_p0, %p4762_p6 }
  0x2f   : > { %4772 = shalt.err (!%p4769_p4)
}
  0x30   : > { %s5842_s25 = smov 64   ;;  %s5843_s6 = smov 4  }
  0x31   : > { %4550 = dma.hbm_to_vmem [thread:$0]  (!%p5084_p11), %s5854_s1, 9216, %s5077_s7, [#allocation6], %s5842_s25, %s5842_s25, %s5843_s6  }
  0x32   : > { %s4773_s14 = scalar_lea.hbm %s5835_s2, 4096 }
  0x33   : > { %p4774_p1 = scmp.ne.s32.totalorder %s5835_s2, %s4773_s14  ;;  %p4780_p10 = scmp.lt.u32.totalorder %s4773_s14, %s5835_s2 }
  0x35   : > { %p4776_p4 = pnand %p4774_p1, %p4747_p13 }
  0x37   : > { %p4777_p6 = pneg %p4776_p4 }
  0x39   : > { %p4782_p3 = pnand %p4780_p10, %p4777_p6 }
  0x3b   : > { %4785 = shalt.err (!%p4782_p3)
}
  0x3c   : > { %s4786_s7 = scalar_lea.vmem %s5088_s10, 4096  ;;  %p4794_p12 = scmp.lt.s32.totalorder %s5088_s10, %s5088_s10 }
  0x3d   : > { %p4787_p5 = scmp.ne.s32.totalorder %s5088_s10, %s4786_s7  ;;  %p4795_p0 = scmp.lt.s32.totalorder %s4786_s7, %s4786_s7 }
  0x3f   : > { %p4789_p7 = pnand %p4787_p5, %p4747_p13  ;;  %p4796_p1 = por %p4795_p0, %p4794_p12 }
  0x41   : > { %p4790_p9 = pneg %p4789_p7 }
  0x43   : > { %p4797_p4 = pnand %p4796_p1, %p4790_p9 }
  0x45   : > { %4800 = shalt.err (!%p4797_p4)
}
  0x46   : > { %s4979_s9 = smov 128   ;;  %s4980_s11 = smov 8  }
  0x47   : > { %4553 = dma.hbm_to_vmem [thread:$0]  (!%p5084_p11), %s5835_s2, 4096, %s5088_s10, [#allocation6], %s4979_s9, %s4979_s9, %s4980_s11  }
  0x48   : > { %s36_s14 = sadd.s32 1, %s4969_s22  ;;  %s43_s15 = sadd.s32 1, %s4961_s20 }
  0x49   : > { %p38_p13 = scmp.ge.s32.totalorder %s36_s14, 2  ;;  %p50_p6 = scmp.ne.s32.totalorder %s4961_s20, %s4957_s19 }
  0x4a   : > { %p51_p10 = scmp.eq.s32.totalorder %s4973_s23, 0  ;;  %p4564_p3 = scmp.lt.s32.totalorder %s4973_s23, 2 }
  0x4b   : > { %s5871_s14 = smov (%p38_p13, %s36_s14), 0  ;;  %p5155_p7 = por %p5057_p2, %p50_p6 }
  0x4c   : > { %p52_p5 = por %p51_p10, %p50_p6  ;;  %s40_s8 = ssub.s32 %s4969_s22, %s5871_s14 }
  0x4d   : > { %s5855_s16 = scalar_select %p5155_p7, 1, 0 }
  0x4e   : > { %s226_s17 = sand.u32 1, %s4961_s20   ;;  %p41_p9 = scmp.eq.s32.totalorder %s40_s8, 0 }
  0x4f   : > { %s4524_s10 = smul.u32 148, %s226_s17  ;;  %p5162_p11 = pnand %p4564_p3, %p52_p5 }
  0x50   : > { %s5167_s7 = scalar_select %p41_p9, %s4961_s20, %s43_s15  }
  0x51   : > { %s4525_s9 = smul.u32 2368, %s4969_s22  ;;  %s230_s11 = scalar_lea.vmem [#allocation2], %s4524_s10 }
  0x52   : > { %s237_s12 = sshll.u32 %s230_s11, 4  ;;  %s5177_s8 = scalar_lea.sflag [#allocation3], %s226_s17  ;;  %s5175_s12 = int_to_ptr.vmem [resolvable:$true] %s237_s12 }
  0x53   : > { %s5173_s6 = scalar_lea.hbm %s5833_s0, %s4525_s9  ;;  %p4803_p0 = pneg %p5162_p11 }
  0x54   : > { %s4801_s1 = scalar_lea.hbm %s5173_s6, 2368  ;;  %s4806_s10 = scalar_lea.hbm %s5833_s0, 4736 }
  0x55   : > { %p4802_p12 = scmp.ne.s32.totalorder %s5173_s6, %s4801_s1  ;;  %p4807_p13 = scmp.lt.u32.totalorder %s5173_s6, %s5833_s0 }
  0x56   : > { %p4808_p6 = scmp.lt.u32.totalorder %s4806_s10, %s4801_s1  ;;  %p4810_p3 = scmp.lt.u32.totalorder %s4801_s1, %s5173_s6 }
  0x57   : > { %p4804_p1 = pnand %p4803_p0, %p4802_p12 }
  0x58   : > { %p4809_p10 = por %p4808_p6, %p4807_p13 }
  0x59   : > { %p4805_p4 = pneg %p4804_p1 }
  0x5a   : > { %p4811_p5 = por %p4810_p3, %p4809_p10 }
  0x5c   : > { %p4812_p9 = pnand %p4811_p5, %p4805_p4 }
  0x5e   : > { %4815 = shalt.err (!%p4812_p9)
}
  0x5f   : > { %s4816_s17 = scalar_lea.vmem %s5175_s12, 2368  ;;  %s4981_s13 = smov [#allocation2]  }
  0x60   : > { %p4817_p12 = scmp.ne.s32.totalorder %s5175_s12, %s4816_s17  ;;  %s4821_s15 = sshll.u32 %s4981_s13, 4  ;;  %s4822_s15 = int_to_ptr.vmem [resolvable:$false] %s4821_s15 }
  0x61   : > { %s4823_s25 = scalar_lea.vmem %s4822_s15, 4736  ;;  %p4824_p7 = scmp.lt.s32.totalorder %s5175_s12, %s4822_s15 }
  0x62   : > { %p4819_p1 = pnand %p4817_p12, %p4803_p0  ;;  %p4825_p13 = scmp.lt.s32.totalorder %s4823_s25, %s4816_s17 }
  0x64   : > { %p4820_p2 = pneg %p4819_p1  ;;  %p4826_p6 = por %p4825_p13, %p4824_p7 }
  0x66   : > { %p4827_p10 = pnand %p4826_p6, %p4820_p2 }
  0x68   : > { %4830 = shalt.err (!%p4827_p10)
}
  0x69   : > { %s5857_s1 = smov 4   ;;  %s5858_s10 = smov 64  }
  0x6a   : > { %4557 = dma.hbm_to_vmem [thread:$0]  (!%p5162_p11), %s5173_s6, 2368, %s5175_s12, %s5177_s8, %s5858_s10, %s5858_s10, %s5857_s1  }
  0x6b   : > { %249 = sbr.rel (%p5073_p8) target bundleno = 727 (0x2d7), region = 32  ;;  %s5211_s9 = sand.u32 (!%p5073_p8), 1, %s4957_s19  }
  0x6c   : > { %s4526_s11 = smul.u32 (!%p5073_p8), 148, %s5211_s9  ;;  %s252_s17 = scalar_lea.sflag (!%p5073_p8), [#allocation3], %s5211_s9 }
  0x6d   : > { %p5859_p2 = scmp.ne.s32.totalorder (!%p5073_p8), %s5850_s28, 0 }
  0x6e   : > { %s5215_s13 = scalar_lea.vmem (!%p5073_p8), [#allocation2], %s4526_s11 }
  0x72   : > { %4936 = dma.done.wait (%p5859_p2), %s252_s17, 2368  }
  0x73   : > { %4938 = vsyncadd (%p5859_p2), %s252_s17, 4294964928  ;;  %p5860_p7 = scmp.ne.s32.totalorder %s5848_s26, 0 }
  0x75   : > { %4940 = dma.done.wait (%p5860_p7), [#allocation6], 13312  }
  0x76   : > { %4942 = vsyncadd (%p5860_p7), [#allocation6], 4294953984  ;;  %s3498_s30 = sshll.u32 %s5211_s9, 8  ;;  %p293_p8 = scmp.eq.s32.totalorder %s4965_s21, 0 }
  0x77   : > { %s5227_s6 = scalar_lea.vmem [#allocation8], %s3498_s30  ;;  %v4982_v0 = vmov (%p293_p8), 0.0  }
  0x78   : > { %298 = sbr.rel (!%p293_p8) target bundleno = 127 (0x7f), region = 48  ;;  %299 = vst [vmem:[#allocation9] sm:$0x1] (%p293_p8), %v4982_v0  ;;  %300 = vst [vmem:[#allocation11] sm:$0x1] (%p293_p8), %v4982_v0 }
  0x7f PF: > { %v4634_v1 = vld [vmem:[#allocation5 + $0x40] sm:$0xff]   ;;  %v4636_v3 = vld [vmem:[#allocation5 + $0x48] sm:$0xff]   ;;  %v4638_v5 = vld [vmem:[#allocation5 + $0x50] sm:$0xff]   ;;  %vm459_vm0 = vsmask.f32 7424  ;;  %vm1059_vm1 = vcmask 1046528  }
  0x80   : > { %v4635_v2 = vld [vmem:[#allocation5 + $0x100] sm:$0xff]   ;;  %3820 = vmatprep.subr.bf16.mxu1 %v4634_v1  ;;  %v4637_v4 = vld [vmem:[#allocation5 + $0x108] sm:$0xff]   ;;  %v4639_v6 = vld [vmem:[#allocation5 + $0x110] sm:$0xff]   ;;  %s3603_s26 = sshll.u32 %s4965_s21, 12  ;;  %s3338_s28 = sshll.u32 %s5227_s6, 4  ;;  %s5733_s28 = int_to_ptr.vmem [resolvable:$true] %s3338_s28 }
  0x81   : > { %4012 = vmatprep.subr.bf16.mxu0 %v4635_v2  ;;  %3821 = vmatpush3.bf16.msra.mxu1 %v4634_v1  ;;  %v4640_v7 = vld [vmem:[#allocation5 + $0x58] sm:$0xff]   ;;  %v4642_v9 = vld [vmem:[#allocation5 + $0x60] sm:$0xff]   ;;  %v4644_v11 = vld [vmem:[#allocation5 + $0x68] sm:$0xff]   ;;  %s5731_s21 = scalar_lea.hbm %s5836_s3, %s3603_s26  ;;  %s3323_s8 = scalar_lea.sflag [#allocation4], %s5211_s9 }
  0x82   : > { %4013 = vmatpush3.bf16.msra.mxu0 %v4635_v2  ;;  %3822 = vmatprep.subr.bf16.mxu1 %v4636_v3  ;;  %v4641_v8 = vld [vmem:[#allocation5 + $0x118] sm:$0xff]   ;;  %v4643_v10 = vld [vmem:[#allocation5 + $0x120] sm:$0xff]   ;;  %v4645_v12 = vld [vmem:[#allocation5 + $0x128] sm:$0xff]   ;;  %s4831_s15 = scalar_lea.vmem %s5733_s28, 4096  ;;  %p5861_p0 = scmp.ne.s32.totalorder %s5855_s16, 0 }
  0x83   : > { %4014 = vmatprep.subr.bf16.mxu0 %v4637_v4  ;;  %v5230_v13 = vld [vmem:[%s5215_s13] sm:$0xff]   ;;  %v5233_v14 = vld [vmem:[%s5215_s13 + $0x8] sm:$0xff]   ;;  %v5236_v15 = vld [vmem:[%s5215_s13 + $0x10] sm:$0xff]   ;;  %p4832_p11 = scmp.ne.s32.totalorder %s5733_s28, %s4831_s15  ;;  %s4984_s25 = smov [#allocation8]  }
  0x84   : > { %v461_v16 = vshrl.u32 %v5230_v13, 16  ;;  %v463_v17 = vshll.u32 %v5230_v13, 16  ;;  %v468_v18 = vshll.u32 %v5233_v14, 16  ;;  %v472_v19 = vshrl.u32 %v5233_v14, 16  ;;  %v4646_v20 = vld [vmem:[#allocation5 + $0x70] sm:$0xff]   ;;  %v4648_v27 = vld [vmem:[#allocation5 + $0x78] sm:$0xff]  }
  0x85   : > { %3823 = vmatpush3.bf16.msra.mxu1 %v4636_v3  ;;  %v476_v21 = vshll.u32 %v5236_v15, 16  ;;  %v4647_v22 = vld [vmem:[#allocation5 + $0x130] sm:$0xff]   ;;  %v480_v30 = vshrl.u32 %v5236_v15, 16  ;;  %v4649_v33 = vld [vmem:[#allocation5 + $0x138] sm:$0xff]   ;;  %v4653_v39 = vld [vmem:[#allocation5] sm:$0xff]   ;;  %p4833_p4 = pnand %p4832_p11, %p5861_p0  ;;  %s4835_s1 = sshll.u32 %s4984_s25, 4  ;;  %s4836_s1 = int_to_ptr.vmem [resolvable:$false] %s4835_s1 }
  0x86   : > { %4015 = vmatpush3.bf16.msra.mxu0 %v4637_v4  ;;  %3824 = vmatprep.subr.bf16.mxu1 %v4638_v5  ;;  %v465_v23 = vrot.slane %v463_v17, 1  ;;  %v470_v24 = vrot.slane %v468_v18, 1  ;;  %v5244_v25 = vld [vmem:[%s5215_s13 + $0x18] sm:$0xff]   ;;  %v5249_v32 = vld [vmem:[%s5215_s13 + $0x20] sm:$0xff]   ;;  %v5256_v38 = vld [vmem:[%s5215_s13 + $0x28] sm:$0xff]   ;;  %s4837_s10 = scalar_lea.vmem %s4836_s1, 8192  ;;  %p4838_p5 = scmp.lt.s32.totalorder %s5733_s28, %s4836_s1 }
  0x87   : > { %4016 = vmatprep.subr.bf16.mxu0 %v4639_v6  ;;  %v478_v26 = vrot.slane %v476_v21, 1  ;;  %v484_v31 = vshll.u32 %v5244_v25, 16  ;;  %v488_v36 = vshrl.u32 %v5244_v25, 16  ;;  %v492_v37 = vshll.u32 %v5249_v32, 16  ;;  %v4655_v42 = vld [vmem:[#allocation5 + $0x140] sm:$0xff]   ;;  %v4656_v48 = vld [vmem:[#allocation5 + $0x148] sm:$0xff]   ;;  %p4834_p3 = pneg %p4833_p4  ;;  %p4839_p9 = scmp.lt.s32.totalorder %s4837_s10, %s4831_s15 }
  0x88   : > { %v466_v28 = vor.u32 %v465_v23, %v461_v16  ;;  %v474_v29 = vor.u32 %v472_v19, %v470_v24  ;;  %v5259_v45 = vld [vmem:[%s5215_s13 + $0x30] sm:$0xff]   ;;  %v500_v46 = vshll.u32 %v5256_v38, 16  ;;  %v496_v49 = vshrl.u32 %v5249_v32, 16  ;;  %v4660_v55 = vld [vmem:[#allocation5 + $0x150] sm:$0xff]  }
  0x89   : > { %3825 = vmatpush3.bf16.msra.mxu1 %v4638_v5  ;;  %v482_v40 = vor.u32 %v480_v30, %v478_v26  ;;  %v486_v41 = vrot.slane %v484_v31, 1  ;;  %v494_v44 = vrot.slane %v492_v37, 1  ;;  %v504_v50 = vshrl.u32 %v5256_v38, 16  ;;  %v4658_v53 = vld [vmem:[#allocation5 + $0x8] sm:$0xff]   ;;  %v4663_v58 = vld [vmem:[#allocation5 + $0x10] sm:$0xff]   ;;  %v4661_v0 = vld [vmem:[#allocation5 + $0x158] sm:$0xff]   ;;  %p4840_p12 = por %p4839_p9, %p4838_p5 }
  0x8a   : > { %4017 = vmatpush3.bf16.msra.mxu0 %v4639_v6  ;;  %3826 = vmatprep.subr.bf16.mxu1 %v4640_v7  ;;  %v471_v34 = vsel %vm459_vm0, %v466_v28, %v470_v24  ;;  %v479_v35 = vsel %vm459_vm0, %v474_v29, %v478_v26  ;;  %v508_v51 = vshll.u32 %v5259_v45, 16  ;;  %v502_v54 = vrot.slane %v500_v46, 1  ;;  %v5273_v56 = vld [vmem:[%s5215_s13 + $0x38] sm:$0xff]   ;;  %v5278_v61 = vld [vmem:[%s5215_s13 + $0x40] sm:$0xff]   ;;  %v5307_v21 = vld [vmem:[%s5215_s13 + $0x50] sm:$0xff]  }
  0x8b   : > { %4018 = vmatprep.subr.bf16.mxu0 %v4641_v8  ;;  %3836 = vmatprep.mubr.bf16.mxu1 %v471_v34  ;;  %v490_v43 = vor.u32 %v488_v36, %v486_v41  ;;  %v5263_v47 = vsel %vm459_vm0, %v482_v40, %v486_v41  ;;  %v498_v57 = vor.u32 %v496_v49, %v494_v44  ;;  %v516_v62 = vshll.u32 %v5273_v56, 16  ;;  %v4668_v5 = vld [vmem:[#allocation5 + $0x18] sm:$0xff]   ;;  %v4666_v19 = vld [vmem:[#allocation5 + $0x168] sm:$0xff]   ;;  %v4681_v31 = vld [vmem:[#allocation5 + $0x30] sm:$0xff]   ;;  %p4841_p1 = pnand %p4840_p12, %p4834_p3 }
  0x8c   : > { %4028 = vmatprep.mubr.bf16.mxu0 %v479_v35  ;;  %v506_v59 = vor.u32 %v504_v50, %v502_v54  ;;  %v510_v60 = vrot.slane %v508_v51, 1  ;;  %v512_v1 = vshrl.u32 %v5259_v45, 16  ;;  %v520_v3 = vshrl.u32 %v5273_v56, 16  ;;  %v5313_v26 = vld [vmem:[%s5215_s13 + $0x58] sm:$0xff]   ;;  %v5330_v40 = vld [vmem:[%s5215_s13 + $0x60] sm:$0xff]   ;;  %v5338_v49 = vld [vmem:[%s5215_s13 + $0x68] sm:$0xff]  }
  0x8d   : > { %3827 = vmatpush3.bf16.msra.mxu1 %v4640_v7  ;;  %v5269_v52 = vsel %vm459_vm0, %v490_v43, %v494_v44  ;;  %v5282_v63 = vsel %vm459_vm0, %v498_v57, %v502_v54  ;;  %v524_v4 = vshll.u32 %v5278_v61, 16  ;;  %v518_v6 = vrot.slane %v516_v62, 1  ;;  %v4674_v50 = vld [vmem:[#allocation5 + $0x180] sm:$0xff]  }
  0x8e   : > { %4019 = vmatpush3.bf16.msra.mxu0 %v4641_v8  ;;  %3828 = vmatprep.subr.bf16.mxu1 %v4642_v9  ;;  %v5286_v2 = vsel %vm459_vm0, %v506_v59, %v510_v60  ;;  %v514_v7 = vor.u32 %v512_v1, %v510_v60  ;;  %v5295_v8 = vld [vmem:[%s5215_s13 + $0x48] sm:$0xff]   ;;  %v528_v17 = vshrl.u32 %v5278_v61, 16  ;;  %v1061_v28 = vrot.slane %v5233_v14, 1  ;;  %v4678_v1 = vld [vmem:[#allocation5 + $0x188] sm:$0xff]  }
  0x8f   : > { %4020 = vmatprep.subr.bf16.mxu0 %v4643_v10  ;;  %v532_v18 = vshll.u32 %v5295_v8, 16  ;;  %v1063_v29 = vrot.slane %v5236_v15, 1  ;;  %v540_v30 = vshll.u32 %v5307_v21, 16  ;;  %v536_v34 = vshrl.u32 %v5295_v8, 16  ;;  %v5342_v54 = vld [vmem:[#allocation5 + $0x80] sm:$0xff]  }
  0x90   : > { %v5298_v16 = vsel %vm459_vm0, %v514_v7, %v518_v6  ;;  %v544_v36 = vshrl.u32 %v5307_v21, 16  ;;  %v548_v37 = vshll.u32 %v5313_v26, 16  ;;  %v1065_v44 = vrot.slane %v5244_v25, 1 }
  0x91   : > { %3829 = vmatpush3.bf16.msra.mxu1 %v4642_v9  ;;  %v4665_v9 = vld [vmem:[#allocation5 + $0x160] sm:$0xff]   ;;  %v534_v24 = vrot.slane %v532_v18, 1  ;;  %v542_v41 = vrot.slane %v540_v30, 1  ;;  %v1067_v51 = vrot.slane %v5249_v32, 1  ;;  %v552_v57 = vshrl.u32 %v5313_v26, 16 }
  0x92   : > { %4021 = vmatpush3.bf16.msra.mxu0 %v4643_v10  ;;  %3830 = vmatprep.subr.bf16.mxu1 %v4644_v11  ;;  %v522_v10 = vor.u32 %v520_v3, %v518_v6  ;;  %v560_v60 = vshrl.u32 %v5330_v40, 16  ;;  %v564_v62 = vshll.u32 %v5338_v49, 16  ;;  %v5367_v6 = vld [vmem:[%s5215_s13 + $0x78] sm:$0xff]   ;;  %v1069_v7 = vrot.slane %v5256_v38, 1 }
  0x93   : > { %4022 = vmatprep.subr.bf16.mxu0 %v4645_v12  ;;  %v538_v43 = vor.u32 %v536_v34, %v534_v24  ;;  %v546_v46 = vor.u32 %v544_v36, %v542_v41 }
  0x95   : > { %3831 = vmatpush3.bf16.msra.mxu1 %v4644_v11  ;;  %v526_v11 = vrot.slane %v524_v4, 1  ;;  %v5361_v4 = vld [vmem:[%s5215_s13 + $0x70] sm:$0xff]  }
  0x96   : > { %4023 = vmatpush3.bf16.msra.mxu0 %v4645_v12  ;;  %3832 = vmatprep.subr.bf16.mxu1 %v4646_v20  ;;  %v4673_v12 = vld [vmem:[#allocation5 + $0x20] sm:$0xff]   ;;  %v572_v18 = vshll.u32 %v5361_v4, 16 }
  0x97   : > { %4024 = vmatprep.subr.bf16.mxu0 %v4647_v22  ;;  %v530_v23 = vor.u32 %v528_v17, %v526_v11  ;;  %v568_v17 = vshrl.u32 %v5338_v49, 16 }
  0x99   : > { %3833 = vmatpush3.bf16.msra.mxu1 %v4646_v20  ;;  %v5303_v20 = vsel %vm459_vm0, %v522_v10, %v526_v11  ;;  %v566_v10 = vrot.slane %v564_v62, 1  ;;  %v1071_v11 = vrot.slane %v5259_v45, 1 }
  0x9a   : > { %4025 = vmatpush3.bf16.msra.mxu0 %v4647_v22  ;;  %3834 = vmatprep.subr.bf16.mxu1 %v4648_v27  ;;  %v4677_v22 = vld [vmem:[#allocation5 + $0x28] sm:$0xff]  }
  0x9b   : > { %4026 = vmatprep.subr.bf16.mxu0 %v4649_v33  ;;  %v5389_v30 = vsel %vm1059_vm1, %v1069_v7, %v1071_v11  ;;  %v570_v34 = vor.u32 %v568_v17, %v566_v10  ;;  %v4696_v17 = vld [vmem:[#allocation5 + $0x1b8] sm:$0xff]  }
  0x9d   : > { %3835 = vmatpush3.bf16.msra.mxu1 %v4648_v27  ;;  %v4670_v27 = vld [vmem:[#allocation5 + $0x170] sm:$0xff]  }
  0x9e   : > { %4027 = vmatpush3.bf16.msra.mxu0 %v4649_v33  ;;  %3868 = vmatprep.subr.bf16.mxu1 %v4653_v39  ;;  %v4671_v33 = vld [vmem:[#allocation5 + $0x178] sm:$0xff]  }
  0x9f   : > { %4060 = vmatprep.subr.bf16.mxu0 %v4655_v42 }
  0xa0   : > { %3837 = vmatmul.mubr.bf16.vlgmr.msra.gmra.mrb[0].mxu1 %v479_v35  ;;  %v5320_v35 = vsel %vm459_vm0, %v530_v23, %v534_v24  ;;  %v580_v23 = vshll.u32 %v5367_v6, 16  ;;  %v5380_v24 = vsel %vm1059_vm1, %v1067_v51, %v1069_v7 }
  0xa1   : > { %4029 = vmatmul.mubr.bf16.vlgmr.msra.gmra.mrb[0].mxu0 %v5263_v47  ;;  %3869 = vmatpush3.bf16.msra.mxu1 %v4653_v39  ;;  %v5327_v39 = vsel %vm1059_vm1, %v1061_v28, %v1063_v29 }
  0xa2   : > { %4061 = vmatpush3.bf16.msra.mxu0 %v4655_v42  ;;  %3840 = vmatprep.mubr.bf16.mxu1 %v5263_v47  ;;  %v4686_v42 = vld [vmem:[#allocation5 + $0x38] sm:$0xff]  }
  0xa3   : > { %4062 = vmatprep.subr.bf16.mxu0 %v4656_v48  ;;  %4032 = vmatprep.mubr.bf16.mxu0 %v5269_v52 }
  0xa4   : > { %3870 = vmatprep.subr.bf16.mxu1 %v4658_v53 }
  0xa5   : > { %3871 = vmatpush3.bf16.msra.mxu1 %v4658_v53  ;;  %v556_v53 = vshll.u32 %v5330_v40, 16 }
  0xa6   : > { %4063 = vmatpush3.bf16.msra.mxu0 %v4656_v48  ;;  %3872 = vmatprep.subr.bf16.mxu1 %v4663_v58  ;;  %v550_v48 = vrot.slane %v548_v37, 1  ;;  %v1073_v37 = vrot.slane %v5273_v56, 1 }
  0xa7   : > { %4064 = vmatprep.subr.bf16.mxu0 %v4660_v55  ;;  %v558_v3 = vrot.slane %v556_v53, 1 }
  0xa8   : > { %3841 = vmatmul.mubr.bf16.gmra.mrb[4].mxu1 %v5269_v52  ;;  %v5352_v59 = vsel %vm459_vm0, %v546_v46, %v550_v48 }
  0xa9   : > { %4033 = vmatmul.mubr.bf16.gmra.mrb[4].mxu0 %v5282_v63  ;;  %3844 = vmatprep.mubr.bf16.mxu1 %v5282_v63 }
  0xaa   : > { %4065 = vmatpush3.bf16.msra.mxu0 %v4660_v55  ;;  %4036 = vmatprep.mubr.bf16.mxu0 %v5286_v2  ;;  %v5345_v55 = vsel %vm459_vm0, %v538_v43, %v542_v41  ;;  %v1075_v43 = vrot.slane %v5278_v61, 1 }
  0xab   : > { %4066 = vmatprep.subr.bf16.mxu0 %v4661_v0  ;;  %3873 = vmatpush3.bf16.msra.mxu1 %v4663_v58  ;;  %v5349_v58 = vsel %vm1059_vm1, %v1063_v29, %v1065_v44  ;;  %v5386_v29 = vld [vmem:[%s5215_s13 + $0x80] sm:$0xf] }
  0xac   : > { %3874 = vmatprep.subr.bf16.mxu1 %v4668_v5  ;;  %v3516_v36 = vcombine.low %v5386_v29, %v5386_v29 }
  0xae   : > { %4067 = vmatpush3.bf16.msra.mxu0 %v4661_v0  ;;  %v5357_v0 = vsel %vm1059_vm1, %v1065_v44, %v1067_v51  ;;  %v4689_v44 = vld [vmem:[#allocation5 + $0x1a0] sm:$0xff]   ;;  %v5404_v51 = vsel %vm1059_vm1, %v1071_v11, %v1073_v37  ;;  %v1091_v7 = vrot.slane %v3516_v36, 1 }
  0xaf   : > { %4068 = vmatprep.subr.bf16.mxu0 %v4665_v9  ;;  %3875 = vmatpush3.bf16.msra.mxu1 %v4668_v5  ;;  %v554_v5 = vor.u32 %v552_v57, %v550_v48  ;;  %v584_v48 = vshrl.u32 %v5367_v6, 16  ;;  %v5410_v57 = vsel %vm1059_vm1, %v1073_v37, %v1075_v43  ;;  %v4690_v37 = vld [vmem:[#allocation5 + $0x88] sm:$0xff]  }
  0xb0   : > { %3845 = vmatmul.mubr.bf16.gmra.mrb[8].mxu1 %v5286_v2  ;;  %3876 = vmatprep.subr.bf16.mxu1 %v4673_v12 }
  0xb1   : > { %4037 = vmatmul.mubr.bf16.gmra.mrb[8].mxu0 %v5298_v16  ;;  %3848 = vmatprep.mubr.bf16.mxu1 %v5298_v16 }
  0xb2   : > { %4069 = vmatpush3.bf16.msra.mxu0 %v4665_v9  ;;  %4040 = vmatprep.mubr.bf16.mxu0 %v5303_v20  ;;  %v562_v9 = vor.u32 %v560_v60, %v558_v3  ;;  %v4691_v60 = vld [vmem:[#allocation5 + $0x1a8] sm:$0xff]  }
  0xb3   : > { %4070 = vmatprep.subr.bf16.mxu0 %v4666_v19  ;;  %3877 = vmatpush3.bf16.msra.mxu1 %v4673_v12  ;;  %v4682_v12 = vld [vmem:[#allocation5 + $0x190] sm:$0xff]  }
  0xb4   : > { %3878 = vmatprep.subr.bf16.mxu1 %v4677_v22 }
  0xb6   : > { %4071 = vmatpush3.bf16.msra.mxu0 %v4666_v19  ;;  %v5375_v19 = vsel %vm459_vm0, %v554_v5, %v558_v3  ;;  %v1077_v3 = vrot.slane %v5295_v8, 1  ;;  %v1089_v5 = vrot.slane %v5367_v6, 1 }
  0xb7   : > { %4072 = vmatprep.subr.bf16.mxu0 %v4670_v27  ;;  %3879 = vmatpush3.bf16.msra.mxu1 %v4677_v22  ;;  %v576_v22 = vshrl.u32 %v5361_v4, 16 }
  0xb8   : > { %3849 = vmatmul.mubr.bf16.gmra.mrb[12].mxu1 %v5303_v20  ;;  %3880 = vmatprep.subr.bf16.mxu1 %v4681_v31  ;;  %v5422_v11 = vsel %vm1059_vm1, %v1089_v5, %v1091_v7 }
  0xb9   : > { %4041 = vmatmul.mubr.bf16.gmra.mrb[12].mxu0 %v5320_v35  ;;  %3852 = vmatprep.mubr.bf16.mxu1 %v5320_v35 }
  0xba   : > { %4073 = vmatpush3.bf16.msra.mxu0 %v4670_v27  ;;  %4076 = vmatprep.mubr.bf16.mxu0 %v5327_v39  ;;  %v5383_v27 = vsel %vm459_vm0, %v562_v9, %v566_v10  ;;  %v1079_v9 = vrot.slane %v5307_v21, 1  ;;  %v4693_v10 = vld [vmem:[#allocation5 + $0x1b0] sm:$0xff]  }
  0xbb   : > { %4074 = vmatprep.subr.bf16.mxu0 %v4671_v33  ;;  %3881 = vmatpush3.bf16.msra.mxu1 %v4681_v31  ;;  %v4687_v31 = vld [vmem:[#allocation5 + $0x198] sm:$0xff]  }
  0xbc   : > { %3882 = vmatprep.subr.bf16.mxu1 %v4686_v42 }
  0xbe   : > { %4075 = vmatpush3.bf16.msra.mxu0 %v4671_v33  ;;  %v574_v33 = vrot.slane %v572_v18, 1  ;;  %v5427_v18 = vsel %vm1059_vm1, %v1075_v43, %v1077_v3  ;;  %v1087_v43 = vrot.slane %v5361_v4, 1 }
  0xbf   : > { %4108 = vmatprep.subr.bf16.mxu0 %v4674_v50  ;;  %3883 = vmatpush3.bf16.msra.mxu1 %v4686_v42  ;;  %v582_v42 = vrot.slane %v580_v23, 1  ;;  %v1081_v23 = vrot.slane %v5313_v26, 1 }
  0xc0   : > { %3853 = vmatmul.mubr.bf16.gmra.mrb[16].mxu1 %v5345_v55  ;;  %3916 = vmatprep.subr.bf16.mxu1 %v5342_v54  ;;  %v578_v41 = vor.u32 %v576_v22, %v574_v33  ;;  %v5400_v46 = vsel %vm459_vm0, %v570_v34, %v574_v33  ;;  %v5430_v22 = vsel %vm1059_vm1, %v1077_v3, %v1079_v9  ;;  %v4698_v33 = vld [vmem:[#allocation5 + $0x1c0] sm:$0xff]  }
  0xc1   : > { %4077 = vmatmul.mubr.bf16.vlgmr.msra.gmra.mrb[0].mxu0 %v5349_v58  ;;  %3856 = vmatprep.mubr.bf16.mxu1 %v5352_v59  ;;  %v5415_v62 = vor.u32 %v584_v48, %v582_v42  ;;  %v5438_v34 = vsel %vm1059_vm1, %v1079_v9, %v1081_v23  ;;  %v5468_v3 = vld [vmem:[%s5215_s13 + $0x88] sm:$0xf]  ;;  %v5471_v7 = vsel %vm1059_vm1, %v1087_v43, %v1089_v5 }
  0xc2   : > { %4109 = vmatpush3.bf16.msra.mxu0 %v4674_v50  ;;  %4080 = vmatprep.mubr.bf16.mxu0 %v5357_v0  ;;  %v588_v50 = vshll.u32 %v3516_v36, 16  ;;  %v5407_v53 = vsel %vm459_vm0, %v578_v41, %v582_v42  ;;  %v1085_v41 = vrot.slane %v5338_v49, 1  ;;  %v4692_v42 = vld [vmem:[#allocation5 + $0x90] sm:$0xff]   ;;  %v5475_v9 = vcombine.low %v5468_v3, %v5468_v3 }
  0xc3   : > { %4110 = vmatprep.subr.bf16.mxu0 %v4678_v1 }
  0xc6   : > { %4111 = vmatpush3.bf16.msra.mxu0 %v4678_v1  ;;  %v590_v1 = vrot.slane %v588_v50, 1 }
  0xc7   : > { %4112 = vmatprep.subr.bf16.mxu0 %v4682_v12 }
  0xc8   : > { %3857 = vmatmul.mubr.bf16.gmra.mrb[20].mxu1 %v5375_v19 }
  0xc9   : > { %4081 = vmatmul.mubr.bf16.gmra.mrb[4].mxu0 %v5380_v24  ;;  %3860 = vmatprep.mubr.bf16.mxu1 %v5383_v27 }
  0xca   : > { %4084 = vmatprep.mubr.bf16.mxu0 %v5389_v30  ;;  %4113 = vmatpush3.bf16.msra.mxu0 %v4682_v12  ;;  %v591_v12 = vsel %vm459_vm0, %v5415_v62, %v590_v1 }
  0xcb   : > { %4114 = vmatprep.subr.bf16.mxu0 %v4687_v31 }
  0xce   : > { %4115 = vmatpush3.bf16.msra.mxu0 %v4687_v31  ;;  %v1083_v31 = vrot.slane %v5330_v40, 1 }
  0xcf   : > { %4116 = vmatprep.subr.bf16.mxu0 %v4689_v44 }
  0xd0   : > { %3861 = vmatmul.mubr.bf16.gmra.mrb[24].mxu1 %v5400_v46  ;;  %v5441_v36 = vsel %vm1059_vm1, %v1081_v23, %v1083_v31  ;;  %v5452_v48 = vsel %vm1059_vm1, %v1083_v31, %v1085_v41  ;;  %v4701_v23 = vld [vmem:[#allocation5 + $0xb0] sm:$0xff]  }
  0xd1   : > { %4085 = vmatmul.mubr.bf16.gmra.mrb[8].mxu0 %v5404_v51  ;;  %3864 = vmatprep.mubr.bf16.mxu1 %v5407_v53 }
  0xd2   : > { %4088 = vmatprep.mubr.bf16.mxu0 %v5410_v57  ;;  %4117 = vmatpush3.bf16.msra.mxu0 %v4689_v44  ;;  %v339_v44 = vld [vmem:[%s5215_s13 + $0x84] sm:$0xf] }
  0xd3   : > { %4118 = vmatprep.subr.bf16.mxu0 %v4691_v60  ;;  %v5455_v50 = vcombine.low %v5386_v29, %v339_v44  ;;  %v4697_v29 = vld [vmem:[#allocation5 + $0xa0] sm:$0xff]   ;;  %v4983_v44 = vmov 0  }
  0xd4   : > { %4632 = vset.pattern.permute.xlu0 %v4983_v44  ;;  %4633 = vset.pattern.permute.xlu1 %v4983_v44  ;;  %v3004_v44 = vld [vmem:[#allocation7 + $0x90] sm:$0xff] }
  0xd5   : > { %v5465_v1 = vrot.slane %v5455_v50, 1 }
  0xd6   : > { %4119 = vmatpush3.bf16.msra.mxu0 %v4691_v60  ;;  %v4694_v60 = vld [vmem:[#allocation5 + $0x98] sm:$0xff]  }
  0xd7   : > { %4120 = vmatprep.subr.bf16.mxu0 %v4693_v10 }
  0xd8   : > { %3865 = vmatmul.mubr.bf16.gmra.mrb[28].mxu1 %v591_v12  ;;  %v4699_v12 = vld [vmem:[#allocation5 + $0xa8] sm:$0xff]  }
  0xd9   : > { %4089 = vmatmul.mubr.bf16.gmra.mrb[12].mxu0 %v5427_v18  ;;  %3884 = vmatprep.mubr.bf16.mxu1 %v5230_v13 }
  0xda   : > { %4092 = vmatprep.mubr.bf16.mxu0 %v5430_v22  ;;  %4121 = vmatpush3.bf16.msra.mxu0 %v4693_v10  ;;  %v5479_v10 = vsel %vm1059_vm1, %v1089_v5, %v5465_v1  ;;  %v4703_v5 = vld [vmem:[#allocation5 + $0xb8] sm:$0xff]  }
  0xdb   : > { %4122 = vmatprep.subr.bf16.mxu0 %v4696_v17 }
  0xde   : > { %4123 = vmatpush3.bf16.msra.mxu0 %v4696_v17  ;;  %v1907_v17 = vrot.slane %v5475_v9, 1 }
  0xdf   : > { %4156 = vmatprep.subr.bf16.mxu0 %v4698_v33 }
  0xe0   : > { %3885 = vmatmul.mubr.bf16.vlgmr.msra.gmra.mrb[0].mxu1 %v5233_v14  ;;  %v1908_v31 = vsel %vm1059_vm1, %v5465_v1, %v1907_v17  ;;  %v2987_v14 = vld [vmem:[#allocation7 + $0x8] sm:$0xff]  ;;  %v4711_v17 = vld [vmem:[#allocation5 + $0xd8] sm:$0xff]  }
  0xe1   : > { %4093 = vmatmul.mubr.bf16.gmra.mrb[16].mxu0 %v5438_v34  ;;  %3917 = vmatpush3.bf16.msra.mxu1 %v5342_v54  ;;  %v5458_v54 = vsel %vm1059_vm1, %v1085_v41, %v1087_v43  ;;  %v4700_v41 = vld [vmem:[#allocation5 + $0x1c8] sm:$0xff]   ;;  %v4713_v43 = vld [vmem:[#allocation5 + $0x1f8] sm:$0xff]  }
  0xe2   : > { %3888 = vmatprep.mubr.bf16.mxu1 %v5236_v15  ;;  %4096 = vmatprep.mubr.bf16.mxu0 %v5441_v36 }
  0xe3   : > { %3918 = vmatprep.subr.bf16.mxu1 %v4690_v37 }
  0xe5   : > { %3919 = vmatpush3.bf16.msra.mxu1 %v4690_v37  ;;  %v4705_v37 = vld [vmem:[#allocation5 + $0xc0] sm:$0xff]  }
  0xe6   : > { %3920 = vmatprep.subr.bf16.mxu1 %v4692_v42 }
  0xe8   : > { %3889 = vmatmul.mubr.bf16.gmra.mrb[4].mxu1 %v5244_v25 }
  0xe9   : > { %4097 = vmatmul.mubr.bf16.gmra.mrb[20].mxu0 %v5452_v48  ;;  %3892 = vmatprep.mubr.bf16.mxu1 %v5249_v32 }
  0xea   : > { %4100 = vmatprep.mubr.bf16.mxu0 %v5458_v54  ;;  %3921 = vmatpush3.bf16.msra.mxu1 %v4692_v42  ;;  %v4702_v42 = vld [vmem:[#allocation5 + $0x1d0] sm:$0xff]  }
  0xeb   : > { %3922 = vmatprep.subr.bf16.mxu1 %v4694_v60 }
  0xee   : > { %3923 = vmatpush3.bf16.msra.mxu1 %v4694_v60  ;;  %v4709_v60 = vld [vmem:[#allocation5 + $0xd0] sm:$0xff]  }
  0xef   : > { %3924 = vmatprep.subr.bf16.mxu1 %v4697_v29 }
  0xf0   : > { %3893 = vmatmul.mubr.bf16.gmra.mrb[8].mxu1 %v5256_v38 }
  0xf1   : > { %4101 = vmatmul.mubr.bf16.gmra.mrb[24].mxu0 %v5471_v7  ;;  %3896 = vmatprep.mubr.bf16.mxu1 %v5259_v45 }
  0xf2   : > { %4104 = vmatprep.mubr.bf16.mxu0 %v5479_v10  ;;  %3925 = vmatpush3.bf16.msra.mxu1 %v4697_v29  ;;  %v2991_v29 = vld [vmem:[#allocation7 + $0x28] sm:$0xff] }
  0xf3   : > { %3926 = vmatprep.subr.bf16.mxu1 %v4699_v12 }
  0xf6   : > { %3927 = vmatpush3.bf16.msra.mxu1 %v4699_v12  ;;  %v2992_v12 = vld [vmem:[#allocation7 + $0x30] sm:$0xff] }
  0xf7   : > { %3928 = vmatprep.subr.bf16.mxu1 %v4701_v23 }
  0xf8   : > { %3897 = vmatmul.mubr.bf16.gmra.mrb[12].mxu1 %v5273_v56 }
  0xf9   : > { %4105 = vmatmul.mubr.bf16.gmra.mrb[28].mxu0 %v1908_v31  ;;  %3900 = vmatprep.mubr.bf16.mxu1 %v5278_v61  ;;  %v4714_v31 = vld [vmem:[#allocation5 + $0xe0] sm:$0xff]  }
  0xfa   : > { %4124 = vmatprep.mubr.bf16.mxu0 %v5236_v15  ;;  %3929 = vmatpush3.bf16.msra.mxu1 %v4701_v23  ;;  %v4704_v15 = vld [vmem:[#allocation5 + $0x1d8] sm:$0xff]   ;;  %v2994_v23 = vld [vmem:[#allocation7 + $0x40] sm:$0xff] }
  0xfb   : > { %3930 = vmatprep.subr.bf16.mxu1 %v4703_v5 }
  0xfe   : > { %3931 = vmatpush3.bf16.msra.mxu1 %v4703_v5  ;;  %v2995_v5 = vld [vmem:[#allocation7 + $0x48] sm:$0xff] }
  0xff   : > { %3964 = vmatprep.subr.bf16.mxu1 %v4705_v37 }
 0x100   : > { %3901 = vmatmul.mubr.bf16.gmra.mrb[16].mxu1 %v5295_v8 }
 0x101   : > { %4125 = vmatmul.mubr.bf16.vlgmr.msra.gmra.mrb[0].mxu0 %v5244_v25  ;;  %3904 = vmatprep.mubr.bf16.mxu1 %v5307_v21  ;;  %v4706_v25 = vld [vmem:[#allocation5 + $0x1e0] sm:$0xff]  }
 0x102   : > { %4157 = vmatpush3.bf16.msra.mxu0 %v4698_v33  ;;  %4128 = vmatprep.mubr.bf16.mxu0 %v5249_v32  ;;  %v4708_v33 = vld [vmem:[#allocation5 + $0x1e8] sm:$0xff]   ;;  %v1060_v32 = vrot.slane %v5230_v13, 1  ;;  %v2988_v13 = vld [vmem:[#allocation7 + $0x10] sm:$0xff] }
 0x103   : > { %4158 = vmatprep.subr.bf16.mxu0 %v4700_v41  ;;  %3030 = vperm.xlu1 %4633, %v2988_v13   ;;  %v3002_v13 = vld [vmem:[#allocation7 + $0x80] sm:$0xff] }
 0x106   : > { %4159 = vmatpush3.bf16.msra.mxu0 %v4700_v41  ;;  %v4716_v41 = vld [vmem:[#allocation5 + $0xe8] sm:$0xff]  }
 0x107   : > { %4160 = vmatprep.subr.bf16.mxu0 %v4702_v42 }
 0x108   : > { %3905 = vmatmul.mubr.bf16.gmra.mrb[20].mxu1 %v5313_v26 }
 0x109   : > { %4129 = vmatmul.mubr.bf16.gmra.mrb[4].mxu0 %v5256_v38  ;;  %3908 = vmatprep.mubr.bf16.mxu1 %v5330_v40  ;;  %v4710_v38 = vld [vmem:[#allocation5 + $0x1f0] sm:$0xff]  }
 0x10a   : > { %4132 = vmatprep.mubr.bf16.mxu0 %v5259_v45  ;;  %4161 = vmatpush3.bf16.msra.mxu0 %v4702_v42  ;;  %v1062_v45 = vsel %vm1059_vm1, %v1060_v32, %v1061_v28  ;;  %v4707_v28 = vld [vmem:[#allocation5 + $0xc8] sm:$0xff]   ;;  %v2997_v42 = vld [vmem:[#allocation7 + $0x58] sm:$0xff] }
 0x10b   : > { %4162 = vmatprep.subr.bf16.mxu0 %v4704_v15  ;;  %v2999_v32 = vld [vmem:[#allocation7 + $0x68] sm:$0xff] }
 0x10e   : > { %4163 = vmatpush3.bf16.msra.mxu0 %v4704_v15  ;;  %v2998_v15 = vld [vmem:[#allocation7 + $0x60] sm:$0xff] }
 0x10f   : > { %4164 = vmatprep.subr.bf16.mxu0 %v4706_v25 }
 0x110   : > { %3909 = vmatmul.mubr.bf16.gmra.mrb[24].mxu1 %v5338_v49 }
 0x111   : > { %4133 = vmatmul.mubr.bf16.gmra.mrb[8].mxu0 %v5273_v56  ;;  %3912 = vmatprep.mubr.bf16.mxu1 %v5361_v4  ;;  %v2986_v56 = vld [vmem:[#allocation7] sm:$0xff] }
 0x112   : > { %4136 = vmatprep.mubr.bf16.mxu0 %v5278_v61  ;;  %4165 = vmatpush3.bf16.msra.mxu0 %v4706_v25  ;;  %v5510_v61 = vld [vmem:[#allocation5 + $0x200] sm:$0xff]  }
 0x113   : > { %4166 = vmatprep.subr.bf16.mxu0 %v4708_v33  ;;  %3020 = vperm.xlu0 %4632, %v2986_v56   ;;  %v341_v25 = vld [vmem:[%s5215_s13 + $0x8c] sm:$0xf] }
 0x114   : > { %v3001_v56 = vld [vmem:[#allocation7 + $0x78] sm:$0xff] }
 0x116   : > { %4167 = vmatpush3.bf16.msra.mxu0 %v4708_v33  ;;  %v4718_v33 = vld [vmem:[#allocation5 + $0xf0] sm:$0xff]  }
 0x117   : > { %4168 = vmatprep.subr.bf16.mxu0 %v4710_v38  ;;  %3025 = vperm.xlu0 %4632, %v2987_v14   ;;  %v4717_v14 = vld [vmem:[#allocation5 + $0x208] sm:$0xff]  }
 0x118   : > { %3913 = vmatmul.mubr.bf16.gmra.mrb[28].mxu1 %v5367_v6 }
 0x119   : > { %4137 = vmatmul.mubr.bf16.gmra.mrb[12].mxu0 %v5295_v8  ;;  %3932 = vmatprep.mubr.bf16.mxu1 %v1062_v45  ;;  %v2989_v8 = vld [vmem:[#allocation7 + $0x18] sm:$0xff]  ;;  %v3000_v45 = vld [vmem:[#allocation7 + $0x70] sm:$0xff] }
 0x11a   : > { %4140 = vmatprep.mubr.bf16.mxu0 %v5307_v21  ;;  %4169 = vmatpush3.bf16.msra.mxu0 %v4710_v38  ;;  %v2990_v21 = vld [vmem:[#allocation7 + $0x20] sm:$0xff]  ;;  %v5527_v38 = vcombine.low %v5468_v3, %v341_v25  ;;  %v3003_v3 = vld [vmem:[#allocation7 + $0x88] sm:$0xff]  ;;  %v1633_v25 = vshll.u32 %v5455_v50, 16 }
 0x11b   : > { %4170 = vmatprep.subr.bf16.mxu0 %v4713_v43  ;;  %3035 = vperm.xlu1 %4633, %v2989_v8   ;;  %v3005_v8 = vld [vmem:[#allocation7 + $0x98] sm:$0xff] }
 0x11c   : > { %3040 = vperm.xlu0 %4632, %v2990_v21   ;;  %v4719_v21 = vld [vmem:[#allocation5 + $0x210] sm:$0xff]  }
 0x11e   : > { %4171 = vmatpush3.bf16.msra.mxu0 %v4713_v43  ;;  %v4720_v43 = vld [vmem:[#allocation5 + $0xf8] sm:$0xff]  }
 0x11f   : > { %4204 = vmatprep.subr.bf16.mxu0 %v5510_v61  ;;  %3045 = vperm.xlu1 %4633, %v2991_v29   ;;  %v3008_v29 = vld [vmem:[#allocation7 + $0xb0] sm:$0xff] }
 0x120   : > { %3933 = vmatmul.mubr.bf16.vlgmr.msra.gmra.mrb[0].mxu1 %v5327_v39  ;;  %3050 = vperm.xlu0 %4632, %v2992_v12   ;;  %v2993_v39 = vld [vmem:[#allocation7 + $0x38] sm:$0xff] }
 0x121   : > { %4141 = vmatmul.mubr.bf16.gmra.mrb[16].mxu0 %v5313_v26  ;;  %3965 = vmatpush3.bf16.msra.mxu1 %v4705_v37  ;;  %v2996_v37 = vld [vmem:[#allocation7 + $0x50] sm:$0xff]  ;;  %v4721_v12 = vld [vmem:[#allocation5 + $0x218] sm:$0xff]  }
 0x122   : > { %3936 = vmatprep.mubr.bf16.mxu1 %v5349_v58  ;;  %4144 = vmatprep.mubr.bf16.mxu0 %v5330_v40 }
 0x123   : > { %3966 = vmatprep.subr.bf16.mxu1 %v4707_v28  ;;  %3055 = vperm.xlu1 %4633, %v2993_v39   ;;  %v3012_v39 = vld [vmem:[#allocation7 + $0xd0] sm:$0xff] }
 0x124   : > { %3060 = vperm.xlu0 %4632, %v2994_v23   ;;  %v4723_v23 = vld [vmem:[#allocation5 + $0x228] sm:$0xff]  }
 0x125   : > { %3967 = vmatpush3.bf16.msra.mxu1 %v4707_v28  ;;  %v5533_v28 = vld [vmem:[#allocation5 + $0x100] sm:$0xff]  }
 0x126   : > { %3968 = vmatprep.subr.bf16.mxu1 %v4709_v60 }
 0x127   : > { %3065 = vperm.xlu1 %4633, %v2995_v5   ;;  %v3015_v5 = vld [vmem:[#allocation7 + $0xe8] sm:$0xff] }
 0x128   : > { %3937 = vmatmul.mubr.bf16.gmra.mrb[4].mxu1 %v5357_v0  ;;  %3070 = vperm.xlu0 %4632, %v2996_v37   ;;  %v3016_v37 = vld [vmem:[#allocation7 + $0xf0] sm:$0xff] }
 0x129   : > { %4145 = vmatmul.mubr.bf16.gmra.mrb[20].mxu0 %v5338_v49  ;;  %3940 = vmatprep.mubr.bf16.mxu1 %v5380_v24 }
 0x12a   : > { %4148 = vmatprep.mubr.bf16.mxu0 %v5361_v4  ;;  %3969 = vmatpush3.bf16.msra.mxu1 %v4709_v60  ;;  %v3007_v60 = vld [vmem:[#allocation7 + $0xa8] sm:$0xff] }
 0x12b   : > { %3970 = vmatprep.subr.bf16.mxu1 %v4711_v17  ;;  %3075 = vperm.xlu1 %4633, %v2997_v42   ;;  %v4729_v42 = vld [vmem:[%s5215_s13 + $0x10] sm:$0xff]  }
 0x12c   : > { %3080 = vperm.xlu0 %4632, %v2998_v15   ;;  %v4731_v15 = vld [vmem:[#allocation5 + $0x108] sm:$0xff]  }
 0x12e   : > { %3971 = vmatpush3.bf16.msra.mxu1 %v4711_v17  ;;  %v3011_v17 = vld [vmem:[#allocation7 + $0xc8] sm:$0xff] }
 0x12f   : > { %3972 = vmatprep.subr.bf16.mxu1 %v4714_v31  ;;  %3085 = vperm.xlu1 %4633, %v2999_v32   ;;  %v1637_v32 = vshrl.u32 %v5455_v50, 16 }
 0x130   : > { %3941 = vmatmul.mubr.bf16.gmra.mrb[8].mxu1 %v5389_v30  ;;  %3090 = vperm.xlu0 %4632, %v3000_v45   ;;  %v2435_v45 = vshll.u32 %v5527_v38, 16 }
 0x131   : > { %4149 = vmatmul.mubr.bf16.gmra.mrb[24].mxu0 %v5367_v6  ;;  %3944 = vmatprep.mubr.bf16.mxu1 %v5404_v51 }
 0x132   : > { %4152 = vmatprep.mubr.bf16.mxu0 %v5455_v50  ;;  %3973 = vmatpush3.bf16.msra.mxu1 %v4714_v31  ;;  %v4724_v31 = vld [vmem:[#allocation5 + $0x230] sm:$0xff]  }
 0x133   : > { %3974 = vmatprep.subr.bf16.mxu1 %v4716_v41  ;;  %3095 = vperm.xlu1 %4633, %v3001_v56   ;;  %v4734_v56 = vld [vmem:[%s5215_s13 + $0x28] sm:$0xff]  }
 0x134   : > { %3100 = vperm.xlu0 %4632, %v3002_v13   ;;  %v1635_v13 = vrot.slane %v1633_v25, 1 }
 0x136   : > { %3975 = vmatpush3.bf16.msra.mxu1 %v4716_v41  ;;  %v4726_v41 = vld [vmem:[#allocation5 + $0x238] sm:$0xff]  }
 0x137   : > { %3976 = vmatprep.subr.bf16.mxu1 %v4718_v33  ;;  %3105 = vperm.xlu1 %4633, %v3003_v3   ;;  %v5566_v3 = vld [vmem:[%s5215_s13 + $0x90] ss:$0 sps:$4 sm:$0xff]  }
 0x138   : > { %3945 = vmatmul.mubr.bf16.gmra.mrb[12].mxu1 %v5410_v57  ;;  %3110 = vperm.xlu0 %4632, %v3004_v44   ;;  %v5568_v44 = vor.u32 %v1637_v32, %v1635_v13 }
 0x139   : > { %4153 = vmatmul.mubr.bf16.gmra.mrb[28].mxu0 %v5527_v38  ;;  %3948 = vmatprep.mubr.bf16.mxu1 %v5427_v18 }
 0x13a   : > { %4172 = vmatprep.mubr.bf16.mxu0 %v5263_v47  ;;  %3977 = vmatpush3.bf16.msra.mxu1 %v4718_v33  ;;  %v3006_v47 = vld [vmem:[#allocation7 + $0xa0] sm:$0xff]  ;;  %v4732_v33 = vld [vmem:[#allocation5 + $0x110] sm:$0xff]  }
 0x13b   : > { %3978 = vmatprep.subr.bf16.mxu1 %v4720_v43  ;;  %3115 = vperm.xlu1 %4633, %v3005_v8   ;;  %v1636_v8 = vsel %vm459_vm0, %v5415_v62, %v1635_v13 }
 0x13c   : > { %3120 = vperm.xlu0 %4632, %v3006_v47   ;;  %v2439_v47 = vshrl.u32 %v5527_v38, 16 }
 0x13e   : > { %3979 = vmatpush3.bf16.msra.mxu1 %v4720_v43  ;;  %v4733_v43 = vld [vmem:[%s5215_s13 + $0x20] sm:$0xff]  }
 0x13f   : > { %4252 = vmatprep.subr.bf16.mxu1 %v5533_v28  ;;  %3125 = vperm.xlu1 %4633, %v3007_v60  }
 0x140   : > { %3949 = vmatmul.mubr.bf16.gmra.mrb[16].mxu1 %v5430_v22  ;;  %3130 = vperm.xlu0 %4632, %v3008_v29   ;;  %v4736_v29 = vld [vmem:[#allocation5 + $0x120] sm:$0xff]  }
 0x141   : > { %4173 = vmatmul.mubr.bf16.vlgmr.msra.gmra.mrb[0].mxu0 %v5269_v52  ;;  %3952 = vmatprep.mubr.bf16.mxu1 %v5438_v34  ;;  %v3009_v52 = vld [vmem:[#allocation7 + $0xb8] sm:$0xff] }
 0x142   : > { %4205 = vmatpush3.bf16.msra.mxu0 %v5510_v61  ;;  %4176 = vmatprep.mubr.bf16.mxu0 %v5282_v63  ;;  %v3010_v61 = vld [vmem:[#allocation7 + $0xc0] sm:$0xff] }
 0x143   : > { %4206 = vmatprep.subr.bf16.mxu0 %v4717_v14  ;;  %v4722_v63 = vld [vmem:[#allocation5 + $0x220] sm:$0xff]   ;;  %3135 = vperm.xlu1 %4633, %v3009_v52  }
 0x144   : > { %3140 = vperm.xlu0 %4632, %v3010_v61   ;;  %v4738_v52 = vld [vmem:[%s5215_s13 + $0x38] sm:$0xff]  }
 0x146   : > { %4207 = vmatpush3.bf16.msra.mxu0 %v4717_v14  ;;  %v2437_v14 = vrot.slane %v2435_v45, 1 }
 0x147   : > { %4208 = vmatprep.subr.bf16.mxu0 %v4719_v21  ;;  %3145 = vperm.xlu1 %4633, %v3011_v17  }
 0x148   : > { %3953 = vmatmul.mubr.bf16.gmra.mrb[20].mxu1 %v5441_v36  ;;  %3150 = vperm.xlu0 %4632, %v3012_v39   ;;  %v2438_v60 = vsel %vm459_vm0, %v5568_v44, %v2437_v14  ;;  %v2441_v61 = vor.u32 %v2439_v47, %v2437_v14  ;;  %v4740_v39 = vld [vmem:[#allocation5 + $0x130] sm:$0xff]  }
 0x149   : > { %4177 = vmatmul.mubr.bf16.gmra.mrb[4].mxu0 %v5286_v2  ;;  %3956 = vmatprep.mubr.bf16.mxu1 %v5452_v48  ;;  %v3013_v2 = vld [vmem:[#allocation7 + $0xd8] sm:$0xff] }
 0x14a   : > { %4180 = vmatprep.mubr.bf16.mxu0 %v5298_v16  ;;  %4209 = vmatpush3.bf16.msra.mxu0 %v4719_v21  ;;  %v3014_v16 = vld [vmem:[#allocation7 + $0xe0] sm:$0xff]  ;;  %v2443_v21 = vshll.u32 %v5566_v3, 16 }
 0x14b   : > { %4210 = vmatprep.subr.bf16.mxu0 %v4721_v12  ;;  %3155 = vperm.xlu1 %4633, %v3013_v2   ;;  %v4742_v2 = vld [vmem:[%s5215_s13 + $0x48] sm:$0xff]  }
 0x14c   : > { %3160 = vperm.xlu0 %4632, %v3014_v16   ;;  %v2445_v62 = vrot.slane %v2443_v21, 1  ;;  %v4743_v16 = vld [vmem:[#allocation5 + $0x138] sm:$0xff]  }
 0x14e   : > { %4211 = vmatpush3.bf16.msra.mxu0 %v4721_v12  ;;  %v4737_v12 = vld [vmem:[%s5215_s13 + $0x30] sm:$0xff]   ;;  %v2446_v17 = vsel %vm459_vm0, %v2441_v61, %v2445_v62 }
 0x14f   : > { %4212 = vmatprep.subr.bf16.mxu0 %v4722_v63  ;;  %3165 = vperm.xlu1 %4633, %v3015_v5  }
 0x150   : > { %3957 = vmatmul.mubr.bf16.gmra.mrb[24].mxu1 %v5458_v54  ;;  %3170 = vperm.xlu0 %4632, %v3016_v37  }
 0x151   : > { %4181 = vmatmul.mubr.bf16.gmra.mrb[8].mxu0 %v5303_v20  ;;  %3960 = vmatprep.mubr.bf16.mxu1 %v5471_v7  ;;  %v3017_v20 = vld [vmem:[#allocation7 + $0xf8] sm:$0xff] }
 0x152   : > { %4184 = vmatprep.mubr.bf16.mxu0 %v5320_v35  ;;  %4213 = vmatpush3.bf16.msra.mxu0 %v4722_v63  ;;  %v4728_v35 = vld [vmem:[%s5215_s13 + $0x8] sm:$0xff]   ;;  %v4739_v63 = vld [vmem:[#allocation5 + $0x128] sm:$0xff]  }
 0x153   : > { %4214 = vmatprep.subr.bf16.mxu0 %v4723_v23  ;;  %3175 = vperm.xlu1 %4633, %v3017_v20  }
 0x156   : > { %4215 = vmatpush3.bf16.msra.mxu0 %v4723_v23  ;;  %v4741_v23 = vld [vmem:[%s5215_s13 + $0x40] sm:$0xff]  }
 0x157   : > { %4216 = vmatprep.subr.bf16.mxu0 %v4724_v31 }
 0x158   : > { %3961 = vmatmul.mubr.bf16.gmra.mrb[28].mxu1 %v5422_v11  ;;  %v4730_v11 = vld [vmem:[%s5215_s13 + $0x18] sm:$0xff]  }
 0x159   : > { %4185 = vmatmul.mubr.bf16.gmra.mrb[12].mxu0 %v5345_v55  ;;  %3980 = vmatprep.mubr.bf16.mxu1 %v4728_v35 }
 0x15a   : > { %4188 = vmatprep.mubr.bf16.mxu0 %v5352_v59  ;;  %4217 = vmatpush3.bf16.msra.mxu0 %v4724_v31  ;;  %v4744_v31 = vld [vmem:[%s5215_s13 + $0x50] sm:$0xff]  }
 0x15b   : > { %4218 = vmatprep.subr.bf16.mxu0 %v4726_v41 }
 0x15e   : > { %4219 = vmatpush3.bf16.msra.mxu0 %v4726_v41 }
 0x160   : > { %3981 = vmatmul.mubr.bf16.vlgmr.msra.gmra.mrb[0].mxu1 %v4729_v42 }
 0x161   : > { %4189 = vmatmul.mubr.bf16.gmra.mrb[16].mxu0 %v5375_v19  ;;  %4260 = vmatpush3.bf16.msra.mxu1 %v5533_v28  ;;  %v4735_v28 = vld [vmem:[#allocation5 + $0x118] sm:$0xff]  }
 0x162   : > { %3984 = vmatprep.mubr.bf16.mxu1 %v4730_v11  ;;  %4192 = vmatprep.mubr.bf16.mxu0 %v5383_v27 }
 0x163   : > { %4253 = vmatprep.subr.bf16.mxu1 %v4731_v15 }
 0x165   : > { %4261 = vmatpush3.bf16.msra.mxu1 %v4731_v15 }
 0x166   : > { %4254 = vmatprep.subr.bf16.mxu1 %v4732_v33 }
 0x168   : > { %3985 = vmatmul.mubr.bf16.gmra.mrb[4].mxu1 %v4733_v43 }
 0x169   : > { %4193 = vmatmul.mubr.bf16.gmra.mrb[20].mxu0 %v5400_v46  ;;  %3988 = vmatprep.mubr.bf16.mxu1 %v4734_v56 }
 0x16a   : > { %4196 = vmatprep.mubr.bf16.mxu0 %v5407_v53  ;;  %4262 = vmatpush3.bf16.msra.mxu1 %v4732_v33 }
 0x16b   : > { %4255 = vmatprep.subr.bf16.mxu1 %v4735_v28 }
 0x16e   : > { %4263 = vmatpush3.bf16.msra.mxu1 %v4735_v28 }
 0x16f   : > { %4256 = vmatprep.subr.bf16.mxu1 %v4736_v29 }
 0x170   : > { %3989 = vmatmul.mubr.bf16.gmra.mrb[8].mxu1 %v4737_v12 }
 0x171   : > { %4197 = vmatmul.mubr.bf16.gmra.mrb[24].mxu0 %v1636_v8  ;;  %3992 = vmatprep.mubr.bf16.mxu1 %v4738_v52 }
 0x172   : > { %4200 = vmatprep.mubr.bf16.mxu0 %v2438_v60  ;;  %4264 = vmatpush3.bf16.msra.mxu1 %v4736_v29 }
 0x173   : > { %4257 = vmatprep.subr.bf16.mxu1 %v4739_v63 }
 0x176   : > { %4265 = vmatpush3.bf16.msra.mxu1 %v4739_v63 }
 0x177   : > { %4258 = vmatprep.subr.bf16.mxu1 %v4740_v39 }
 0x178   : > { %3993 = vmatmul.mubr.bf16.gmra.mrb[12].mxu1 %v4741_v23 }
 0x179   : > { %4201 = vmatmul.mubr.bf16.gmra.mrb[28].mxu0 %v2446_v17  ;;  %3996 = vmatprep.mubr.bf16.mxu1 %v4742_v2 }
 0x17a   : > { %4220 = vmatprep.mubr.bf16.mxu0 %v5349_v58  ;;  %4266 = vmatpush3.bf16.msra.mxu1 %v4740_v39  ;;  %v2709_v58 = vrot.slane %v5566_v3, 1 }
 0x17b   : > { %4259 = vmatprep.subr.bf16.mxu1 %v4743_v16 }
 0x17e   : > { %4267 = vmatpush3.bf16.msra.mxu1 %v4743_v16 }
 0x180   : > { %3997 = vmatmul.mubr.bf16.gmra.mrb[16].mxu1 %v4744_v31 }
 0x181   : > { %4221 = vmatmul.mubr.bf16.vlgmr.msra.gmra.mrb[0].mxu0 %v5357_v0  ;;  %4000 = vmatprep.mubr.bf16.mxu1 %v5313_v26  ;;  %v2707_v26 = vrot.slane %v5527_v38, 1 }
 0x182   : > { %4224 = vmatprep.mubr.bf16.mxu0 %v5380_v24 }
 0x183   : > { %v2710_v0 = vsel %vm1059_vm1, %v2707_v26, %v2709_v58 }
 0x188   : > { %4001 = vmatmul.mubr.bf16.gmra.mrb[20].mxu1 %v5330_v40  ;;  %v1641_v40 = vshll.u32 %v5475_v9, 16 }
 0x189   : > { %4225 = vmatmul.mubr.bf16.gmra.mrb[4].mxu0 %v5389_v30  ;;  %4004 = vmatprep.mubr.bf16.mxu1 %v5338_v49  ;;  %v2708_v49 = vsel %vm1059_vm1, %v5465_v1, %v2707_v26 }
 0x18a   : > { %4228 = vmatprep.mubr.bf16.mxu0 %v5404_v51 }
 0x190   : > { %4005 = vmatmul.mubr.bf16.gmra.mrb[24].mxu1 %v5361_v4 }
 0x191   : > { %4229 = vmatmul.mubr.bf16.gmra.mrb[8].mxu0 %v5410_v57  ;;  %4008 = vmatprep.mubr.bf16.mxu1 %v5367_v6  ;;  %v3031_v6 = vpop.permute.xlu1 %3030 }
 0x192   : > { %4232 = vmatprep.mubr.bf16.mxu0 %v5427_v18  ;;  %v3021_v4 = vpop.permute.xlu0 %3020 }
 0x196   : > { %v3026_v30 = vpop.permute.xlu0 %3025 }
 0x198   : > { %4009 = vmatmul.mubr.bf16.gmra.mrb[28].mxu1 %v5455_v50 }
 0x199   : > { %4233 = vmatmul.mubr.bf16.gmra.mrb[12].mxu0 %v5430_v22  ;;  %4044 = vmatprep.mubr.bf16.mxu1 %v5345_v55  ;;  %v1643_v55 = vrot.slane %v1641_v40, 1 }
 0x19a   : > { %4236 = vmatprep.mubr.bf16.mxu0 %v5438_v34  ;;  %v3036_v51 = vpop.permute.xlu1 %3035 }
 0x19b   : > { %v3041_v57 = vpop.permute.xlu0 %3040 }
 0x19e   : > { %v5616_v22 = vpop.permute.xlu1 %3045 }
 0x1a0   : > { %4045 = vmatmul.mubr.bf16.vlgmr.msra.gmra.mrb[16].mxu1 %v5352_v59  ;;  %v1644_v59 = vsel %vm459_vm0, %v5568_v44, %v1643_v55 }
 0x1a1   : > { %4237 = vmatmul.mubr.bf16.gmra.mrb[16].mxu0 %v5441_v36  ;;  %4048 = vmatprep.mubr.bf16.mxu1 %v5375_v19 }
 0x1a2   : > { %4240 = vmatprep.mubr.bf16.mxu0 %v5452_v48  ;;  %v3051_v48 = vpop.permute.xlu0 %3050  ;;  %v3056_v50 = vpop.permute.xlu1 %3055 }
 0x1a6   : > { %v5628_v38 = vpop.permute.xlu1 %3065 }
 0x1a8   : > { %4049 = vmatmul.mubr.bf16.gmra.mrb[20].mxu1 %v5383_v27 }
 0x1a9   : > { %4241 = vmatmul.mubr.bf16.gmra.mrb[20].mxu0 %v5458_v54  ;;  %4052 = vmatprep.mubr.bf16.mxu1 %v5400_v46 }
 0x1aa   : > { %4244 = vmatprep.mubr.bf16.mxu0 %v5471_v7  ;;  %v5640_v42 = vpop.permute.xlu1 %3075 }
 0x1ae   : > { %v5644_v25 = vpop.permute.xlu1 %3085 }
 0x1b0   : > { %4053 = vmatmul.mubr.bf16.gmra.mrb[24].mxu1 %v5407_v53 }
 0x1b1   : > { %4245 = vmatmul.mubr.bf16.gmra.mrb[24].mxu0 %v5479_v10  ;;  %4056 = vmatprep.mubr.bf16.mxu1 %v1636_v8  ;;  %v5626_v10 = vpop.permute.xlu0 %3060 }
 0x1b2   : > { %4248 = vmatprep.mubr.bf16.mxu0 %v2708_v49  ;;  %v5652_v47 = vpop.permute.xlu1 %3095 }
 0x1b5   : > { %v5636_v20 = vpop.permute.xlu0 %3070 }
 0x1b8   : > { %4057 = vmatmul.mubr.bf16.gmra.mrb[28].mxu1 %v1644_v59 }
 0x1b9   : > { %4249 = vmatmul.mubr.bf16.gmra.mrb[28].mxu0 %v2710_v0  ;;  %v5642_v11 = vpop.permute.xlu0 %3080  ;;  %v5658_v0 = vpop.permute.xlu1 %3105 }
 0x1bd   : > { %v5649_v14 = vpop.permute.xlu0 %3090 }
 0x1c1   : > { %v5655_v40 = vpop.permute.xlu0 %3100 }
 0x233   : > { %v3982_v19 = vpop.f32.mrb[0].mxu1 }
 0x234   : > { %v1453_v24 = vpop.f32.mrb[1].mxu1 }
 0x235   : > { %v3983_v27 = vpop.f32.mrb[2].mxu1 }
 0x236   : > { %v1456_v46 = vpop.f32.mrb[3].mxu1 }
 0x23b   : > { %v3986_v53 = vpop.f32.mrb[4].mxu1 }
 0x23c   : > { %v1469_v18 = vpop.f32.mrb[5].mxu1 }
 0x23d   : > { %v3987_v34 = vpop.f32.mrb[6].mxu1 }
 0x23e   : > { %v1472_v36 = vpop.f32.mrb[7].mxu1 }
 0x243   : > { %v5618_v54 = vpop.f32.mrb[8].mxu1 }
 0x244   : > { %v5620_v1 = vpop.f32.mrb[9].mxu1 }
 0x245   : > { %v5622_v7 = vpop.f32.mrb[10].mxu1 }
 0x246   : > { %v5624_v9 = vpop.f32.mrb[11].mxu1 }
 0x24b   : > { %v5630_v5 = vpop.f32.mrb[12].mxu1 }
 0x24c   : > { %v5632_v37 = vpop.f32.mrb[13].mxu1 }
 0x24d   : > { %v5634_v41 = vpop.f32.mrb[14].mxu1 }
 0x24e   : > { %v5638_v35 = vpop.f32.mrb[15].mxu1 }
 0x254   : > { %v4222_v15 = vpop.f32.mrb[0].mxu0 }
 0x255   : > { %v4268_v33 = vadd.f32 %v4222_v15, %v3982_v19  ;;  %v2795_v32 = vpop.f32.mrb[1].mxu0 }
 0x256   : > { %v4269_v45 = vadd.f32 %v2795_v32, %v1453_v24  ;;  %v4223_v43 = vpop.f32.mrb[2].mxu0 }
 0x257   : > { %2956 = vst [vmem:[%s5227_s6 + $0x10] sm:$0xff] %v4268_v33  ;;  %v4270_v56 = vadd.f32 %v4223_v43, %v3983_v27  ;;  %v2798_v13 = vpop.f32.mrb[3].mxu0  ;;  %v3180_v28 = vmul.f32 %v4268_v33, %v3031_v6 }
 0x258   : > { %2954 = vst [vmem:[%s5227_s6] sm:$0xff] %v4269_v45  ;;  %v3178_v3 = vmul.f32 %v4269_v45, %v3021_v4  ;;  %v4271_v44 = vadd.f32 %v2798_v13, %v1456_v46 }
 0x259   : > { %2957 = vst [vmem:[%s5227_s6 + $0x18] sm:$0xff] %v4270_v56  ;;  %v3181_v21 = vmul.f32 %v4270_v56, %v3036_v51  ;;  %v3253_v63 = vmul.f32 %v4268_v33, %v3180_v28 }
 0x25a   : > { %2955 = vst [vmem:[%s5227_s6 + $0x8] sm:$0xff] %v4271_v44  ;;  %v3179_v8 = vmul.f32 %v4271_v44, %v3026_v30  ;;  %v3251_v60 = vmul.f32 %v4269_v45, %v3178_v3 }
 0x25b   : > { %v3254_v16 = vmul.f32 %v4270_v56, %v3181_v21 }
 0x25c   : > { %v3211_v29 = vadd.f32 %v3179_v8, %v3178_v3  ;;  %v3252_v12 = vmul.f32 %v4271_v44, %v3179_v8  ;;  %v4226_v52 = vpop.f32.mrb[4].mxu0 }
 0x25d   : > { %v4272_v61 = vadd.f32 %v4226_v52, %v3986_v53  ;;  %v2811_v62 = vpop.f32.mrb[5].mxu0 }
 0x25e   : > { %v3212_v17 = vadd.f32 %v3211_v29, %v3180_v28  ;;  %v3283_v39 = vadd.f32 %v3252_v12, %v3251_v60  ;;  %v4273_v23 = vadd.f32 %v2811_v62, %v1469_v18  ;;  %v4227_v2 = vpop.f32.mrb[6].mxu0 }
 0x25f   : > { %2960 = vst [vmem:[%s5227_s6 + $0x30] sm:$0xff] %v4272_v61  ;;  %v4274_v31 = vadd.f32 %v4227_v2, %v3987_v34  ;;  %v2814_v26 = vpop.f32.mrb[7].mxu0  ;;  %v3184_v4 = vmul.f32 %v4272_v61, %v3051_v48 }
 0x260   : > { %v3284_v49 = vadd.f32 %v3283_v39, %v3253_v63  ;;  %2958 = vst [vmem:[%s5227_s6 + $0x20] sm:$0xff] %v4273_v23  ;;  %v3182_v55 = vmul.f32 %v4273_v23, %v3041_v57  ;;  %v3213_v58 = vadd.f32 %v3212_v17, %v3181_v21  ;;  %v4275_v59 = vadd.f32 %v2814_v26, %v1472_v36  ;;  %v5664_v36 = vpop.permute.xlu0 %3110 }
 0x261   : > { %2961 = vst [vmem:[%s5227_s6 + $0x38] sm:$0xff] %v4274_v31  ;;  %v3185_v30 = vmul.f32 %v4274_v31, %v3056_v50  ;;  %v3257_v48 = vmul.f32 %v4272_v61, %v3184_v4 }
 0x262   : > { %v3214_v6 = vadd.f32 %v3213_v58, %v3182_v55  ;;  %v3255_v19 = vmul.f32 %v4273_v23, %v3182_v55  ;;  %v3285_v24 = vadd.f32 %v3284_v49, %v3254_v16  ;;  %2959 = vst [vmem:[%s5227_s6 + $0x28] sm:$0xff] %v4275_v59  ;;  %v3183_v27 = vmul.f32 %v4275_v59, %v5616_v22  ;;  %v5667_v22 = vpop.permute.xlu1 %3115 }
 0x263   : > { %v3258_v50 = vmul.f32 %v4274_v31, %v3185_v30 }
 0x264   : > { %v3286_v46 = vadd.f32 %v3285_v24, %v3255_v19  ;;  %v3215_v51 = vadd.f32 %v3214_v6, %v3183_v27  ;;  %v3256_v53 = vmul.f32 %v4275_v59, %v3183_v27  ;;  %v4230_v18 = vpop.f32.mrb[8].mxu0  ;;  %v5679_v29 = vpop.permute.xlu0 %3120 }
 0x265   : > { %v4276_v57 = vadd.f32 %v4230_v18, %v5618_v54  ;;  %v2827_v34 = vpop.f32.mrb[9].mxu0 }
 0x266   : > { %v3216_v15 = vadd.f32 %v3215_v51, %v3184_v4  ;;  %v3287_v33 = vadd.f32 %v3286_v46, %v3256_v53  ;;  %v4277_v32 = vadd.f32 %v2827_v34, %v5620_v1  ;;  %v4231_v45 = vpop.f32.mrb[10].mxu0 }
 0x267   : > { %2964 = vst [vmem:[%s5227_s6 + $0x50] sm:$0xff] %v4276_v57  ;;  %v4278_v43 = vadd.f32 %v4231_v45, %v5622_v7  ;;  %v2830_v56 = vpop.f32.mrb[11].mxu0  ;;  %v3188_v28 = vmul.f32 %v4276_v57, %v5636_v20 }
 0x268   : > { %v3288_v13 = vadd.f32 %v3287_v33, %v3257_v48  ;;  %2962 = vst [vmem:[%s5227_s6 + $0x40] sm:$0xff] %v4277_v32  ;;  %v3186_v54 = vmul.f32 %v4277_v32, %v5626_v10  ;;  %v3217_v3 = vadd.f32 %v3216_v15, %v3185_v30  ;;  %v4279_v44 = vadd.f32 %v2830_v56, %v5624_v9  ;;  %v5681_v9 = vpop.permute.xlu1 %3125  ;;  %v5692_v58 = vpop.permute.xlu0 %3130 }
 0x269   : > { %2965 = vst [vmem:[%s5227_s6 + $0x58] sm:$0xff] %v4278_v43  ;;  %v3189_v7 = vmul.f32 %v4278_v43, %v5640_v42  ;;  %v3261_v63 = vmul.f32 %v4276_v57, %v3188_v28 }
 0x26a   : > { %v3218_v1 = vadd.f32 %v3217_v3, %v3186_v54  ;;  %v3259_v8 = vmul.f32 %v4277_v32, %v3186_v54  ;;  %v3289_v21 = vadd.f32 %v3288_v13, %v3258_v50  ;;  %2963 = vst [vmem:[%s5227_s6 + $0x48] sm:$0xff] %v4279_v44  ;;  %v3187_v60 = vmul.f32 %v4279_v44, %v5628_v38 }
 0x26b   : > { %v3262_v42 = vmul.f32 %v4278_v43, %v3189_v7 }
 0x26c   : > { %v3290_v12 = vadd.f32 %v3289_v21, %v3259_v8  ;;  %v3219_v52 = vadd.f32 %v3218_v1, %v3187_v60  ;;  %v3260_v10 = vmul.f32 %v4279_v44, %v3187_v60  ;;  %v4234_v61 = vpop.f32.mrb[12].mxu0  ;;  %v5704_v54 = vpop.permute.xlu0 %3140 }
 0x26d   : > { %v4280_v20 = vadd.f32 %v4234_v61, %v5630_v5  ;;  %v2843_v62 = vpop.f32.mrb[13].mxu0 }
 0x26e   : > { %v3220_v17 = vadd.f32 %v3219_v52, %v3188_v28  ;;  %v3291_v39 = vadd.f32 %v3290_v12, %v3260_v10  ;;  %v4281_v38 = vadd.f32 %v2843_v62, %v5632_v37  ;;  %v4235_v23 = vpop.f32.mrb[14].mxu0 }
 0x26f   : > { %2968 = vst [vmem:[%s5227_s6 + $0x70] sm:$0xff] %v4280_v20  ;;  %v4282_v2 = vadd.f32 %v4235_v23, %v5634_v41  ;;  %v2846_v16 = vpop.f32.mrb[15].mxu0  ;;  %v3192_v55 = vmul.f32 %v4280_v20, %v5649_v14  ;;  %v5696_v41 = vpop.permute.xlu1 %3135 }
 0x270   : > { %v3292_v31 = vadd.f32 %v3291_v39, %v3261_v63  ;;  %2966 = vst [vmem:[%s5227_s6 + $0x60] sm:$0xff] %v4281_v38  ;;  %v3190_v26 = vmul.f32 %v4281_v38, %v5642_v11  ;;  %v3221_v49 = vadd.f32 %v3220_v17, %v3189_v7  ;;  %v4283_v5 = vadd.f32 %v2846_v16, %v5638_v35 }
 0x271   : > { %2969 = vst [vmem:[%s5227_s6 + $0x78] sm:$0xff] %v4282_v2  ;;  %v3193_v19 = vmul.f32 %v4282_v2, %v5652_v47  ;;  %v3265_v18 = vmul.f32 %v4280_v20, %v3192_v55 }
 0x272   : > { %v3222_v37 = vadd.f32 %v3221_v49, %v3190_v26  ;;  %v3263_v59 = vmul.f32 %v4281_v38, %v3190_v26  ;;  %v3293_v4 = vadd.f32 %v3292_v31, %v3262_v42  ;;  %2967 = vst [vmem:[%s5227_s6 + $0x68] sm:$0xff] %v4283_v5  ;;  %v3191_v6 = vmul.f32 %v4283_v5, %v5644_v25 }
 0x273   : > { %v4046_v24 = vpop.f32.mrb[16].mxu1  ;;  %v3266_v47 = vmul.f32 %v4282_v2, %v3193_v19  ;;  %v5708_v8 = vpop.permute.xlu1 %3145 }
 0x274   : > { %v3294_v11 = vadd.f32 %v3293_v4, %v3263_v59  ;;  %v3223_v27 = vadd.f32 %v3222_v37, %v3191_v6  ;;  %v3264_v35 = vmul.f32 %v4283_v5, %v3191_v6  ;;  %v4238_v30 = vpop.f32.mrb[16].mxu0  ;;  %v1793_v14 = vpop.f32.mrb[17].mxu1 }
 0x275   : > { %v4284_v46 = vadd.f32 %v4238_v30, %v4046_v24  ;;  %v2859_v51 = vpop.f32.mrb[17].mxu0  ;;  %v4047_v53 = vpop.f32.mrb[18].mxu1 }
 0x276   : > { %v3224_v57 = vadd.f32 %v3223_v27, %v3192_v55  ;;  %v3295_v34 = vadd.f32 %v3294_v11, %v3264_v35  ;;  %v4285_v25 = vadd.f32 %v2859_v51, %v1793_v14  ;;  %v4239_v48 = vpop.f32.mrb[18].mxu0  ;;  %v1796_v15 = vpop.f32.mrb[19].mxu1 }
 0x277   : > { %2972 = vst [vmem:[%s5227_s6 + $0x90] sm:$0xff] %v4284_v46  ;;  %v4286_v33 = vadd.f32 %v4239_v48, %v4047_v53  ;;  %v2862_v32 = vpop.f32.mrb[19].mxu0  ;;  %v3196_v13 = vmul.f32 %v4284_v46, %v5664_v36  ;;  %v3151_v5 = vpop.permute.xlu0 %3150 }
 0x278   : > { %v3296_v45 = vadd.f32 %v3295_v34, %v3265_v18  ;;  %2970 = vst [vmem:[%s5227_s6 + $0x80] sm:$0xff] %v4285_v25  ;;  %v3194_v50 = vmul.f32 %v4285_v25, %v5655_v40  ;;  %v3225_v43 = vadd.f32 %v3224_v57, %v3193_v19  ;;  %v4287_v56 = vadd.f32 %v2862_v32, %v1796_v15  ;;  %v3156_v6 = vpop.permute.xlu1 %3155 }
 0x279   : > { %2973 = vst [vmem:[%s5227_s6 + $0x98] sm:$0xff] %v4286_v33  ;;  %v3197_v21 = vmul.f32 %v4286_v33, %v5667_v22  ;;  %v3269_v62 = vmul.f32 %v4284_v46, %v3196_v13 }
 0x27a   : > { %v3226_v3 = vadd.f32 %v3225_v43, %v3194_v50  ;;  %v3267_v44 = vmul.f32 %v4285_v25, %v3194_v50  ;;  %v3297_v28 = vadd.f32 %v3296_v45, %v3266_v47  ;;  %2971 = vst [vmem:[%s5227_s6 + $0x88] sm:$0xff] %v4287_v56  ;;  %v3195_v1 = vmul.f32 %v4287_v56, %v5658_v0 }
 0x27b   : > { %v4050_v60 = vpop.f32.mrb[20].mxu1  ;;  %v3270_v22 = vmul.f32 %v4286_v33, %v3197_v21  ;;  %v3161_v50 = vpop.permute.xlu0 %3160 }
 0x27c   : > { %v3298_v40 = vadd.f32 %v3297_v28, %v3267_v44  ;;  %v3227_v7 = vadd.f32 %v3226_v3, %v3195_v1  ;;  %v3268_v12 = vmul.f32 %v4287_v56, %v3195_v1  ;;  %v4242_v52 = vpop.f32.mrb[20].mxu0  ;;  %v1809_v36 = vpop.f32.mrb[21].mxu1 }
 0x27d   : > { %v4288_v10 = vadd.f32 %v4242_v52, %v4050_v60  ;;  %v2875_v61 = vpop.f32.mrb[21].mxu0  ;;  %v4051_v20 = vpop.f32.mrb[22].mxu1 }
 0x27e   : > { %v3228_v63 = vadd.f32 %v3227_v7, %v3196_v13  ;;  %v3299_v17 = vadd.f32 %v3298_v40, %v3268_v12  ;;  %v4289_v0 = vadd.f32 %v2875_v61, %v1809_v36  ;;  %v4243_v39 = vpop.f32.mrb[22].mxu0  ;;  %v1812_v38 = vpop.f32.mrb[23].mxu1 }
 0x27f   : > { %2976 = vst [vmem:[%s5227_s6 + $0xb0] sm:$0xff] %v4288_v10  ;;  %v4290_v23 = vadd.f32 %v4243_v39, %v4051_v20  ;;  %v2878_v42 = vpop.f32.mrb[23].mxu0  ;;  %v3200_v49 = vmul.f32 %v4288_v10, %v5692_v58  ;;  %v3166_v44 = vpop.permute.xlu1 %3165 }
 0x280   : > { %v3300_v2 = vadd.f32 %v3299_v17, %v3269_v62  ;;  %2974 = vst [vmem:[%s5227_s6 + $0xa0] sm:$0xff] %v4289_v0  ;;  %v3198_v16 = vmul.f32 %v4289_v0, %v5679_v29  ;;  %v3229_v31 = vadd.f32 %v3228_v63, %v3197_v21  ;;  %v4291_v26 = vadd.f32 %v2878_v42, %v1812_v38  ;;  %v3171_v38 = vpop.permute.xlu0 %3170 }
 0x281   : > { %2977 = vst [vmem:[%s5227_s6 + $0xb8] sm:$0xff] %v4290_v23  ;;  %v3201_v19 = vmul.f32 %v4290_v23, %v5696_v41  ;;  %v3273_v51 = vmul.f32 %v4288_v10, %v3200_v49 }
 0x282   : > { %v3230_v55 = vadd.f32 %v3229_v31, %v3198_v16  ;;  %v3271_v37 = vmul.f32 %v4289_v0, %v3198_v16  ;;  %v3301_v59 = vadd.f32 %v3300_v2, %v3270_v22  ;;  %2975 = vst [vmem:[%s5227_s6 + $0xa8] sm:$0xff] %v4291_v26  ;;  %v3199_v4 = vmul.f32 %v4291_v26, %v5681_v9 }
 0x283   : > { %v4054_v24 = vpop.f32.mrb[24].mxu1  ;;  %v3274_v41 = vmul.f32 %v4290_v23, %v3201_v19 }
 0x284   : > { %v3302_v11 = vadd.f32 %v3301_v59, %v3271_v37  ;;  %v3231_v27 = vadd.f32 %v3230_v55, %v3199_v4  ;;  %v3272_v29 = vmul.f32 %v4291_v26, %v3199_v4  ;;  %v4246_v35 = vpop.f32.mrb[24].mxu0  ;;  %v1825_v30 = vpop.f32.mrb[25].mxu1 }
 0x285   : > { %v4292_v58 = vadd.f32 %v4246_v35, %v4054_v24  ;;  %v2891_v14 = vpop.f32.mrb[25].mxu0  ;;  %v4055_v46 = vpop.f32.mrb[26].mxu1 }
 0x286   : > { %v3232_v53 = vadd.f32 %v3231_v27, %v3200_v49  ;;  %v3303_v18 = vadd.f32 %v3302_v11, %v3272_v29  ;;  %v4293_v57 = vadd.f32 %v2891_v14, %v1825_v30  ;;  %v4247_v9 = vpop.f32.mrb[26].mxu0  ;;  %v1828_v34 = vpop.f32.mrb[27].mxu1 }
 0x287   : > { %2980 = vst [vmem:[%s5227_s6 + $0xd0] sm:$0xff] %v4292_v58  ;;  %v4294_v25 = vadd.f32 %v4247_v9, %v4055_v46  ;;  %v2894_v48 = vpop.f32.mrb[27].mxu0  ;;  %v3204_v45 = vmul.f32 %v4292_v58, %v3151_v5  ;;  %v3176_v55 = vpop.permute.xlu1 %3175 }
 0x288   : > { %v3304_v15 = vadd.f32 %v3303_v18, %v3273_v51  ;;  %2978 = vst [vmem:[%s5227_s6 + $0xc0] sm:$0xff] %v4293_v57  ;;  %v3202_v47 = vmul.f32 %v4293_v57, %v5704_v54  ;;  %v3233_v33 = vadd.f32 %v3232_v53, %v3201_v19  ;;  %v4295_v32 = vadd.f32 %v2894_v48, %v1828_v34 }
 0x289   : > { %2981 = vst [vmem:[%s5227_s6 + $0xd8] sm:$0xff] %v4294_v25  ;;  %v3205_v28 = vmul.f32 %v4294_v25, %v3156_v6  ;;  %v3277_v10 = vmul.f32 %v4292_v58, %v3204_v45 }
 0x28a   : > { %v3234_v43 = vadd.f32 %v3233_v33, %v3202_v47  ;;  %v3275_v56 = vmul.f32 %v4293_v57, %v3202_v47  ;;  %v3305_v13 = vadd.f32 %v3304_v15, %v3274_v41  ;;  %2979 = vst [vmem:[%s5227_s6 + $0xc8] sm:$0xff] %v4295_v32  ;;  %v3203_v3 = vmul.f32 %v4295_v32, %v5708_v8 }
 0x28b   : > { %v4058_v1 = vpop.f32.mrb[28].mxu1  ;;  %v3278_v17 = vmul.f32 %v4294_v25, %v3205_v28 }
 0x28c   : > { %v3306_v21 = vadd.f32 %v3305_v13, %v3275_v56  ;;  %v3235_v60 = vadd.f32 %v3234_v43, %v3203_v3  ;;  %v3276_v54 = vmul.f32 %v4295_v32, %v3203_v3  ;;  %v4250_v40 = vpop.f32.mrb[28].mxu0  ;;  %v1841_v7 = vpop.f32.mrb[29].mxu1 }
 0x28d   : > { %v4296_v12 = vadd.f32 %v4250_v40, %v4058_v1  ;;  %v2907_v52 = vpop.f32.mrb[29].mxu0  ;;  %v4059_v36 = vpop.f32.mrb[30].mxu1 }
 0x28e   : > { %v3236_v61 = vadd.f32 %v3235_v60, %v3204_v45  ;;  %v3307_v20 = vadd.f32 %v3306_v21, %v3276_v54  ;;  %v4297_v62 = vadd.f32 %v2907_v52, %v1841_v7  ;;  %v4251_v8 = vpop.f32.mrb[30].mxu0  ;;  %v1844_v63 = vpop.f32.mrb[31].mxu1 }
 0x28f   : > { %2984 = vst [vmem:[%s5227_s6 + $0xf0] sm:$0xff] %v4296_v12  ;;  %v4298_v0 = vadd.f32 %v4251_v8, %v4059_v36  ;;  %v2910_v39 = vpop.f32.mrb[31].mxu0  ;;  %v3208_v16 = vmul.f32 %v4296_v12, %v3171_v38 }
 0x290   : > { %v3308_v22 = vadd.f32 %v3307_v20, %v3277_v10  ;;  %2982 = vst [vmem:[%s5227_s6 + $0xe0] sm:$0xff] %v4297_v62  ;;  %v3206_v23 = vmul.f32 %v4297_v62, %v3161_v50  ;;  %v3237_v42 = vadd.f32 %v3236_v61, %v3205_v28  ;;  %v4299_v2 = vadd.f32 %v2910_v39, %v1844_v63 }
 0x291   : > { %2985 = vst [vmem:[%s5227_s6 + $0xf8] sm:$0xff] %v4298_v0 }
 0x292   : > { %v3238_v31 = vadd.f32 %v3237_v42, %v3206_v23  ;;  %v3279_v26 = vmul.f32 %v4297_v62, %v3206_v23  ;;  %v3309_v49 = vadd.f32 %v3308_v22, %v3278_v17  ;;  %2983 = vst [vmem:[%s5227_s6 + $0xe8] sm:$0xff] %v4299_v2  ;;  %v3207_v5 = vmul.f32 %v4299_v2, %v3166_v44 }
 0x293   : > { %4844 = shalt.err (!%p4841_p1)
}
 0x294   : > { %s4845_s11 = scalar_lea.hbm %s5731_s21, 4096  ;;  %s4849_s30 = scalar_lea.hbm %s5836_s3, 8192 }
 0x295   : > { %p4846_p13 = scmp.ne.s32.totalorder %s5731_s21, %s4845_s11  ;;  %p4850_p2 = scmp.lt.u32.totalorder %s5731_s21, %s5836_s3 }
 0x296   : > { %p4851_p7 = scmp.lt.u32.totalorder %s4849_s30, %s4845_s11  ;;  %p4853_p11 = scmp.lt.u32.totalorder %s4845_s11, %s5731_s21 }
 0x297   : > { %p4847_p6 = pnand %p4846_p13, %p5861_p0 }
 0x298   : > { %p4852_p8 = por %p4851_p7, %p4850_p2 }
 0x299   : > { %p4848_p10 = pneg %p4847_p6 }
 0x29a   : > { %p4854_p4 = por %p4853_p11, %p4852_p8 }
 0x29c   : > { %p4855_p3 = pnand %p4854_p4, %p4848_p10 }
 0x29e   : > { %4858 = shalt.err (!%p4855_p3)
}
 0x29f   : > { %s4985_s24 = smov 128   ;;  %s4986_s12 = smov 8   ;;  %v3310_v37 = vadd.f32 %v3309_v49, %v3279_v26  ;;  %v3209_v59 = vmul.f32 %v4298_v0, %v3176_v55  ;;  %v3239_v4 = vadd.f32 %v3238_v31, %v3207_v5  ;;  %v3280_v6 = vmul.f32 %v4299_v2, %v3207_v5  ;;  %v3210_v41 = vld [vmem:[#allocation9] sm:$0x1]  ;;  %v3250_v15 = vld [vmem:[#allocation11] sm:$0x1] }
 0x2a0   : > { %4537 = dma.vmem_to_hbm [thread:$0]  (%p5861_p0), %s5733_s28, 4096, %s5731_s21, %s3323_s8, %s4985_s24, %s4985_s24, %s4986_s12   ;;  %v3281_v19 = vmul.f32 %v4296_v12, %v3208_v16 }
 0x2a1   : > { %v3240_v24 = vadd.f32 %v3239_v4, %v3208_v16  ;;  %v3311_v11 = vadd.f32 %v3310_v37, %v3280_v6  ;;  %v3282_v27 = vmul.f32 %v4298_v0, %v3209_v59  ;;  %s4987_s16 = smov [#allocation9]   ;;  %s4988_s28 = smov [#allocation11]  }
 0x2a2   : > { %s3352_s9 = sshll.u32 %s4987_s16, 4  ;;  %s3363_s21 = sshll.u32 %s4988_s28, 4  ;;  %s3353_s9 = int_to_ptr.vmem [resolvable:$true] %s3352_s9  ;;  %s5762_s21 = int_to_ptr.vmem [resolvable:$true] %s3363_s21 }
 0x2a3   : > { %v3312_v29 = vadd.f32 %v3311_v11, %v3281_v19  ;;  %v3241_v35 = vadd.f32 %v3240_v24, %v3209_v59  ;;  %s4859_s8 = scalar_lea.vmem %s3353_s9, 16  ;;  %p5862_p5 = scmp.ne.s32.totalorder %s5849_s27, 0 }
 0x2a4   : > { %p4860_p0 = scmp.ne.s32.totalorder %s3353_s9, %s4859_s8  ;;  %s4865_s15 = scalar_lea.vmem %s3353_s9, 32 }
 0x2a5   : > { %v3313_v30 = vadd.f32 %v3312_v29, %v3282_v27  ;;  %v3242_v58 = vrot.slane %v3241_v35, 4  ;;  %p4866_p1 = scmp.lt.s32.totalorder %s3353_s9, %s3353_s9  ;;  %p4867_p13 = scmp.lt.s32.totalorder %s4865_s15, %s4859_s8 }
 0x2a6   : > { %p4861_p9 = pnand %p4860_p0, %p5862_p5 }
 0x2a7   : > { %v3243_v14 = vadd.f32 %v3242_v58, %v3241_v35  ;;  %v3314_v46 = vrot.slane %v3313_v30, 4  ;;  %p4868_p6 = por %p4867_p13, %p4866_p1 }
 0x2a8   : > { %p4862_p12 = pneg %p4861_p9 }
 0x2a9   : > { %v3244_v51 = vrot.slane %v3243_v14, 2  ;;  %v3315_v53 = vadd.f32 %v3314_v46, %v3313_v30 }
 0x2aa   : > { %p4869_p10 = pnand %p4868_p6, %p4862_p12 }
 0x2ab   : > { %v3245_v18 = vadd.f32 %v3244_v51, %v3243_v14  ;;  %v3316_v57 = vrot.slane %v3315_v53, 2 }
 0x2ad   : > { %v3246_v9 = vrot.slane %v3245_v18, 1  ;;  %v3317_v34 = vadd.f32 %v3316_v57, %v3315_v53 }
 0x2af   : > { %v3247_v25 = vadd.f32 %v3246_v9, %v3245_v18  ;;  %v3318_v48 = vrot.slane %v3317_v34, 1 }
 0x2b1   : > { %v3248_v47 = vadd.f32 %v3247_v25, %v3210_v41  ;;  %v3319_v33 = vadd.f32 %v3318_v48, %v3317_v34 }
 0x2b3   : > { %3249 = vst [vmem:[#allocation9] sm:$0x1] %v3248_v47  ;;  %v3320_v32 = vadd.f32 %v3319_v33, %v3250_v15 }
 0x2b4   : > { %4872 = shalt.err (!%p4869_p10)
}
 0x2b5   : > { %s4873_s10 = scalar_lea.hbm %s5837_s4, 16 }
 0x2b6   : > { %p4874_p2 = scmp.ne.s32.totalorder %s5837_s4, %s4873_s10  ;;  %p4879_p11 = scmp.lt.u32.totalorder %s4873_s10, %s5837_s4 }
 0x2b8   : > { %p4875_p7 = pnand %p4874_p2, %p5862_p5 }
 0x2ba   : > { %p4876_p8 = pneg %p4875_p7 }
 0x2bc   : > { %p4881_p4 = pnand %p4879_p11, %p4876_p8 }
 0x2be   : > { %4884 = shalt.err (!%p4881_p4)
}
 0x2bf   : > { %4539 = dma.vmem_to_hbm [thread:$0]  (%p5862_p5), %s3353_s9, 16, %s5837_s4, [#allocation10]   ;;  %3321 = vst [vmem:[#allocation11] sm:$0x1] %v3320_v32 }
 0x2c0   : > { %s4885_s24 = scalar_lea.vmem %s5762_s21, 16  ;;  %s4891_s12 = scalar_lea.vmem %s5762_s21, 32 }
 0x2c1   : > { %p4886_p3 = scmp.ne.s32.totalorder %s5762_s21, %s4885_s24  ;;  %p4892_p12 = scmp.lt.s32.totalorder %s5762_s21, %s5762_s21 }
 0x2c2   : > { %p4893_p1 = scmp.lt.s32.totalorder %s4891_s12, %s4885_s24 }
 0x2c3   : > { %p4887_p0 = pnand %p4886_p3, %p5862_p5 }
 0x2c4   : > { %p4894_p13 = por %p4893_p1, %p4892_p12 }
 0x2c5   : > { %p4888_p9 = pneg %p4887_p0 }
 0x2c7   : > { %p4895_p6 = pnand %p4894_p13, %p4888_p9 }
 0x2c9   : > { %4898 = shalt.err (!%p4895_p6)
}
 0x2ca   : > { %s4899_s8 = scalar_lea.hbm %s5838_s5, 16 }
 0x2cb   : > { %p4900_p10 = scmp.ne.s32.totalorder %s5838_s5, %s4899_s8  ;;  %p4905_p8 = scmp.lt.u32.totalorder %s4899_s8, %s5838_s5 }
 0x2cd   : > { %p4901_p2 = pnand %p4900_p10, %p5862_p5 }
 0x2cf   : > { %p4902_p7 = pneg %p4901_p2 }
 0x2d1   : > { %p4907_p11 = pnand %p4905_p8, %p4902_p7 }
 0x2d3   : > { %4910 = shalt.err (!%p4907_p11)
}
 0x2d4   : > { %4541 = dma.vmem_to_hbm [thread:$0]  (%p5862_p5), %s5762_s21, 16, %s5838_s5, [#allocation10]  }
 0x2d5   : > { %4944 = dma.done.wait (%p5862_p5), [#allocation10], 32  }
 0x2d6   : > { %4946 = vsyncadd (%p5862_p5), [#allocation10], 4294967264 }
 0x2d7 PF: > { %s3383_s17 = sand.u32 1, %s4953_s18   ;;  %p5863_p4 = scmp.ne.s32.totalorder %s5851_s29, 0 }
 0x2d8   : > { %p5864_p3 = scmp.ge.s32.totalorder %s4973_s23, 2  ;;  %s3384_s13 = scalar_lea.sflag [#allocation4], %s3383_s17 }
 0x2da   : > { %p4559_p0 = pnand %p5864_p3, %p5863_p4 }
 0x2dc   : > { %4948 = dma.done.wait (!%p4559_p0), %s3384_s13, 4096  }
 0x2dd   : > { %4950 = vsyncadd (!%p4559_p0), %s3384_s13, 4294963200  ;;  %s24_s23 = sadd.s32 1, %s4973_s23   ;;  %s5865_s18 = smov %s4957_s19 }
 0x2de   : > { %p21_p9 = scmp.ge.s32.totalorder %s24_s23, 4   ;;  %s5866_s19 = smov %s4961_s20 }
 0x2df   : > { %s5867_s20 = smov %s5167_s7  ;;  %s5868_s21 = smov %s4969_s22 }
 0x2e0   : > { %s5869_s22 = smov %s5871_s14  ;;  %23 = sbr.rel (!%p21_p9) target bundleno = 10 (0xa), region = 115 }
 0x2e7   :  { %3389 = vsyncpa [#allocation3], 1 }
 0x2e8   :  { %3391 = vsyncpa [#allocation3 + $0x1], 1 }
 0x2e9   :  { %3392 = vsyncpa [#allocation6], 1 }
 0x2ea   :  { %3393 = vsyncpa [#allocation4], 1 }
 0x2eb   :  { %3395 = vsyncpa [#allocation4 + $0x1], 1 }
 0x2ec   :  { %3396 = vsyncpa [#allocation10], 1 }

// kernel: decoder_block_forward.6
= control target key start
LH: loop header
LB: loop body
LE: loop exit
PB: predicated region body
PF: predicated region fallthrough
CT: control target
= control target key end

     0   :  { %s6346_s0 = inlined_call_operand.hbm [shape: bf16[2,240,128], index: 0, kind: input, shape index: {}]   ;;  %s6347_s1 = inlined_call_operand.hbm [shape: bf16[9,128,128], index: 1, kind: input, shape index: {}]   ;;  %s6348_s2 = inlined_call_operand.hbm [shape: f32[208,1], index: 2, kind: input, shape index: {}]   ;;  %s6349_s3 = inlined_call_operand.hbm [shape: f32[2,208,128], index: 3, kind: output, shape index: {0}]   ;;  %s6350_s4 = inlined_call_operand.hbm [shape: f32[1,128], index: 4, kind: output, shape index: {1}]   ;;  %s6351_s5 = inlined_call_operand.hbm [shape: f32[1,128], index: 5, kind: output, shape index: {2}]  }
   0x1   :  { %6360 = sst [smem:[#allocation16_spill]] %s6347_s1 }
   0x2   :  { %11 = vsyncpa [#allocation3], 0 }
   0x3   :  { %13 = vsyncpa [#allocation3 + $0x1], 0 }
   0x4   :  { %14 = vsyncpa [#allocation6], 0 }
   0x5   :  { %15 = vsyncpa [#allocation4], 0 }
   0x6   :  { %17 = vsyncpa [#allocation4 + $0x1], 0 }
   0x7   :  { %18 = vsyncpa [#allocation10], 0  ;;  %s5207_s18 = smov 0   ;;  %s5209_s19 = smov 0  }
   0x8   :  { %s5211_s20 = smov 0   ;;  %s5213_s21 = smov 0  }
   0x9   :  { %s5215_s22 = smov 0   ;;  %s5217_s23 = smov 0  }
   0xa LB: > { %s3377_s24 = sadd.s32 4294967295, %s5159_s23   ;;  %s3378_s25 = sadd.s32 4294967294, %s5159_s23   ;;  %s5159_s23 = sphi %s5217_s23, %s24_s23   ;;  %s5155_s22 = sphi %s5215_s22, %s6382_s22   ;;  %s5151_s21 = sphi %s5213_s21, %s6381_s21   ;;  %s5147_s20 = sphi %s5211_s20, %s6380_s20   ;;  %s5143_s19 = sphi %s5209_s19, %s6379_s19   ;;  %s5139_s18 = sphi %s5207_s18, %s6378_s18  }
   0xb   : > { %p56_p0 = scmp.ne.s32.totalorder %s5143_s19, %s5139_s18  ;;  %p5241_p1 = scmp.eq.s32.totalorder %s3377_s24, 0 }
   0xc   : > { %p5245_p2 = scmp.eq.s32.totalorder %s3377_s24, 1  ;;  %p135_p3 = scmp.eq.s32.totalorder %s3378_s25, 1 }
   0xd   : > { %s6361_s26 = scalar_select %p5241_p1, 1, 0 }
   0xe   : > { %s6362_s27 = scalar_select %p5245_p2, 1, 0 }
   0xf   : > { %p5251_p4 = por %p5241_p1, %p56_p0  ;;  %p3379_p5 = scmp.ge.s32.totalorder %s5159_s23, 1 }
  0x10   : > { %p5256_p6 = por %p135_p3, %p56_p0  ;;  %p184_p7 = scmp.lt.s32.totalorder %s5159_s23, 3 }
  0x11   : > { %s6363_s28 = scalar_select %p5251_p4, 1, 0 }
  0x12   : > { %s6364_s29 = scalar_select %p5256_p6, 1, 0 }
  0x13   : > { %p5261_p8 = pnand %p3379_p5, %p184_p7  ;;  %s5161_s6 = smov [#allocation5]  }
  0x14   : > { %s196_s7 = sshll.u32 %s5161_s6, 4  ;;  %s5162_s9 = smov [#allocation7]   ;;  %s5265_s7 = int_to_ptr.vmem [resolvable:$true] %s196_s7 }
  0x15   : > { %p4731_p9 = pneg %p5261_p8  ;;  %s212_s10 = sshll.u32 %s5162_s9, 4  ;;  %s5276_s10 = int_to_ptr.vmem [resolvable:$true] %s212_s10 }
  0x16   : > { %s6367_s1 = sld [smem:[#allocation16_spill]] }
  0x17   : > { %p5272_p11 = pnand %p4731_p9, %p5241_p1 }
  0x19   : > { %p4933_p13 = pneg %p5272_p11 }
  0x1c   : > { %s4931_s13 = scalar_lea.hbm %s6367_s1, 9216 }
  0x1d   : > { %p4932_p12 = scmp.ne.s32.totalorder %s6367_s1, %s4931_s13  ;;  %p4938_p5 = scmp.lt.u32.totalorder %s4931_s13, %s6367_s1 }
  0x1f   : > { %p4934_p0 = pnand %p4933_p13, %p4932_p12 }
  0x21   : > { %p4935_p3 = pneg %p4934_p0 }
  0x23   : > { %p4940_p7 = pnand %p4938_p5, %p4935_p3 }
  0x25   : > { %4943 = shalt.err (!%p4940_p7)
}
  0x26   : > { %s4944_s24 = scalar_lea.vmem %s5265_s7, 9216  ;;  %p4952_p1 = scmp.lt.s32.totalorder %s5265_s7, %s5265_s7 }
  0x27   : > { %p4945_p9 = scmp.ne.s32.totalorder %s5265_s7, %s4944_s24  ;;  %p4953_p12 = scmp.lt.s32.totalorder %s4944_s24, %s4944_s24 }
  0x29   : > { %p4947_p10 = pnand %p4945_p9, %p4933_p13  ;;  %p4954_p0 = por %p4953_p12, %p4952_p1 }
  0x2b   : > { %p4948_p6 = pneg %p4947_p10 }
  0x2d   : > { %p4955_p4 = pnand %p4954_p0, %p4948_p6 }
  0x2f   : > { %4958 = shalt.err (!%p4955_p4)
}
  0x30   : > { %s6355_s25 = smov 64   ;;  %s6356_s6 = smov 4  }
  0x31   : > { %4734 = dma.hbm_to_vmem [thread:$0]  (!%p5272_p11), %s6367_s1, 9216, %s5265_s7, [#allocation6], %s6355_s25, %s6355_s25, %s6356_s6  }
  0x32   : > { %s4959_s14 = scalar_lea.hbm %s6348_s2, 3328 }
  0x33   : > { %p4960_p1 = scmp.ne.s32.totalorder %s6348_s2, %s4959_s14  ;;  %p4966_p10 = scmp.lt.u32.totalorder %s4959_s14, %s6348_s2 }
  0x35   : > { %p4962_p4 = pnand %p4960_p1, %p4933_p13 }
  0x37   : > { %p4963_p6 = pneg %p4962_p4 }
  0x39   : > { %p4968_p3 = pnand %p4966_p10, %p4963_p6 }
  0x3b   : > { %4971 = shalt.err (!%p4968_p3)
}
  0x3c   : > { %s4972_s7 = scalar_lea.vmem %s5276_s10, 3328  ;;  %p4980_p12 = scmp.lt.s32.totalorder %s5276_s10, %s5276_s10 }
  0x3d   : > { %p4973_p5 = scmp.ne.s32.totalorder %s5276_s10, %s4972_s7  ;;  %p4981_p0 = scmp.lt.s32.totalorder %s4972_s7, %s4972_s7 }
  0x3f   : > { %p4975_p7 = pnand %p4973_p5, %p4933_p13  ;;  %p4982_p1 = por %p4981_p0, %p4980_p12 }
  0x41   : > { %p4976_p9 = pneg %p4975_p7 }
  0x43   : > { %p4983_p4 = pnand %p4982_p1, %p4976_p9 }
  0x45   : > { %4986 = shalt.err (!%p4983_p4)
}
  0x46   : > { %s5165_s9 = smov 128   ;;  %s5166_s11 = smov 8  }
  0x47   : > { %4737 = dma.hbm_to_vmem [thread:$0]  (!%p5272_p11), %s6348_s2, 3328, %s5276_s10, [#allocation6], %s5165_s9, %s5165_s9, %s5166_s11  }
  0x48   : > { %s36_s14 = sadd.s32 1, %s5155_s22  ;;  %s43_s15 = sadd.s32 1, %s5147_s20 }
  0x49   : > { %p38_p13 = scmp.ge.s32.totalorder %s36_s14, 2  ;;  %p50_p6 = scmp.ne.s32.totalorder %s5147_s20, %s5143_s19 }
  0x4a   : > { %p51_p10 = scmp.eq.s32.totalorder %s5159_s23, 0  ;;  %p4748_p3 = scmp.lt.s32.totalorder %s5159_s23, 2 }
  0x4b   : > { %s6384_s14 = smov (%p38_p13, %s36_s14), 0  ;;  %p5343_p7 = por %p5245_p2, %p50_p6 }
  0x4c   : > { %p52_p5 = por %p51_p10, %p50_p6  ;;  %s40_s8 = ssub.s32 %s5155_s22, %s6384_s14 }
  0x4d   : > { %s6368_s16 = scalar_select %p5343_p7, 1, 0 }
  0x4e   : > { %s226_s17 = sand.u32 1, %s5147_s20   ;;  %p41_p9 = scmp.eq.s32.totalorder %s40_s8, 0 }
  0x4f   : > { %s4706_s10 = smul.u32 120, %s226_s17  ;;  %p5350_p11 = pnand %p4748_p3, %p52_p5 }
  0x50   : > { %s5355_s7 = scalar_select %p41_p9, %s5147_s20, %s43_s15  }
  0x51   : > { %s4707_s9 = smul.u32 1920, %s5155_s22  ;;  %s230_s11 = scalar_lea.vmem [#allocation2], %s4706_s10 }
  0x52   : > { %s237_s12 = sshll.u32 %s230_s11, 4  ;;  %s5365_s8 = scalar_lea.sflag [#allocation3], %s226_s17  ;;  %s5363_s12 = int_to_ptr.vmem [resolvable:$true] %s237_s12 }
  0x53   : > { %s5361_s6 = scalar_lea.hbm %s6346_s0, %s4707_s9  ;;  %p4989_p0 = pneg %p5350_p11 }
  0x54   : > { %s4987_s1 = scalar_lea.hbm %s5361_s6, 1920  ;;  %s4992_s10 = scalar_lea.hbm %s6346_s0, 3840 }
  0x55   : > { %p4988_p12 = scmp.ne.s32.totalorder %s5361_s6, %s4987_s1  ;;  %p4993_p13 = scmp.lt.u32.totalorder %s5361_s6, %s6346_s0 }
  0x56   : > { %p4994_p6 = scmp.lt.u32.totalorder %s4992_s10, %s4987_s1  ;;  %p4996_p3 = scmp.lt.u32.totalorder %s4987_s1, %s5361_s6 }
  0x57   : > { %p4990_p1 = pnand %p4989_p0, %p4988_p12 }
  0x58   : > { %p4995_p10 = por %p4994_p6, %p4993_p13 }
  0x59   : > { %p4991_p4 = pneg %p4990_p1 }
  0x5a   : > { %p4997_p5 = por %p4996_p3, %p4995_p10 }
  0x5c   : > { %p4998_p9 = pnand %p4997_p5, %p4991_p4 }
  0x5e   : > { %5001 = shalt.err (!%p4998_p9)
}
  0x5f   : > { %s5002_s17 = scalar_lea.vmem %s5363_s12, 1920  ;;  %s5167_s13 = smov [#allocation2]  }
  0x60   : > { %p5003_p12 = scmp.ne.s32.totalorder %s5363_s12, %s5002_s17  ;;  %s5007_s15 = sshll.u32 %s5167_s13, 4  ;;  %s5008_s15 = int_to_ptr.vmem [resolvable:$false] %s5007_s15 }
  0x61   : > { %s5009_s25 = scalar_lea.vmem %s5008_s15, 3840  ;;  %p5010_p7 = scmp.lt.s32.totalorder %s5363_s12, %s5008_s15 }
  0x62   : > { %p5005_p1 = pnand %p5003_p12, %p4989_p0  ;;  %p5011_p13 = scmp.lt.s32.totalorder %s5009_s25, %s5002_s17 }
  0x64   : > { %p5006_p2 = pneg %p5005_p1  ;;  %p5012_p6 = por %p5011_p13, %p5010_p7 }
  0x66   : > { %p5013_p10 = pnand %p5012_p6, %p5006_p2 }
  0x68   : > { %5016 = shalt.err (!%p5013_p10)
}
  0x69   : > { %s6370_s1 = smov 4   ;;  %s6371_s10 = smov 64  }
  0x6a   : > { %4741 = dma.hbm_to_vmem [thread:$0]  (!%p5350_p11), %s5361_s6, 1920, %s5363_s12, %s5365_s8, %s6371_s10, %s6371_s10, %s6370_s1  }
  0x6b   : > { %249 = sbr.rel (%p5261_p8) target bundleno = 906 (0x38a), region = 32  ;;  %s5399_s9 = sand.u32 (!%p5261_p8), 1, %s5143_s19  }
  0x6c   : > { %s4708_s11 = smul.u32 (!%p5261_p8), 120, %s5399_s9  ;;  %s252_s17 = scalar_lea.sflag (!%p5261_p8), [#allocation3], %s5399_s9 }
  0x6d   : > { %p6372_p2 = scmp.ne.s32.totalorder (!%p5261_p8), %s6363_s28, 0 }
  0x6e   : > { %s5403_s13 = scalar_lea.vmem (!%p5261_p8), [#allocation2], %s4708_s11 }
  0x72   : > { %5122 = dma.done.wait (%p6372_p2), %s252_s17, 1920  }
  0x73   : > { %5124 = vsyncadd (%p6372_p2), %s252_s17, 4294965376  ;;  %p6373_p7 = scmp.ne.s32.totalorder %s6361_s26, 0 }
  0x75   : > { %5126 = dma.done.wait (%p6373_p7), [#allocation6], 12544  }
  0x76   : > { %5128 = vsyncadd (%p6373_p7), [#allocation6], 4294954752  ;;  %s4709_s30 = smul.u32 208, %s5399_s9  ;;  %p293_p8 = scmp.eq.s32.totalorder %s5151_s21, 0 }
  0x77   : > { %v5168_v0 = vmov (%p293_p8), 0.0  }
  0x78   : > { %s5415_s6 = scalar_lea.vmem [#allocation8], %s4709_s30  ;;  %298 = sbr.rel (!%p293_p8) target bundleno = 127 (0x7f), region = 48  ;;  %299 = vst [vmem:[#allocation9] sm:$0x1] (%p293_p8), %v5168_v0  ;;  %300 = vst [vmem:[#allocation11] sm:$0x1] (%p293_p8), %v5168_v0 }
  0x7f PF: > { %v4820_v1 = vld [vmem:[#allocation5 + $0x40] sm:$0xff]   ;;  %v5169_v2 = vmov 0.0   ;;  %v4822_v4 = vld [vmem:[#allocation5 + $0x48] sm:$0xff]   ;;  %vm5170_vm0 = vmmov 0   ;;  %v4824_v6 = vld [vmem:[#allocation5 + $0x50] sm:$0xff]   ;;  %vm2116_vm3 = vcmask 1045504  }
  0x80   : > { %3688 = vmatprep.subr.bf16.mxu1 %v5169_v2  ;;  %3960 = vmatprep.subr.bf16.mxu0 %v5169_v2  ;;  %v4821_v3 = vld [vmem:[#allocation5 + $0x100] sm:$0xff]   ;;  %v4823_v5 = vld [vmem:[#allocation5 + $0x108] sm:$0xff]   ;;  %v4825_v7 = vld [vmem:[#allocation5 + $0x110] sm:$0xff]   ;;  %vm437_vm1 = vsmask.f32 7424  ;;  %vm959_vm4 = vcmask 1046528  }
  0x81   : > { %3689 = vmatpush3.bf16.msra.mxu1 %v4820_v1  ;;  %3704 = vmatprep.mubr.msk.bf16.mxu1 %vm5170_vm0, %v5169_v2  ;;  %v4826_v8 = vld [vmem:[#allocation5 + $0x58] sm:$0xff]   ;;  %v4828_v10 = vld [vmem:[#allocation5 + $0x60] sm:$0xff]   ;;  %v306_v12 = vld [vmem:[%s5403_s13] sm:$0xf]  ;;  %vm1513_vm2 = vsmask.f32 4352 }
  0x82   : > { %3961 = vmatpush3.bf16.msra.mxu0 %v4821_v3  ;;  %3690 = vmatprep.subr.bf16.mxu1 %v5169_v2  ;;  %v4827_v9 = vld [vmem:[#allocation5 + $0x118] sm:$0xff]   ;;  %v4829_v11 = vld [vmem:[#allocation5 + $0x120] sm:$0xff]   ;;  %v307_v13 = vld [vmem:[%s5403_s13 + $0x4] sm:$0xf]  ;;  %vm2385_vm5 = vsmask.f32 5376 }
  0x83   : > { %3962 = vmatprep.subr.bf16.mxu0 %v5169_v2  ;;  %3976 = vmatprep.mubr.msk.bf16.mxu0 %vm5170_vm0, %v5169_v2  ;;  %v308_v14 = vld [vmem:[%s5403_s13 + $0x8] sm:$0xf]  ;;  %v309_v15 = vld [vmem:[%s5403_s13 + $0xc] sm:$0xf]  ;;  %v5435_v16 = vcombine.low %v306_v12, %v307_v13  ;;  %v310_v17 = vld [vmem:[%s5403_s13 + $0x10] sm:$0xf] }
  0x84   : > { %v5438_v18 = vcombine.low %v307_v13, %v308_v14  ;;  %v4830_v19 = vld [vmem:[#allocation5 + $0x68] sm:$0xff]   ;;  %v5440_v20 = vcombine.low %v308_v14, %v309_v15  ;;  %v5442_v21 = vcombine.low %v309_v15, %v310_v17  ;;  %v311_v28 = vld [vmem:[%s5403_s13 + $0x14] sm:$0xf]  ;;  %v4832_v29 = vld [vmem:[#allocation5 + $0x70] sm:$0xff]   ;;  %vm1244_vm6 = vcmask 1044480   ;;  %s4710_s26 = smul.u32 3328, %s5151_s21 }
  0x85   : > { %3691 = vmatpush3.bf16.msra.mxu1 %v4822_v4  ;;  %v4831_v22 = vld [vmem:[#allocation5 + $0x128] sm:$0xff]   ;;  %v441_v23 = vshll.u32 %v5435_v16, 16  ;;  %v439_v30 = vshrl.u32 %v5435_v16, 16  ;;  %v4833_v33 = vld [vmem:[#allocation5 + $0x130] sm:$0xff]   ;;  %v4834_v40 = vld [vmem:[#allocation5 + $0x78] sm:$0xff]   ;;  %v5463_v41 = vcombine.low %v310_v17, %v311_v28  ;;  %s3227_s28 = sshll.u32 %s5415_s6, 4  ;;  %s6247_s28 = int_to_ptr.vmem [resolvable:$true] %s3227_s28 }
  0x86   : > { %3963 = vmatpush3.bf16.msra.mxu0 %v4823_v5  ;;  %3692 = vmatprep.subr.bf16.mxu1 %v5169_v2  ;;  %v1515_v24 = vshrl.u32 %v5438_v18, 16  ;;  %v1518_v25 = vshll.u32 %v5438_v18, 16  ;;  %v1523_v26 = vshrl.u32 %v5442_v21, 16  ;;  %v1526_v27 = vshll.u32 %v5442_v21, 16  ;;  %v312_v32 = vld [vmem:[%s5403_s13 + $0x18] sm:$0xf]  ;;  %s6245_s8 = scalar_lea.hbm %s6349_s3, %s4710_s26 }
  0x87   : > { %3964 = vmatprep.subr.bf16.mxu0 %v5169_v2  ;;  %v446_v31 = vshll.u32 %v5440_v20, 16  ;;  %v443_v34 = vrot.slane %v441_v23, 1  ;;  %v5455_v37 = vcombine.low %v311_v28, %v312_v32  ;;  %v4835_v42 = vld [vmem:[#allocation5 + $0x138] sm:$0xff]   ;;  %v313_v49 = vld [vmem:[%s5403_s13 + $0x1c] sm:$0xf]  ;;  %v450_v52 = vshrl.u32 %v5440_v20, 16 }
  0x88   : > { %v1517_v35 = vrot.slane %v1515_v24, 3  ;;  %v1520_v36 = vrot.slane %v1518_v25, 4  ;;  %v1525_v38 = vrot.slane %v1523_v26, 3  ;;  %v1528_v39 = vrot.slane %v1526_v27, 4  ;;  %v314_v50 = vld [vmem:[%s5403_s13 + $0x20] sm:$0xf] }
  0x89   : > { %3693 = vmatpush3.bf16.msra.mxu1 %v4824_v6  ;;  %v444_v43 = vor.u32 %v443_v34, %v439_v30  ;;  %v448_v44 = vrot.slane %v446_v31, 1  ;;  %v1532_v45 = vshrl.u32 %v5455_v37, 16  ;;  %v1535_v46 = vshll.u32 %v5455_v37, 16  ;;  %v4840_v55 = vld [vmem:[#allocation5 + $0x140] sm:$0xff]   ;;  %v4843_v0 = vld [vmem:[#allocation5 + $0x148] sm:$0xff]   ;;  %v4855_v15 = vld [vmem:[#allocation5 + $0x10] sm:$0xff]  }
  0x8a   : > { %3965 = vmatpush3.bf16.msra.mxu0 %v4825_v7  ;;  %3694 = vmatprep.subr.bf16.mxu1 %v5169_v2  ;;  %v1521_v47 = vor.u32 %v1520_v36, %v1517_v35  ;;  %v1529_v48 = vor.u32 %v1528_v39, %v1525_v38  ;;  %v454_v53 = vshll.u32 %v5463_v41, 16  ;;  %v5480_v58 = vcombine.low %v313_v49, %v314_v50  ;;  %v4844_v59 = vld [vmem:[#allocation5] sm:$0xff]   ;;  %v4848_v4 = vld [vmem:[#allocation5 + $0x8] sm:$0xff]   ;;  %v316_v6 = vld [vmem:[%s5403_s13 + $0x28] sm:$0xf]  ;;  %s3212_s21 = scalar_lea.sflag [#allocation4], %s5399_s9 }
  0x8b   : > { %3966 = vmatprep.subr.bf16.mxu0 %v5169_v2  ;;  %v449_v51 = vsel %vm437_vm1, %v444_v43, %v448_v44  ;;  %v1534_v56 = vrot.slane %v1532_v45, 3  ;;  %v1537_v57 = vrot.slane %v1535_v46, 4  ;;  %v452_v60 = vor.u32 %v450_v52, %v448_v44  ;;  %v315_v5 = vld [vmem:[%s5403_s13 + $0x24] sm:$0xf]  ;;  %v4849_v24 = vld [vmem:[#allocation5 + $0x158] sm:$0xff]   ;;  %v4852_v35 = vld [vmem:[#allocation5 + $0x160] sm:$0xff]  }
  0x8c   : > { %v1530_v54 = vsel %vm1513_vm2, %v1521_v47, %v1529_v48  ;;  %v456_v61 = vrot.slane %v454_v53, 1  ;;  %v5485_v62 = vcombine.low %v312_v32, %v313_v49  ;;  %v1541_v1 = vshrl.u32 %v5480_v58, 16  ;;  %v318_v30 = vld [vmem:[%s5403_s13 + $0x30] sm:$0xf]  ;;  %v320_v49 = vld [vmem:[%s5403_s13 + $0x38] sm:$0xf] }
  0x8d   : > { %3695 = vmatpush3.bf16.msra.mxu1 %v4826_v8  ;;  %v1538_v63 = vor.u32 %v1537_v57, %v1534_v56  ;;  %v1544_v3 = vshll.u32 %v5480_v58, 16  ;;  %v458_v8 = vshrl.u32 %v5463_v41, 16  ;;  %v5503_v14 = vcombine.low %v315_v5, %v316_v6  ;;  %v4861_v31 = vld [vmem:[#allocation5 + $0x18] sm:$0xff]   ;;  %v4856_v53 = vld [vmem:[#allocation5 + $0x168] sm:$0xff]   ;;  %s5017_s15 = scalar_lea.vmem %s6247_s28, 3328  ;;  %p6374_p0 = scmp.ne.s32.totalorder %s6368_s16, 0 }
  0x8e   : > { %3967 = vmatpush3.bf16.msra.mxu0 %v4827_v9  ;;  %3696 = vmatprep.subr.bf16.mxu1 %v5169_v2  ;;  %v457_v7 = vsel %vm437_vm1, %v452_v60, %v456_v61  ;;  %v462_v9 = vshll.u32 %v5485_v62, 16  ;;  %v1543_v12 = vrot.slane %v1541_v1, 3  ;;  %v5506_v17 = vcombine.low %v314_v50, %v315_v5  ;;  %v5546_v56 = vld [vmem:[%s5403_s13 + $0x68] sm:$0xf]  ;;  %p5018_p11 = scmp.ne.s32.totalorder %s6247_s28, %s5017_s15  ;;  %s5172_s25 = smov [#allocation8]  }
  0x8f   : > { %3968 = vmatprep.subr.bf16.mxu0 %v5169_v2  ;;  %v1546_v13 = vrot.slane %v1544_v3, 4  ;;  %v1550_v25 = vshrl.u32 %v5503_v14, 16  ;;  %v1553_v28 = vshll.u32 %v5503_v14, 16  ;;  %v466_v34 = vshrl.u32 %v5485_v62, 16  ;;  %s5021_s1 = sshll.u32 %s5172_s25, 4  ;;  %s5022_s1 = int_to_ptr.vmem [resolvable:$false] %s5021_s1 }
  0x90   : > { %v470_v32 = vshll.u32 %v5506_v17, 16  ;;  %p5019_p4 = pnand %p5018_p11, %p6374_p0  ;;  %s5023_s10 = scalar_lea.vmem %s5022_s1, 6656 }
  0x91   : > { %3697 = vmatpush3.bf16.msra.mxu1 %v4828_v10  ;;  %v1539_v10 = vsel %vm1513_vm2, %v1529_v48, %v1538_v63  ;;  %v1547_v23 = vor.u32 %v1546_v13, %v1543_v12  ;;  %v1552_v38 = vrot.slane %v1550_v25, 3  ;;  %v1555_v39 = vrot.slane %v1553_v28, 4  ;;  %v319_v48 = vld [vmem:[%s5403_s13 + $0x34] sm:$0xf]  ;;  %v321_v12 = vld [vmem:[%s5403_s13 + $0x3c] sm:$0xf]  ;;  %p5024_p5 = scmp.lt.s32.totalorder %s6247_s28, %s5022_s1  ;;  %p5025_p9 = scmp.lt.s32.totalorder %s5023_s10, %s5017_s15 }
  0x92   : > { %3969 = vmatpush3.bf16.msra.mxu0 %v4829_v11  ;;  %3698 = vmatprep.subr.bf16.mxu1 %v5169_v2  ;;  %v4845_v11 = vld [vmem:[#allocation5 + $0x150] sm:$0xff]   ;;  %v472_v43 = vrot.slane %v470_v32, 1  ;;  %p5020_p3 = pneg %p5019_p4 }
  0x93   : > { %3970 = vmatprep.subr.bf16.mxu0 %v5169_v2  ;;  %v1548_v36 = vsel %vm1513_vm2, %v1538_v63, %v1547_v23  ;;  %v1556_v50 = vor.u32 %v1555_v39, %v1552_v38  ;;  %v4859_v63 = vld [vmem:[#allocation5 + $0x170] sm:$0xff]   ;;  %p5026_p12 = por %p5025_p9, %p5024_p5 }
  0x94   : > { %v322_v13 = vld [vmem:[%s5403_s13 + $0x40] sm:$0xf]  ;;  %v5592_v39 = vld [vmem:[%s5403_s13 + $0x44] sm:$0xf] }
  0x95   : > { %3699 = vmatpush3.bf16.msra.mxu1 %v4830_v19  ;;  %v460_v19 = vor.u32 %v458_v8, %v456_v61  ;;  %v474_v61 = vshrl.u32 %v5506_v17, 16  ;;  %v4873_v8 = vld [vmem:[#allocation5 + $0x30] sm:$0xff]   ;;  %p5027_p1 = pnand %p5026_p12, %p5020_p3 }
  0x96   : > { %3971 = vmatpush3.bf16.msra.mxu0 %v4831_v22  ;;  %3700 = vmatprep.subr.bf16.mxu1 %v5169_v2  ;;  %v464_v22 = vrot.slane %v462_v9, 1 }
  0x97   : > { %3972 = vmatprep.subr.bf16.mxu0 %v5169_v2 }
  0x98   : > { %v468_v47 = vor.u32 %v466_v34, %v464_v22 }
  0x99   : > { %3701 = vmatpush3.bf16.msra.mxu1 %v4832_v29  ;;  %v317_v29 = vld [vmem:[%s5403_s13 + $0x2c] sm:$0xf] }
  0x9a   : > { %3973 = vmatpush3.bf16.msra.mxu0 %v4833_v33  ;;  %3702 = vmatprep.subr.bf16.mxu1 %v5169_v2  ;;  %v465_v33 = vsel %vm437_vm1, %v460_v19, %v464_v22  ;;  %v5530_v44 = vcombine.low %v316_v6, %v317_v29  ;;  %v473_v60 = vsel %vm437_vm1, %v468_v47, %v472_v43 }
  0x9b   : > { %3974 = vmatprep.subr.bf16.mxu0 %v5169_v2  ;;  %v5561_v6 = vcombine.low %v319_v48, %v320_v49 }
  0x9c   : > { %v478_v57 = vshll.u32 %v5530_v44, 16 }
  0x9d   : > { %3703 = vmatpush3.bf16.msra.mxu1 %v4834_v40  ;;  %v5527_v40 = vcombine.low %v317_v29, %v318_v30  ;;  %v1568_v19 = vshrl.u32 %v5561_v6, 16  ;;  %v1571_v22 = vshll.u32 %v5561_v6, 16 }
  0x9e   : > { %3975 = vmatpush3.bf16.msra.mxu0 %v4835_v42  ;;  %3756 = vmatprep.subr.bf16.mxu1 %v5169_v2  ;;  %v4866_v42 = vld [vmem:[#allocation5 + $0x20] sm:$0xff]   ;;  %v480_v9 = vrot.slane %v478_v57, 1 }
  0x9f   : > { %4028 = vmatprep.subr.bf16.mxu0 %v5169_v2  ;;  %v1562_v52 = vshll.u32 %v5527_v40, 16  ;;  %v1573_v34 = vrot.slane %v1571_v22, 4 }
  0xa0   : > { %3705 = vmatmul.mubr.bf16.vlgmr.msra.gmra.mrb[0].mxu1 %v449_v51  ;;  %v1559_v51 = vshrl.u32 %v5527_v40, 16 }
  0xa1   : > { %3977 = vmatmul.mubr.bf16.vlgmr.msra.gmra.mrb[0].mxu0 %v1530_v54  ;;  %3708 = vmatprep.mubr.msk.bf16.mxu1 %vm5170_vm0, %v5169_v2  ;;  %v4870_v54 = vld [vmem:[#allocation5 + $0x28] sm:$0xff]   ;;  %v1564_v5 = vrot.slane %v1562_v52, 4 }
  0xa2   : > { %4029 = vmatpush3.bf16.msra.mxu0 %v4840_v55  ;;  %3980 = vmatprep.mubr.msk.bf16.mxu0 %vm5170_vm0, %v5169_v2  ;;  %v5542_v55 = vld [vmem:[%s5403_s13 + $0x64] sm:$0xf] }
  0xa3   : > { %4030 = vmatprep.subr.bf16.mxu0 %v5169_v2  ;;  %3757 = vmatpush3.bf16.msra.mxu1 %v4844_v59  ;;  %v5552_v59 = vcombine.low %v5542_v55, %v5546_v56 }
  0xa4   : > { %3758 = vmatprep.subr.bf16.mxu1 %v5169_v2 }
  0xa6   : > { %4031 = vmatpush3.bf16.msra.mxu0 %v4843_v0  ;;  %v1557_v0 = vsel %vm1513_vm2, %v1547_v23, %v1556_v50 }
  0xa7   : > { %4032 = vmatprep.subr.bf16.mxu0 %v5169_v2  ;;  %3759 = vmatpush3.bf16.msra.mxu1 %v4848_v4  ;;  %v1561_v4 = vrot.slane %v1559_v51, 3 }
  0xa8   : > { %3709 = vmatmul.mubr.bf16.gmra.mrb[4].mxu1 %v457_v7  ;;  %3760 = vmatprep.subr.bf16.mxu1 %v5169_v2  ;;  %v5563_v7 = vcombine.low %v318_v30, %v319_v48  ;;  %v482_v30 = vshrl.u32 %v5530_v44, 16 }
  0xa9   : > { %3981 = vmatmul.mubr.bf16.gmra.mrb[4].mxu0 %v1539_v10  ;;  %3712 = vmatprep.mubr.msk.bf16.mxu1 %vm5170_vm0, %v5169_v2  ;;  %v4863_v10 = vld [vmem:[#allocation5 + $0x178] sm:$0xff]  }
  0xaa   : > { %3984 = vmatprep.mubr.msk.bf16.mxu0 %vm5170_vm0, %v5169_v2  ;;  %4033 = vmatpush3.bf16.msra.mxu0 %v4845_v11  ;;  %v476_v11 = vor.u32 %v474_v61, %v472_v43  ;;  %v486_v23 = vshll.u32 %v5563_v7, 16  ;;  %v490_v38 = vshrl.u32 %v5563_v7, 16 }
  0xab   : > { %4034 = vmatprep.subr.bf16.mxu0 %v5169_v2  ;;  %3761 = vmatpush3.bf16.msra.mxu1 %v4855_v15  ;;  %v1565_v15 = vor.u32 %v1564_v5, %v1561_v4 }
  0xac   : > { %3762 = vmatprep.subr.bf16.mxu1 %v5169_v2  ;;  %v481_v29 = vsel %vm437_vm1, %v476_v11, %v480_v9  ;;  %v5626_v11 = vld [vmem:[%s5403_s13 + $0x4c] sm:$0xf] }
  0xad   : > { %v1566_v32 = vsel %vm1513_vm2, %v1556_v50, %v1565_v15 }
  0xae   : > { %4035 = vmatpush3.bf16.msra.mxu0 %v4849_v24  ;;  %v4878_v24 = vld [vmem:[#allocation5 + $0x38] sm:$0xff]  }
  0xaf   : > { %4036 = vmatprep.subr.bf16.mxu0 %v5169_v2  ;;  %3763 = vmatpush3.bf16.msra.mxu1 %v4861_v31  ;;  %v5580_v31 = vcombine.low %v320_v49, %v321_v12 }
  0xb0   : > { %3713 = vmatmul.mubr.bf16.gmra.mrb[8].mxu1 %v465_v33  ;;  %3764 = vmatprep.subr.bf16.mxu1 %v5169_v2  ;;  %v1570_v33 = vrot.slane %v1568_v19, 3 }
  0xb1   : > { %3985 = vmatmul.mubr.bf16.gmra.mrb[8].mxu0 %v1548_v36  ;;  %3716 = vmatprep.mubr.msk.bf16.mxu1 %vm5170_vm0, %v5169_v2  ;;  %v488_v36 = vrot.slane %v486_v23, 1  ;;  %v494_v43 = vshll.u32 %v5580_v31, 16  ;;  %v498_v47 = vshrl.u32 %v5580_v31, 16 }
  0xb2   : > { %3988 = vmatprep.mubr.msk.bf16.mxu0 %vm5170_vm0, %v5169_v2  ;;  %4037 = vmatpush3.bf16.msra.mxu0 %v4852_v35  ;;  %v5587_v35 = vcombine.low %v321_v12, %v322_v13  ;;  %v1574_v48 = vor.u32 %v1573_v34, %v1570_v33  ;;  %v5643_v33 = vld [vmem:[%s5403_s13 + $0x54] sm:$0xf] }
  0xb3   : > { %4038 = vmatprep.subr.bf16.mxu0 %v5169_v2  ;;  %3765 = vmatpush3.bf16.msra.mxu1 %v4866_v42  ;;  %v484_v42 = vor.u32 %v482_v30, %v480_v9  ;;  %v4865_v30 = vld [vmem:[#allocation5 + $0x180] sm:$0xff]  }
  0xb4   : > { %3766 = vmatprep.subr.bf16.mxu1 %v5169_v2  ;;  %v1577_v49 = vshrl.u32 %v5587_v35, 16  ;;  %v1580_v50 = vshll.u32 %v5587_v35, 16  ;;  %v1575_v57 = vsel %vm1513_vm2, %v1565_v15, %v1574_v48 }
  0xb6   : > { %4039 = vmatpush3.bf16.msra.mxu0 %v4856_v53  ;;  %v489_v53 = vsel %vm437_vm1, %v484_v42, %v488_v36  ;;  %v1582_v61 = vrot.slane %v1580_v50, 4  ;;  %v4868_v42 = vld [vmem:[#allocation5 + $0x188] sm:$0xff]  }
  0xb7   : > { %4040 = vmatprep.subr.bf16.mxu0 %v5169_v2  ;;  %3767 = vmatpush3.bf16.msra.mxu1 %v4870_v54  ;;  %v5605_v54 = vcombine.low %v322_v13, %v5592_v39 }
  0xb8   : > { %3717 = vmatmul.mubr.bf16.gmra.mrb[12].mxu1 %v473_v60  ;;  %3768 = vmatprep.subr.bf16.mxu1 %v5169_v2  ;;  %v1579_v60 = vrot.slane %v1577_v49, 3 }
  0xb9   : > { %3989 = vmatmul.mubr.bf16.gmra.mrb[12].mxu0 %v1557_v0  ;;  %3720 = vmatprep.mubr.msk.bf16.mxu1 %vm5170_vm0, %v5169_v2  ;;  %v496_v0 = vrot.slane %v494_v43, 1  ;;  %v502_v4 = vshll.u32 %v5605_v54, 16 }
  0xba   : > { %3992 = vmatprep.mubr.msk.bf16.mxu0 %vm5170_vm0, %v5169_v2  ;;  %4041 = vmatpush3.bf16.msra.mxu0 %v4859_v63  ;;  %v492_v63 = vor.u32 %v490_v38, %v488_v36  ;;  %v5617_v5 = vor.u32 %v1582_v61, %v1579_v60  ;;  %v4872_v60 = vld [vmem:[#allocation5 + $0x190] sm:$0xff]  }
  0xbb   : > { %4042 = vmatprep.subr.bf16.mxu0 %v5169_v2  ;;  %3769 = vmatpush3.bf16.msra.mxu1 %v4873_v8  ;;  %v5620_v8 = vld [vmem:[%s5403_s13 + $0x48] sm:$0xf]  ;;  %v500_v12 = vor.u32 %v498_v47, %v496_v0  ;;  %v504_v13 = vrot.slane %v502_v4, 1 }
  0xbc   : > { %3770 = vmatprep.subr.bf16.mxu1 %v5169_v2  ;;  %v497_v9 = vsel %vm437_vm1, %v492_v63, %v496_v0  ;;  %v5632_v15 = vcombine.low %v5620_v8, %v5626_v11  ;;  %v4877_v4 = vld [vmem:[#allocation5 + $0x198] sm:$0xff]  }
  0xbd   : > { %v505_v23 = vsel %vm437_vm1, %v500_v12, %v504_v13 }
  0xbe   : > { %4043 = vmatpush3.bf16.msra.mxu0 %v4863_v10  ;;  %v1584_v10 = vsel %vm1513_vm2, %v1574_v48, %v5617_v5  ;;  %v514_v47 = vshrl.u32 %v5632_v15, 16 }
  0xbf   : > { %4096 = vmatprep.subr.bf16.mxu0 %v5169_v2  ;;  %3771 = vmatpush3.bf16.msra.mxu1 %v4878_v24  ;;  %v506_v24 = vshrl.u32 %v5605_v54, 16 }
  0xc0   : > { %3721 = vmatmul.mubr.bf16.gmra.mrb[16].mxu1 %v481_v29  ;;  %3824 = vmatprep.subr.bf16.mxu1 %v5169_v2  ;;  %v510_v29 = vshll.u32 %v5632_v15, 16 }
  0xc1   : > { %3993 = vmatmul.mubr.bf16.gmra.mrb[16].mxu0 %v1566_v32  ;;  %3724 = vmatprep.mubr.msk.bf16.mxu1 %vm5170_vm0, %v5169_v2  ;;  %v5640_v32 = vld [vmem:[%s5403_s13 + $0x50] sm:$0xf]  ;;  %v508_v34 = vor.u32 %v506_v24, %v504_v13  ;;  %v5679_v13 = vld [vmem:[%s5403_s13 + $0x60] sm:$0xf] }
  0xc2   : > { %3996 = vmatprep.mubr.msk.bf16.mxu0 %vm5170_vm0, %v5169_v2  ;;  %v512_v36 = vrot.slane %v510_v29, 1  ;;  %v5650_v38 = vcombine.low %v5640_v32, %v5643_v33 }
  0xc4   : > { %v513_v43 = vsel %vm437_vm1, %v508_v34, %v512_v36  ;;  %v518_v48 = vshll.u32 %v5650_v38, 16  ;;  %v516_v61 = vor.u32 %v514_v47, %v512_v36  ;;  %v4881_v34 = vld [vmem:[#allocation5 + $0x1a8] sm:$0xff]   ;;  %v4883_v47 = vld [vmem:[#allocation5 + $0x1b0] sm:$0xff]  }
  0xc6   : > { %v520_v63 = vrot.slane %v518_v48, 1 }
  0xc8   : > { %3725 = vmatmul.mubr.bf16.gmra.mrb[20].mxu1 %v489_v53  ;;  %v5659_v53 = vld [vmem:[%s5403_s13 + $0x58] sm:$0xf] }
  0xc9   : > { %3997 = vmatmul.mubr.bf16.gmra.mrb[20].mxu0 %v1575_v57  ;;  %3728 = vmatprep.mubr.msk.bf16.mxu1 %vm5170_vm0, %v5169_v2  ;;  %v5662_v57 = vld [vmem:[%s5403_s13 + $0x5c] sm:$0xf] }
  0xca   : > { %4000 = vmatprep.mubr.msk.bf16.mxu0 %vm5170_vm0, %v5169_v2  ;;  %v5670_v0 = vcombine.low %v5659_v53, %v5662_v57 }
  0xcc   : > { %v526_v12 = vshll.u32 %v5670_v0, 16 }
  0xce   : > { %v528_v29 = vrot.slane %v526_v12, 1 }
  0xd0   : > { %3729 = vmatmul.mubr.bf16.gmra.mrb[24].mxu1 %v497_v9  ;;  %v521_v9 = vsel %vm437_vm1, %v516_v61, %v520_v63  ;;  %v4885_v61 = vld [vmem:[#allocation5 + $0x1b8] sm:$0xff]  }
  0xd1   : > { %4001 = vmatmul.mubr.bf16.gmra.mrb[24].mxu0 %v1584_v10  ;;  %3732 = vmatprep.mubr.msk.bf16.mxu1 %vm5170_vm0, %v5169_v2  ;;  %v522_v10 = vshrl.u32 %v5650_v38, 16 }
  0xd2   : > { %4044 = vmatprep.mubr.msk.bf16.mxu0 %vm5170_vm0, %v5169_v2 }
  0xd3   : > { %v524_v24 = vor.u32 %v522_v10, %v520_v63 }
  0xd5   : > { %v529_v36 = vsel %vm437_vm1, %v524_v24, %v528_v29  ;;  %v4880_v24 = vld [vmem:[#allocation5 + $0x80] sm:$0xff]  }
  0xd8   : > { %3733 = vmatmul.mubr.bf16.gmra.mrb[28].mxu1 %v505_v23  ;;  %v4879_v23 = vld [vmem:[#allocation5 + $0x1a0] sm:$0xff]  }
  0xd9   : > { %4045 = vmatmul.mubr.bf16.vlgmr.msra.gmra.mrb[0].mxu0 %v5440_v20  ;;  %3736 = vmatprep.mubr.msk.bf16.mxu1 %vm5170_vm0, %v5169_v2 }
  0xda   : > { %4097 = vmatpush3.bf16.msra.mxu0 %v4865_v30  ;;  %4048 = vmatprep.mubr.msk.bf16.mxu0 %vm5170_vm0, %v5169_v2  ;;  %v5687_v30 = vcombine.low %v5679_v13, %v5542_v55 }
  0xdb   : > { %4098 = vmatprep.subr.bf16.mxu0 %v5169_v2 }
  0xde   : > { %4099 = vmatpush3.bf16.msra.mxu0 %v4868_v42  ;;  %v530_v42 = vshrl.u32 %v5670_v0, 16 }
  0xdf   : > { %4100 = vmatprep.subr.bf16.mxu0 %v5169_v2 }
  0xe0   : > { %3737 = vmatmul.mubr.bf16.gmra.mrb[32].mxu1 %v513_v43  ;;  %v534_v43 = vshll.u32 %v5687_v30, 16  ;;  %v532_v55 = vor.u32 %v530_v42, %v528_v29  ;;  %v4882_v29 = vld [vmem:[#allocation5 + $0x88] sm:$0xff]   ;;  %v4891_v42 = vld [vmem:[#allocation5 + $0xa0] sm:$0xff]  }
  0xe1   : > { %4049 = vmatmul.mubr.bf16.gmra.mrb[4].mxu0 %v5463_v41  ;;  %3740 = vmatprep.mubr.msk.bf16.mxu1 %vm5170_vm0, %v5169_v2 }
  0xe2   : > { %4052 = vmatprep.mubr.msk.bf16.mxu0 %vm5170_vm0, %v5169_v2  ;;  %4101 = vmatpush3.bf16.msra.mxu0 %v4872_v60  ;;  %v536_v48 = vrot.slane %v534_v43, 1  ;;  %v5701_v60 = vcombine.low %v5546_v56, %v5546_v56  ;;  %v4893_v43 = vld [vmem:[#allocation5 + $0xa8] sm:$0xff]  }
  0xe3   : > { %4102 = vmatprep.subr.bf16.mxu0 %v5169_v2 }
  0xe4   : > { %v537_v63 = vsel %vm437_vm1, %v532_v55, %v536_v48  ;;  %v4897_v55 = vld [vmem:[#allocation5 + $0xb8] sm:$0xff]  }
  0xe6   : > { %4103 = vmatpush3.bf16.msra.mxu0 %v4877_v4  ;;  %v538_v4 = vshrl.u32 %v5687_v30, 16 }
  0xe7   : > { %4104 = vmatprep.subr.bf16.mxu0 %v5169_v2 }
  0xe8   : > { %3741 = vmatmul.mubr.bf16.gmra.mrb[36].mxu1 %v521_v9  ;;  %v542_v9 = vshll.u32 %v5701_v60, 16  ;;  %v540_v10 = vor.u32 %v538_v4, %v536_v48  ;;  %v5766_v48 = vld [vmem:[%s5403_s13 + $0x6c] sm:$0xf]  ;;  %v2118_v4 = vrot.slane %v5455_v37, 2 }
  0xe9   : > { %4053 = vmatmul.mubr.bf16.gmra.mrb[8].mxu0 %v5485_v62  ;;  %3744 = vmatprep.mubr.msk.bf16.mxu1 %vm5170_vm0, %v5169_v2 }
  0xea   : > { %4056 = vmatprep.mubr.msk.bf16.mxu0 %vm5170_vm0, %v5169_v2  ;;  %4105 = vmatpush3.bf16.msra.mxu0 %v4879_v23  ;;  %v544_v12 = vrot.slane %v542_v9, 1 }
  0xeb   : > { %4106 = vmatprep.subr.bf16.mxu0 %v5169_v2 }
  0xec   : > { %v545_v23 = vsel %vm437_vm1, %v540_v10, %v544_v12  ;;  %v4890_v10 = vld [vmem:[#allocation5 + $0x1c0] sm:$0xff]   ;;  %v4892_v12 = vld [vmem:[#allocation5 + $0x1c8] sm:$0xff]  }
  0xee   : > { %4107 = vmatpush3.bf16.msra.mxu0 %v4881_v34  ;;  %v4884_v34 = vld [vmem:[#allocation5 + $0x90] sm:$0xff]  }
  0xef   : > { %4108 = vmatprep.subr.bf16.mxu0 %v5169_v2 }
  0xf0   : > { %3745 = vmatmul.mubr.bf16.gmra.mrb[40].mxu1 %v529_v36  ;;  %v4886_v36 = vld [vmem:[#allocation5 + $0x98] sm:$0xff]  }
  0xf1   : > { %4057 = vmatmul.mubr.bf16.gmra.mrb[12].mxu0 %v5506_v17  ;;  %3748 = vmatprep.mubr.msk.bf16.mxu1 %vm5170_vm0, %v5169_v2 }
  0xf2   : > { %4060 = vmatprep.mubr.msk.bf16.mxu0 %vm5170_vm0, %v5169_v2  ;;  %4109 = vmatpush3.bf16.msra.mxu0 %v4883_v47  ;;  %v4895_v47 = vld [vmem:[#allocation5 + $0xb0] sm:$0xff]  }
  0xf3   : > { %4110 = vmatprep.subr.bf16.mxu0 %v5169_v2 }
  0xf6   : > { %4111 = vmatpush3.bf16.msra.mxu0 %v4885_v61  ;;  %v3456_v61 = vcombine.low %v5546_v56, %v5766_v48  ;;  %v2120_v56 = vrot.slane %v5480_v58, 2 }
  0xf7   : > { %4164 = vmatprep.subr.bf16.mxu0 %v5169_v2 }
  0xf8   : > { %3749 = vmatmul.mubr.bf16.gmra.mrb[44].mxu1 %v537_v63  ;;  %v2117_v63 = vrot.slane %v5442_v21, 2 }
  0xf9   : > { %4061 = vmatmul.mubr.bf16.gmra.mrb[16].mxu0 %v5530_v44  ;;  %3752 = vmatprep.mubr.msk.bf16.mxu1 %vm5170_vm0, %v5169_v2 }
  0xfa   : > { %4064 = vmatprep.mubr.msk.bf16.mxu0 %vm5170_vm0, %v5169_v2  ;;  %v2119_v9 = vsel %vm2116_vm3, %v2117_v63, %v2118_v4  ;;  %v2126_v63 = vrot.slane %v5561_v6, 2 }
 0x100   : > { %3753 = vmatmul.mubr.bf16.gmra.mrb[48].mxu1 %v545_v23  ;;  %v2121_v23 = vsel %vm2116_vm3, %v2118_v4, %v2120_v56  ;;  %v4908_v4 = vld [vmem:[#allocation5 + $0x1f8] sm:$0xff]  }
 0x101   : > { %4065 = vmatmul.mubr.bf16.gmra.mrb[20].mxu0 %v5563_v7  ;;  %3772 = vmatprep.mubr.msk.bf16.mxu1 %vm5170_vm0, %v5169_v2 }
 0x102   : > { %4068 = vmatprep.mubr.msk.bf16.mxu0 %vm5170_vm0, %v5169_v2 }
 0x108   : > { %3773 = vmatmul.mubr.bf16.vlgmr.msra.gmra.mrb[0].mxu1 %v5435_v16 }
 0x109   : > { %4069 = vmatmul.mubr.bf16.gmra.mrb[24].mxu0 %v5580_v31  ;;  %3776 = vmatprep.mubr.msk.bf16.mxu1 %vm5170_vm0, %v5169_v2 }
 0x10a   : > { %4072 = vmatprep.mubr.msk.bf16.mxu0 %vm5170_vm0, %v5169_v2  ;;  %3825 = vmatpush3.bf16.msra.mxu1 %v4880_v24  ;;  %v4894_v24 = vld [vmem:[#allocation5 + $0x1d0] sm:$0xff]  }
 0x10b   : > { %3826 = vmatprep.subr.bf16.mxu1 %v5169_v2 }
 0x10e   : > { %3827 = vmatpush3.bf16.msra.mxu1 %v4882_v29  ;;  %v2122_v29 = vrot.slane %v5503_v14, 2 }
 0x10f   : > { %3828 = vmatprep.subr.bf16.mxu1 %v5169_v2 }
 0x110   : > { %3777 = vmatmul.mubr.bf16.gmra.mrb[4].mxu1 %v5440_v20 }
 0x111   : > { %4073 = vmatmul.mubr.bf16.gmra.mrb[28].mxu0 %v5605_v54  ;;  %3780 = vmatprep.mubr.msk.bf16.mxu1 %vm5170_vm0, %v5169_v2 }
 0x112   : > { %4076 = vmatprep.mubr.msk.bf16.mxu0 %vm5170_vm0, %v5169_v2  ;;  %3829 = vmatpush3.bf16.msra.mxu1 %v4884_v34  ;;  %v4896_v34 = vld [vmem:[#allocation5 + $0x1d8] sm:$0xff]  }
 0x113   : > { %3830 = vmatprep.subr.bf16.mxu1 %v5169_v2 }
 0x116   : > { %3831 = vmatpush3.bf16.msra.mxu1 %v4886_v36  ;;  %v2123_v36 = vsel %vm2116_vm3, %v2120_v56, %v2122_v29 }
 0x117   : > { %3832 = vmatprep.subr.bf16.mxu1 %v5169_v2 }
 0x118   : > { %3781 = vmatmul.mubr.bf16.gmra.mrb[8].mxu1 %v5463_v41 }
 0x119   : > { %4077 = vmatmul.mubr.bf16.gmra.mrb[32].mxu0 %v5632_v15  ;;  %3784 = vmatprep.mubr.msk.bf16.mxu1 %vm5170_vm0, %v5169_v2 }
 0x11a   : > { %4080 = vmatprep.mubr.msk.bf16.mxu0 %vm5170_vm0, %v5169_v2  ;;  %3833 = vmatpush3.bf16.msra.mxu1 %v4891_v42  ;;  %v4899_v42 = vld [vmem:[#allocation5 + $0x1e0] sm:$0xff]  }
 0x11b   : > { %3834 = vmatprep.subr.bf16.mxu1 %v5169_v2 }
 0x11e   : > { %3835 = vmatpush3.bf16.msra.mxu1 %v4893_v43  ;;  %v2124_v43 = vrot.slane %v5527_v40, 2 }
 0x11f   : > { %3836 = vmatprep.subr.bf16.mxu1 %v5169_v2 }
 0x120   : > { %3785 = vmatmul.mubr.bf16.gmra.mrb[12].mxu1 %v5485_v62 }
 0x121   : > { %4081 = vmatmul.mubr.bf16.gmra.mrb[36].mxu0 %v5650_v38  ;;  %3788 = vmatprep.mubr.msk.bf16.mxu1 %vm5170_vm0, %v5169_v2 }
 0x122   : > { %4084 = vmatprep.mubr.msk.bf16.mxu0 %vm5170_vm0, %v5169_v2  ;;  %3837 = vmatpush3.bf16.msra.mxu1 %v4895_v47  ;;  %v4903_v47 = vld [vmem:[#allocation5 + $0x1e8] sm:$0xff]  }
 0x123   : > { %3838 = vmatprep.subr.bf16.mxu1 %v5169_v2 }
 0x126   : > { %3839 = vmatpush3.bf16.msra.mxu1 %v4897_v55  ;;  %v2125_v55 = vsel %vm2116_vm3, %v2122_v29, %v2124_v43 }
 0x127   : > { %3892 = vmatprep.subr.bf16.mxu1 %v5169_v2 }
 0x128   : > { %3789 = vmatmul.mubr.bf16.gmra.mrb[16].mxu1 %v5506_v17 }
 0x129   : > { %4085 = vmatmul.mubr.bf16.gmra.mrb[40].mxu0 %v5670_v0  ;;  %3792 = vmatprep.mubr.msk.bf16.mxu1 %vm5170_vm0, %v5169_v2 }
 0x12a   : > { %4088 = vmatprep.mubr.msk.bf16.mxu0 %vm5170_vm0, %v5169_v2 }
 0x130   : > { %3793 = vmatmul.mubr.bf16.gmra.mrb[20].mxu1 %v5530_v44 }
 0x131   : > { %4089 = vmatmul.mubr.bf16.gmra.mrb[44].mxu0 %v5687_v30  ;;  %3796 = vmatprep.mubr.msk.bf16.mxu1 %vm5170_vm0, %v5169_v2 }
 0x132   : > { %4092 = vmatprep.mubr.msk.bf16.mxu0 %vm5170_vm0, %v5169_v2 }
 0x138   : > { %3797 = vmatmul.mubr.bf16.gmra.mrb[24].mxu1 %v5563_v7 }
 0x139   : > { %4093 = vmatmul.mubr.bf16.gmra.mrb[48].mxu0 %v3456_v61  ;;  %3800 = vmatprep.mubr.msk.bf16.mxu1 %vm5170_vm0, %v5169_v2  ;;  %v4906_v61 = vld [vmem:[#allocation5 + $0x1f0] sm:$0xff]  }
 0x13a   : > { %4112 = vmatprep.mubr.msk.bf16.mxu0 %vm5170_vm0, %v5169_v2 }
 0x140   : > { %3801 = vmatmul.mubr.bf16.gmra.mrb[28].mxu1 %v5580_v31 }
 0x141   : > { %4113 = vmatmul.mubr.bf16.vlgmr.msra.gmra.mrb[0].mxu0 %v2119_v9  ;;  %3804 = vmatprep.mubr.msk.bf16.mxu1 %vm5170_vm0, %v5169_v2  ;;  %v2127_v9 = vsel %vm2116_vm3, %v2124_v43, %v2126_v63  ;;  %v5850_v43 = vcombine.low %v5643_v33, %v5659_v53 }
 0x142   : > { %4165 = vmatpush3.bf16.msra.mxu0 %v4890_v10  ;;  %4116 = vmatprep.mubr.msk.bf16.mxu0 %vm5170_vm0, %v5169_v2  ;;  %v2128_v10 = vrot.slane %v5587_v35, 2 }
 0x143   : > { %4166 = vmatprep.subr.bf16.mxu0 %v5169_v2 }
 0x144   : > { %v2129_v56 = vsel %vm2116_vm3, %v2126_v63, %v2128_v10  ;;  %v5864_v63 = vcombine.low %v5662_v57, %v5679_v13  ;;  %v4914_v57 = vld [vmem:[#allocation5 + $0xe8] sm:$0xff]  }
 0x146   : > { %4167 = vmatpush3.bf16.msra.mxu0 %v4892_v12  ;;  %v5823_v12 = vcombine.low %v5592_v39, %v5620_v8  ;;  %v5837_v8 = vcombine.low %v5626_v11, %v5640_v32 }
 0x147   : > { %4168 = vmatprep.subr.bf16.mxu0 %v5169_v2 }
 0x148   : > { %3805 = vmatmul.mubr.bf16.gmra.mrb[32].mxu1 %v5605_v54  ;;  %v2130_v29 = vrot.slane %v5823_v12, 2 }
 0x149   : > { %4117 = vmatmul.mubr.bf16.gmra.mrb[4].mxu0 %v2121_v23  ;;  %3808 = vmatprep.mubr.msk.bf16.mxu1 %vm5170_vm0, %v5169_v2  ;;  %v960_v23 = vrot.slane %v5435_v16, 1  ;;  %v963_v16 = vrot.slane %v5463_v41, 1  ;;  %v965_v41 = vrot.slane %v5485_v62, 1  ;;  %v967_v62 = vrot.slane %v5506_v17, 1 }
 0x14a   : > { %4120 = vmatprep.mubr.msk.bf16.mxu0 %vm5170_vm0, %v5169_v2  ;;  %4169 = vmatpush3.bf16.msra.mxu0 %v4894_v24  ;;  %v961_v24 = vrot.slane %v5440_v20, 1  ;;  %v2131_v39 = vsel %vm2116_vm3, %v2128_v10, %v2130_v29  ;;  %v2132_v20 = vrot.slane %v5837_v8, 2  ;;  %v969_v17 = vrot.slane %v5530_v44, 1 }
 0x14b   : > { %4170 = vmatprep.subr.bf16.mxu0 %v5169_v2  ;;  %v966_v33 = vsel %vm959_vm4, %v963_v16, %v965_v41  ;;  %v968_v13 = vsel %vm959_vm4, %v965_v41, %v967_v62  ;;  %v971_v44 = vrot.slane %v5563_v7, 1 }
 0x14c   : > { %v964_v11 = vsel %vm959_vm4, %v961_v24, %v963_v16  ;;  %v2133_v32 = vsel %vm2116_vm3, %v2130_v29, %v2132_v20  ;;  %v334_v29 = vld [vmem:[%s5403_s13 + $0x70] sm:$0xf] }
 0x14e   : > { %4171 = vmatpush3.bf16.msra.mxu0 %v4896_v34  ;;  %v962_v34 = vsel %vm959_vm4, %v960_v23, %v961_v24  ;;  %v2138_v23 = vrot.slane %v5552_v59, 2  ;;  %v4918_v24 = vld [vmem:[#allocation5 + $0xf8] sm:$0xff]  }
 0x14f   : > { %4172 = vmatprep.subr.bf16.mxu0 %v5169_v2 }
 0x150   : > { %3809 = vmatmul.mubr.bf16.gmra.mrb[36].mxu1 %v5632_v15 }
 0x151   : > { %4121 = vmatmul.mubr.bf16.gmra.mrb[8].mxu0 %v2123_v36  ;;  %3812 = vmatprep.mubr.msk.bf16.mxu1 %vm5170_vm0, %v5169_v2  ;;  %v4901_v36 = vld [vmem:[#allocation5 + $0xc0] sm:$0xff]  }
 0x152   : > { %4124 = vmatprep.mubr.msk.bf16.mxu0 %vm5170_vm0, %v5169_v2  ;;  %4173 = vmatpush3.bf16.msra.mxu0 %v4899_v42  ;;  %v4904_v42 = vld [vmem:[#allocation5 + $0xc8] sm:$0xff]  }
 0x153   : > { %4174 = vmatprep.subr.bf16.mxu0 %v5169_v2 }
 0x156   : > { %4175 = vmatpush3.bf16.msra.mxu0 %v4903_v47  ;;  %v4907_v47 = vld [vmem:[#allocation5 + $0xd0] sm:$0xff]  }
 0x157   : > { %4176 = vmatprep.subr.bf16.mxu0 %v5169_v2 }
 0x158   : > { %3813 = vmatmul.mubr.bf16.gmra.mrb[40].mxu1 %v5650_v38 }
 0x159   : > { %4125 = vmatmul.mubr.bf16.gmra.mrb[12].mxu0 %v2125_v55  ;;  %3816 = vmatprep.mubr.msk.bf16.mxu1 %vm5170_vm0, %v5169_v2  ;;  %v2134_v55 = vrot.slane %v5850_v43, 2 }
 0x15a   : > { %4128 = vmatprep.mubr.msk.bf16.mxu0 %vm5170_vm0, %v5169_v2  ;;  %4177 = vmatpush3.bf16.msra.mxu0 %v4906_v61  ;;  %v4909_v61 = vld [vmem:[#allocation5 + $0xd8] sm:$0xff]  }
 0x15b   : > { %4178 = vmatprep.subr.bf16.mxu0 %v5169_v2  ;;  %v2135_v53 = vsel %vm2116_vm3, %v2132_v20, %v2134_v55  ;;  %v972_v20 = vsel %vm959_vm4, %v969_v17, %v971_v44 }
 0x15e   : > { %4179 = vmatpush3.bf16.msra.mxu0 %v4908_v4  ;;  %v4912_v4 = vld [vmem:[#allocation5 + $0xe0] sm:$0xff]  }
 0x15f   : > { %4232 = vmatprep.subr.bf16.mxu0 %v5169_v2 }
 0x160   : > { %3817 = vmatmul.mubr.bf16.gmra.mrb[44].mxu1 %v5670_v0 }
 0x161   : > { %4129 = vmatmul.mubr.bf16.gmra.mrb[16].mxu0 %v2127_v9  ;;  %3820 = vmatprep.mubr.msk.bf16.mxu1 %vm5170_vm0, %v5169_v2  ;;  %v2136_v9 = vrot.slane %v5864_v63, 2 }
 0x162   : > { %4132 = vmatprep.mubr.msk.bf16.mxu0 %vm5170_vm0, %v5169_v2 }
 0x163   : > { %v2137_v10 = vsel %vm2116_vm3, %v2134_v55, %v2136_v9  ;;  %v2386_v55 = vrot.slane %v1523_v26, 2 }
 0x168   : > { %3821 = vmatmul.mubr.bf16.gmra.mrb[48].mxu1 %v5687_v30 }
 0x169   : > { %4133 = vmatmul.mubr.bf16.gmra.mrb[20].mxu0 %v2129_v56  ;;  %3840 = vmatprep.mubr.msk.bf16.mxu1 %vm5170_vm0, %v5169_v2  ;;  %v4916_v56 = vld [vmem:[#allocation5 + $0xf0] sm:$0xff]  }
 0x16a   : > { %4136 = vmatprep.mubr.msk.bf16.mxu0 %vm5170_vm0, %v5169_v2 }
 0x170   : > { %3841 = vmatmul.mubr.bf16.vlgmr.msra.gmra.mrb[0].mxu1 %v962_v34  ;;  %v970_v34 = vsel %vm959_vm4, %v967_v62, %v969_v17  ;;  %v4911_v62 = vld [vmem:[#allocation5 + $0x200] sm:$0xff]   ;;  %v979_v17 = vrot.slane %v5650_v38, 1 }
 0x171   : > { %4137 = vmatmul.mubr.bf16.gmra.mrb[24].mxu0 %v2131_v39  ;;  %3844 = vmatprep.mubr.msk.bf16.mxu1 %vm5170_vm0, %v5169_v2  ;;  %v5887_v39 = vcombine.low %v5766_v48, %v334_v29  ;;  %v2401_v29 = vrot.slane %v1559_v51, 2  ;;  %v4919_v38 = vld [vmem:[#allocation5 + $0x220] sm:$0xff]   ;;  %v4920_v51 = vld [vmem:[#allocation5 + $0x228] sm:$0xff]  }
 0x172   : > { %4140 = vmatprep.mubr.msk.bf16.mxu0 %vm5170_vm0, %v5169_v2  ;;  %3893 = vmatpush3.bf16.msra.mxu1 %v4901_v36  ;;  %v2139_v36 = vsel %vm2116_vm3, %v2136_v9, %v2138_v23  ;;  %v2394_v9 = vrot.slane %v1544_v3, 3  ;;  %v2397_v3 = vrot.slane %v1550_v25, 2 }
 0x173   : > { %3894 = vmatprep.subr.bf16.mxu1 %v5169_v2  ;;  %v2140_v16 = vrot.slane %v5887_v39, 2 }
 0x176   : > { %3895 = vmatpush3.bf16.msra.mxu1 %v4904_v42  ;;  %v5899_v42 = vld [vmem:[%s5403_s13 + $0x74] ss:$0 sps:$4 sm:$0xff]  }
 0x177   : > { %3896 = vmatprep.subr.bf16.mxu1 %v5169_v2  ;;  %v2142_v7 = vrot.slane %v5899_v42, 2 }
 0x178   : > { %3845 = vmatmul.mubr.bf16.gmra.mrb[4].mxu1 %v964_v11  ;;  %v2141_v11 = vsel %vm2116_vm3, %v2138_v23, %v2140_v16 }
 0x179   : > { %4141 = vmatmul.mubr.bf16.gmra.mrb[28].mxu0 %v2133_v32  ;;  %3848 = vmatprep.mubr.msk.bf16.mxu1 %vm5170_vm0, %v5169_v2  ;;  %v973_v32 = vrot.slane %v5580_v31, 1  ;;  %v2143_v41 = vsel %vm2116_vm3, %v2140_v16, %v2142_v7  ;;  %v2390_v31 = vrot.slane %v1535_v46, 3  ;;  %v2393_v46 = vrot.slane %v1541_v1, 2 }
 0x17a   : > { %4144 = vmatprep.mubr.msk.bf16.mxu0 %vm5170_vm0, %v5169_v2  ;;  %3897 = vmatpush3.bf16.msra.mxu1 %v4907_v47 }
 0x17b   : > { %3898 = vmatprep.subr.bf16.mxu1 %v5169_v2  ;;  %v974_v47 = vsel %vm959_vm4, %v971_v44, %v973_v32 }
 0x17e   : > { %3899 = vmatpush3.bf16.msra.mxu1 %v4909_v61  ;;  %v2387_v61 = vrot.slane %v1526_v27, 3 }
 0x17f   : > { %3900 = vmatprep.subr.bf16.mxu1 %v5169_v2 }
 0x180   : > { %3849 = vmatmul.mubr.bf16.gmra.mrb[8].mxu1 %v966_v33  ;;  %v2389_v33 = vrot.slane %v1532_v45, 2  ;;  %v2388_v26 = vor.u32 %v2387_v61, %v2386_v55  ;;  %v2410_v55 = vrot.slane %v1580_v50, 3 }
 0x181   : > { %4145 = vmatmul.mubr.bf16.gmra.mrb[32].mxu0 %v2135_v53  ;;  %3852 = vmatprep.mubr.msk.bf16.mxu1 %vm5170_vm0, %v5169_v2  ;;  %v975_v53 = vrot.slane %v5605_v54, 1  ;;  %v977_v54 = vrot.slane %v5632_v15, 1  ;;  %v4915_v15 = vld [vmem:[#allocation5 + $0x210] sm:$0xff]  }
 0x182   : > { %4148 = vmatprep.mubr.msk.bf16.mxu0 %vm5170_vm0, %v5169_v2  ;;  %3901 = vmatpush3.bf16.msra.mxu1 %v4912_v4  ;;  %v2391_v4 = vor.u32 %v2390_v31, %v2389_v33  ;;  %v1586_v33 = vshrl.u32 %v5823_v12, 16  ;;  %v1589_v31 = vshll.u32 %v5823_v12, 16 }
 0x183   : > { %3902 = vmatprep.subr.bf16.mxu1 %v5169_v2  ;;  %v976_v27 = vsel %vm959_vm4, %v973_v32, %v975_v53  ;;  %v978_v1 = vsel %vm959_vm4, %v975_v53, %v977_v54  ;;  %v980_v25 = vsel %vm959_vm4, %v977_v54, %v979_v17  ;;  %v983_v32 = vrot.slane %v5687_v30, 1 }
 0x184   : > { %v2392_v45 = vsel %vm2385_vm5, %v2388_v26, %v2391_v4  ;;  %v985_v30 = vrot.slane %v5701_v60, 1  ;;  %v2413_v53 = vrot.slane %v1586_v33, 2  ;;  %v2414_v26 = vrot.slane %v1589_v31, 3 }
 0x185   : > { %v1245_v60 = vrot.slane %v5438_v18, 3 }
 0x186   : > { %3903 = vmatpush3.bf16.msra.mxu1 %v4914_v57  ;;  %v2395_v57 = vor.u32 %v2394_v9, %v2393_v46 }
 0x187   : > { %3904 = vmatprep.subr.bf16.mxu1 %v5169_v2 }
 0x188   : > { %3853 = vmatmul.mubr.bf16.gmra.mrb[12].mxu1 %v968_v13  ;;  %v4913_v13 = vld [vmem:[#allocation5 + $0x208] sm:$0xff]  }
 0x189   : > { %4149 = vmatmul.mubr.bf16.gmra.mrb[36].mxu0 %v2137_v10  ;;  %3856 = vmatprep.mubr.msk.bf16.mxu1 %vm5170_vm0, %v5169_v2  ;;  %v2396_v10 = vsel %vm2385_vm5, %v2391_v4, %v2395_v57  ;;  %v1246_v4 = vrot.slane %v5442_v21, 3  ;;  %v1248_v21 = vrot.slane %v5455_v37, 3 }
 0x18a   : > { %4152 = vmatprep.mubr.msk.bf16.mxu0 %vm5170_vm0, %v5169_v2  ;;  %3905 = vmatpush3.bf16.msra.mxu1 %v4916_v56  ;;  %v2398_v56 = vrot.slane %v1553_v28, 3 }
 0x18b   : > { %3906 = vmatprep.subr.bf16.mxu1 %v5169_v2  ;;  %v1247_v46 = vsel %vm1244_vm6, %v1245_v60, %v1246_v4  ;;  %v2434_v60 = vshrl.u32 %v5887_v39, 16 }
 0x18c   : > { %v2399_v23 = vor.u32 %v2398_v56, %v2397_v3  ;;  %v6016_v3 = vsel %vm1244_vm6, %v1246_v4, %v1248_v21  ;;  %v2437_v4 = vshll.u32 %v5887_v39, 16 }
 0x18e   : > { %3907 = vmatpush3.bf16.msra.mxu1 %v4918_v24  ;;  %v4917_v24 = vld [vmem:[#allocation5 + $0x218] sm:$0xff]   ;;  %v2400_v28 = vsel %vm2385_vm5, %v2395_v57, %v2399_v23 }
 0x18f   : > { %4300 = vmatprep.subr.bf16.mxu1 %v5169_v2 }
 0x190   : > { %3857 = vmatmul.mubr.bf16.gmra.mrb[16].mxu1 %v970_v34  ;;  %v2402_v34 = vrot.slane %v1562_v52, 3 }
 0x191   : > { %4153 = vmatmul.mubr.bf16.gmra.mrb[40].mxu0 %v2139_v36  ;;  %3860 = vmatprep.mubr.msk.bf16.mxu1 %vm5170_vm0, %v5169_v2  ;;  %v981_v36 = vrot.slane %v5670_v0, 1  ;;  %v4921_v0 = vld [vmem:[#allocation5 + $0x230] sm:$0xff]  }
 0x192   : > { %4156 = vmatprep.mubr.msk.bf16.mxu0 %vm5170_vm0, %v5169_v2  ;;  %v2403_v44 = vor.u32 %v2402_v34, %v2401_v29  ;;  %v1616_v29 = vshll.u32 %v5864_v63, 16  ;;  %v4925_v34 = vld [vmem:[#allocation5 + $0x110] sm:$0xff]  }
 0x193   : > { %v982_v52 = vsel %vm959_vm4, %v979_v17, %v981_v36  ;;  %v4924_v17 = vld [vmem:[#allocation5 + $0x108] sm:$0xff]  }
 0x194   : > { %v2404_v16 = vsel %vm2385_vm5, %v2399_v23, %v2403_v44  ;;  %v1250_v23 = vrot.slane %v5480_v58, 3  ;;  %v2936_v58 = vld [vmem:[#allocation7 + $0x8] sm:$0xff] }
 0x198   : > { %3861 = vmatmul.mubr.bf16.gmra.mrb[20].mxu1 %v972_v20  ;;  %v2405_v20 = vrot.slane %v1568_v19, 2  ;;  %v4922_v19 = vld [vmem:[#allocation5 + $0x238] sm:$0xff]  }
 0x199   : > { %4157 = vmatmul.mubr.bf16.gmra.mrb[44].mxu0 %v2141_v11  ;;  %3864 = vmatprep.mubr.msk.bf16.mxu1 %vm5170_vm0, %v5169_v2  ;;  %v2406_v11 = vrot.slane %v1571_v22, 3  ;;  %v984_v22 = vsel %vm959_vm4, %v981_v36, %v983_v32  ;;  %v6034_v36 = vsel %vm1244_vm6, %v1248_v21, %v1250_v23  ;;  %v2439_v21 = vrot.slane %v2437_v4, 3  ;;  %v2960_v4 = vld [vmem:[#allocation7 + $0xc8] sm:$0xff] }
 0x19a   : > { %4160 = vmatprep.mubr.msk.bf16.mxu0 %vm5170_vm0, %v5169_v2 }
 0x19b   : > { %v2407_v7 = vor.u32 %v2406_v11, %v2405_v20  ;;  %v2937_v20 = vld [vmem:[#allocation7 + $0x10] sm:$0xff]  ;;  %v1252_v11 = vrot.slane %v5503_v14, 3 }
 0x1a0   : > { %3865 = vmatmul.mubr.bf16.gmra.mrb[24].mxu1 %v974_v47  ;;  %v2408_v47 = vsel %vm2385_vm5, %v2403_v44, %v2407_v7 }
 0x1a1   : > { %4161 = vmatmul.mubr.bf16.gmra.mrb[48].mxu0 %v2143_v41  ;;  %3868 = vmatprep.mubr.msk.bf16.mxu1 %vm5170_vm0, %v5169_v2  ;;  %v2409_v41 = vrot.slane %v1577_v49, 2  ;;  %v986_v49 = vsel %vm959_vm4, %v983_v32, %v985_v30 }
 0x1a2   : > { %4180 = vmatprep.mubr.msk.bf16.mxu0 %vm5170_vm0, %v5169_v2 }
 0x1a3   : > { %v2411_v61 = vor.u32 %v2410_v55, %v2409_v41  ;;  %v6052_v41 = vsel %vm1244_vm6, %v1250_v23, %v1252_v11  ;;  %v2446_v23 = vshll.u32 %v5899_v42, 16 }
 0x1a5   : > { %v2412_v50 = vsel %vm2385_vm5, %v2407_v7, %v2411_v61  ;;  %v1622_v7 = vshrl.u32 %v5552_v59, 16 }
 0x1a7   : > { %v2429_v55 = vrot.slane %v1622_v7, 2 }
 0x1a8   : > { %3869 = vmatmul.mubr.bf16.gmra.mrb[28].mxu1 %v976_v27  ;;  %v2415_v27 = vor.u32 %v2414_v26, %v2413_v53  ;;  %v2941_v53 = vld [vmem:[#allocation7 + $0x30] sm:$0xff] }
 0x1a9   : > { %4181 = vmatmul.mubr.bf16.vlgmr.msra.gmra.mrb[0].mxu0 %v2392_v45  ;;  %3872 = vmatprep.mubr.msk.bf16.mxu1 %vm5170_vm0, %v5169_v2  ;;  %v1595_v45 = vshrl.u32 %v5837_v8, 16 }
 0x1aa   : > { %4233 = vmatpush3.bf16.msra.mxu0 %v4911_v62  ;;  %4184 = vmatprep.mubr.msk.bf16.mxu0 %vm5170_vm0, %v5169_v2  ;;  %v1598_v62 = vshll.u32 %v5837_v8, 16  ;;  %v2416_v9 = vsel %vm2385_vm5, %v2411_v61, %v2415_v27  ;;  %v4928_v61 = vld [vmem:[#allocation5 + $0x128] sm:$0xff]  }
 0x1ab   : > { %4234 = vmatprep.subr.bf16.mxu0 %v5169_v2  ;;  %v2417_v54 = vrot.slane %v1595_v45, 2 }
 0x1ac   : > { %v2418_v18 = vrot.slane %v1598_v62, 3 }
 0x1ae   : > { %4235 = vmatpush3.bf16.msra.mxu0 %v4913_v13  ;;  %v2419_v57 = vor.u32 %v2418_v18, %v2417_v54  ;;  %v4923_v13 = vld [vmem:[#allocation5 + $0x100] sm:$0xff]   ;;  %v2436_v18 = vrot.slane %v2434_v60, 2 }
 0x1af   : > { %4236 = vmatprep.subr.bf16.mxu0 %v5169_v2  ;;  %v2959_v60 = vld [vmem:[#allocation7 + $0xc0] sm:$0xff] }
 0x1b0   : > { %3873 = vmatmul.mubr.bf16.gmra.mrb[32].mxu1 %v978_v1  ;;  %v1604_v1 = vshrl.u32 %v5850_v43, 16  ;;  %v2420_v56 = vsel %vm2385_vm5, %v2415_v27, %v2419_v57  ;;  %v4929_v27 = vld [vmem:[#allocation5 + $0x130] sm:$0xff]  }
 0x1b1   : > { %4185 = vmatmul.mubr.bf16.gmra.mrb[4].mxu0 %v2396_v10  ;;  %3876 = vmatprep.mubr.msk.bf16.mxu1 %vm5170_vm0, %v5169_v2  ;;  %v1607_v10 = vshll.u32 %v5850_v43, 16 }
 0x1b2   : > { %4188 = vmatprep.mubr.msk.bf16.mxu0 %vm5170_vm0, %v5169_v2  ;;  %4237 = vmatpush3.bf16.msra.mxu0 %v4915_v15  ;;  %v2421_v37 = vrot.slane %v1604_v1, 2 }
 0x1b3   : > { %4238 = vmatprep.subr.bf16.mxu0 %v5169_v2  ;;  %v2422_v15 = vrot.slane %v1607_v10, 3 }
 0x1b6   : > { %4239 = vmatpush3.bf16.msra.mxu0 %v4917_v24  ;;  %v2935_v24 = vld [vmem:[#allocation7] sm:$0xff] }
 0x1b7   : > { %4240 = vmatprep.subr.bf16.mxu0 %v5169_v2 }
 0x1b8   : > { %3877 = vmatmul.mubr.bf16.gmra.mrb[36].mxu1 %v980_v25  ;;  %v2423_v25 = vor.u32 %v2422_v15, %v2421_v37  ;;  %v2945_v37 = vld [vmem:[#allocation7 + $0x50] sm:$0xff]  ;;  %v2440_v15 = vor.u32 %v2439_v21, %v2436_v18  ;;  %v1588_v21 = vrot.slane %v1586_v33, 3  ;;  %v1600_v33 = vrot.slane %v1598_v62, 4 }
 0x1b9   : > { %4189 = vmatmul.mubr.bf16.gmra.mrb[8].mxu0 %v2400_v28  ;;  %3880 = vmatprep.mubr.msk.bf16.mxu1 %vm5170_vm0, %v5169_v2  ;;  %v1613_v28 = vshrl.u32 %v5864_v63, 16 }
 0x1ba   : > { %4192 = vmatprep.mubr.msk.bf16.mxu0 %vm5170_vm0, %v5169_v2  ;;  %4241 = vmatpush3.bf16.msra.mxu0 %v4919_v38  ;;  %v5171_v38 = vmov 0   ;;  %v2424_v44 = vsel %vm2385_vm5, %v2419_v57, %v2423_v25  ;;  %v4930_v57 = vld [vmem:[#allocation5 + $0x138] sm:$0xff]  }
 0x1bb   : > { %4242 = vmatprep.subr.bf16.mxu0 %v5169_v2  ;;  %4818 = vset.pattern.permute.xlu0 %v5171_v38 }
 0x1bc   : > { %2963 = vperm.xlu0 %4818, %v2935_v24   ;;  %4819 = vset.pattern.permute.xlu1 %v5171_v38  ;;  %v2946_v24 = vld [vmem:[#allocation7 + $0x58] sm:$0xff] }
 0x1bd   : > { %2973 = vperm.xlu1 %4819, %v2937_v20   ;;  %v2950_v20 = vld [vmem:[#allocation7 + $0x78] sm:$0xff] }
 0x1be   : > { %4243 = vmatpush3.bf16.msra.mxu0 %v4920_v51  ;;  %v2425_v51 = vrot.slane %v1613_v28, 2 }
 0x1bf   : > { %4244 = vmatprep.subr.bf16.mxu0 %v5169_v2 }
 0x1c0   : > { %3881 = vmatmul.mubr.bf16.gmra.mrb[40].mxu1 %v982_v52  ;;  %v2426_v52 = vrot.slane %v1616_v29, 3  ;;  %2968 = vperm.xlu0 %4818, %v2936_v58  }
 0x1c1   : > { %4193 = vmatmul.mubr.bf16.gmra.mrb[12].mxu0 %v2404_v16  ;;  %3884 = vmatprep.mubr.msk.bf16.mxu1 %vm5170_vm0, %v5169_v2  ;;  %v4926_v16 = vld [vmem:[#allocation5 + $0x118] sm:$0xff]  }
 0x1c2   : > { %4196 = vmatprep.mubr.msk.bf16.mxu0 %vm5170_vm0, %v5169_v2  ;;  %4245 = vmatpush3.bf16.msra.mxu0 %v4921_v0  ;;  %v2939_v0 = vld [vmem:[#allocation7 + $0x20] sm:$0xff]  ;;  %v2427_v32 = vor.u32 %v2426_v52, %v2425_v51  ;;  %v1258_v51 = vrot.slane %v5587_v35, 3  ;;  %v2949_v52 = vld [vmem:[#allocation7 + $0x70] sm:$0xff]  ;;  %v1260_v35 = vrot.slane %v5823_v12, 3 }
 0x1c3   : > { %4246 = vmatprep.subr.bf16.mxu0 %v5169_v2 }
 0x1c4   : > { %2983 = vperm.xlu0 %4818, %v2939_v0   ;;  %v2428_v14 = vsel %vm2385_vm5, %v2423_v25, %v2427_v32  ;;  %v2951_v0 = vld [vmem:[#allocation7 + $0x80] sm:$0xff] }
 0x1c6   : > { %4247 = vmatpush3.bf16.msra.mxu0 %v4922_v19  ;;  %v1625_v19 = vshll.u32 %v5552_v59, 16 }
 0x1c8   : > { %3885 = vmatmul.mubr.bf16.gmra.mrb[44].mxu1 %v984_v22  ;;  %v4927_v22 = vld [vmem:[#allocation5 + $0x120] sm:$0xff]   ;;  %v2430_v30 = vrot.slane %v1625_v19, 3  ;;  %2993 = vperm.xlu0 %4818, %v2941_v53   ;;  %v2958_v53 = vld [vmem:[#allocation7 + $0xb8] sm:$0xff] }
 0x1c9   : > { %4197 = vmatmul.mubr.bf16.gmra.mrb[16].mxu0 %v2408_v47  ;;  %3888 = vmatprep.mubr.msk.bf16.mxu1 %vm5170_vm0, %v5169_v2  ;;  %v2938_v47 = vld [vmem:[#allocation7 + $0x18] sm:$0xff] }
 0x1ca   : > { %4200 = vmatprep.mubr.msk.bf16.mxu0 %vm5170_vm0, %v5169_v2  ;;  %2978 = vperm.xlu1 %4819, %v2938_v47   ;;  %v2431_v26 = vor.u32 %v2430_v30, %v2429_v55  ;;  %v2953_v47 = vld [vmem:[#allocation7 + $0x90] sm:$0xff]  ;;  %v1261_v55 = vsel %vm1244_vm6, %v1258_v51, %v1260_v35  ;;  %v2955_v30 = vld [vmem:[#allocation7 + $0xa0] sm:$0xff] }
 0x1cc   : > { %v2432_v54 = vsel %vm2385_vm5, %v2427_v32, %v2431_v26  ;;  %v2441_v38 = vsel %vm2385_vm5, %v2431_v26, %v2440_v15 }
 0x1d0   : > { %3889 = vmatmul.mubr.bf16.gmra.mrb[48].mxu1 %v986_v49  ;;  %v2940_v49 = vld [vmem:[#allocation7 + $0x28] sm:$0xff] }
 0x1d1   : > { %4201 = vmatmul.mubr.bf16.gmra.mrb[20].mxu0 %v2412_v50  ;;  %3908 = vmatprep.mubr.msk.bf16.mxu1 %vm5170_vm0, %v5169_v2  ;;  %v1254_v50 = vrot.slane %v5527_v40, 3  ;;  %v2943_v40 = vld [vmem:[#allocation7 + $0x40] sm:$0xff] }
 0x1d2   : > { %4204 = vmatprep.mubr.msk.bf16.mxu0 %vm5170_vm0, %v5169_v2  ;;  %2988 = vperm.xlu1 %4819, %v2940_v49   ;;  %v1262_v49 = vrot.slane %v5837_v8, 3 }
 0x1d3   : > { %3003 = vperm.xlu0 %4818, %v2943_v40   ;;  %v1268_v40 = vrot.slane %v5552_v59, 3 }
 0x1d4   : > { %v1263_v26 = vsel %vm1244_vm6, %v1260_v35, %v1262_v49 }
 0x1d7   : > { %3013 = vperm.xlu0 %4818, %v2945_v37   ;;  %v1615_v37 = vrot.slane %v1613_v28, 3  ;;  %v1627_v28 = vrot.slane %v1625_v19, 4 }
 0x1d8   : > { %3909 = vmatmul.mubr.bf16.vlgmr.msra.gmra.mrb[0].mxu1 %v1247_v46  ;;  %v2942_v46 = vld [vmem:[#allocation7 + $0x38] sm:$0xff] }
 0x1d9   : > { %4205 = vmatmul.mubr.bf16.gmra.mrb[24].mxu0 %v2416_v9  ;;  %3912 = vmatprep.mubr.msk.bf16.mxu1 %vm5170_vm0, %v5169_v2  ;;  %v6070_v9 = vsel %vm1244_vm6, %v1252_v11, %v1254_v50 }
 0x1da   : > { %4208 = vmatprep.mubr.msk.bf16.mxu0 %vm5170_vm0, %v5169_v2  ;;  %4308 = vmatpush3.bf16.msra.mxu1 %v4923_v13  ;;  %v2944_v13 = vld [vmem:[#allocation7 + $0x48] sm:$0xff] }
 0x1db   : > { %4301 = vmatprep.subr.bf16.mxu1 %v5169_v2  ;;  %2998 = vperm.xlu1 %4819, %v2942_v46   ;;  %v1266_v46 = vrot.slane %v5864_v63, 3 }
 0x1de   : > { %4309 = vmatpush3.bf16.msra.mxu1 %v4924_v17  ;;  %v2443_v17 = vshrl.u32 %v5899_v42, 16 }
 0x1df   : > { %4302 = vmatprep.subr.bf16.mxu1 %v5169_v2  ;;  %3008 = vperm.xlu1 %4819, %v2944_v13  }
 0x1e0   : > { %3913 = vmatmul.mubr.bf16.gmra.mrb[4].mxu1 %v6016_v3  ;;  %v2445_v58 = vrot.slane %v2443_v17, 2 }
 0x1e1   : > { %4209 = vmatmul.mubr.bf16.gmra.mrb[28].mxu0 %v2420_v56  ;;  %3916 = vmatprep.mubr.msk.bf16.mxu1 %vm5170_vm0, %v5169_v2  ;;  %v1256_v56 = vrot.slane %v5561_v6, 3  ;;  %v2448_v6 = vrot.slane %v2446_v23, 3 }
 0x1e2   : > { %4212 = vmatprep.mubr.msk.bf16.mxu0 %vm5170_vm0, %v5169_v2  ;;  %4310 = vmatpush3.bf16.msra.mxu1 %v4925_v34  ;;  %v2947_v34 = vld [vmem:[#allocation7 + $0x60] sm:$0xff] }
 0x1e3   : > { %4303 = vmatprep.subr.bf16.mxu1 %v5169_v2  ;;  %v6082_v25 = vsel %vm1244_vm6, %v1254_v50, %v1256_v56  ;;  %3018 = vperm.xlu1 %4819, %v2946_v24   ;;  %v1259_v11 = vsel %vm1244_vm6, %v1256_v56, %v1258_v51  ;;  %v2957_v50 = vld [vmem:[#allocation7 + $0xb0] sm:$0xff]  ;;  %v1597_v56 = vrot.slane %v1595_v45, 3  ;;  %v1609_v45 = vrot.slane %v1607_v10, 4 }
 0x1e4   : > { %3023 = vperm.xlu0 %4818, %v2947_v34  }
 0x1e5   : > { %v1601_v12 = vor.u32 %v1600_v33, %v1597_v56 }
 0x1e6   : > { %4311 = vmatpush3.bf16.msra.mxu1 %v4926_v16  ;;  %v2449_v16 = vor.u32 %v2448_v6, %v2445_v58 }
 0x1e7   : > { %4304 = vmatprep.subr.bf16.mxu1 %v5169_v2 }
 0x1e8   : > { %3917 = vmatmul.mubr.bf16.gmra.mrb[8].mxu1 %v6034_v36  ;;  %3033 = vperm.xlu0 %4818, %v2949_v52   ;;  %v2450_v32 = vsel %vm2385_vm5, %v2440_v15, %v2449_v16  ;;  %v1624_v15 = vrot.slane %v1622_v7, 3  ;;  %v2692_v7 = vrot.slane %v5887_v39, 3 }
 0x1e9   : > { %4213 = vmatmul.mubr.bf16.gmra.mrb[32].mxu0 %v2424_v44  ;;  %3920 = vmatprep.mubr.msk.bf16.mxu1 %vm5170_vm0, %v5169_v2  ;;  %v2948_v44 = vld [vmem:[#allocation7 + $0x68] sm:$0xff] }
 0x1ea   : > { %4216 = vmatprep.mubr.msk.bf16.mxu0 %vm5170_vm0, %v5169_v2  ;;  %4312 = vmatpush3.bf16.msra.mxu1 %v4927_v22  ;;  %v2952_v22 = vld [vmem:[#allocation7 + $0x88] sm:$0xff]  ;;  %v1628_v63 = vor.u32 %v1627_v28, %v1624_v15  ;;  %v2693_v34 = vsel %vm1244_vm6, %v1268_v40, %v2692_v7 }
 0x1eb   : > { %4305 = vmatprep.subr.bf16.mxu1 %v5169_v2  ;;  %3028 = vperm.xlu1 %4819, %v2948_v44  }
 0x1ec   : > { %3043 = vperm.xlu0 %4818, %v2951_v0  }
 0x1ee   : > { %4313 = vmatpush3.bf16.msra.mxu1 %v4928_v61  ;;  %v2956_v61 = vld [vmem:[#allocation7 + $0xa8] sm:$0xff] }
 0x1ef   : > { %4306 = vmatprep.subr.bf16.mxu1 %v5169_v2  ;;  %3038 = vperm.xlu1 %4819, %v2950_v20  }
 0x1f0   : > { %3921 = vmatmul.mubr.bf16.gmra.mrb[12].mxu1 %v6052_v41  ;;  %3053 = vperm.xlu0 %4818, %v2953_v47  }
 0x1f1   : > { %4217 = vmatmul.mubr.bf16.gmra.mrb[36].mxu0 %v2428_v14  ;;  %3924 = vmatprep.mubr.msk.bf16.mxu1 %vm5170_vm0, %v5169_v2  ;;  %v2954_v14 = vld [vmem:[#allocation7 + $0x98] sm:$0xff] }
 0x1f2   : > { %4220 = vmatprep.mubr.msk.bf16.mxu0 %vm5170_vm0, %v5169_v2  ;;  %4314 = vmatpush3.bf16.msra.mxu1 %v4929_v27 }
 0x1f3   : > { %4307 = vmatprep.subr.bf16.mxu1 %v5169_v2  ;;  %3048 = vperm.xlu1 %4819, %v2952_v22  }
 0x1f4   : > { %3063 = vperm.xlu0 %4818, %v2955_v30  }
 0x1f6   : > { %4315 = vmatpush3.bf16.msra.mxu1 %v4930_v57 }
 0x1f7   : > { %3058 = vperm.xlu1 %4819, %v2954_v14  }
 0x1f8   : > { %3925 = vmatmul.mubr.bf16.gmra.mrb[16].mxu1 %v6070_v9  ;;  %3073 = vperm.xlu0 %4818, %v2957_v50  }
 0x1f9   : > { %4221 = vmatmul.mubr.bf16.gmra.mrb[40].mxu0 %v2432_v54  ;;  %3928 = vmatprep.mubr.msk.bf16.mxu1 %vm5170_vm0, %v5169_v2  ;;  %v1269_v54 = vsel %vm1244_vm6, %v1266_v46, %v1268_v40 }
 0x1fa   : > { %4224 = vmatprep.mubr.msk.bf16.mxu0 %vm5170_vm0, %v5169_v2 }
 0x1fb   : > { %3068 = vperm.xlu1 %4819, %v2956_v61  }
 0x1fc   : > { %3083 = vperm.xlu0 %4818, %v2959_v60  }
 0x1ff   : > { %3078 = vperm.xlu1 %4819, %v2958_v53  }
 0x200   : > { %3929 = vmatmul.mubr.bf16.gmra.mrb[20].mxu1 %v6082_v25 }
 0x201   : > { %4225 = vmatmul.mubr.bf16.gmra.mrb[44].mxu0 %v2441_v38  ;;  %3932 = vmatprep.mubr.msk.bf16.mxu1 %vm5170_vm0, %v5169_v2  ;;  %v2694_v38 = vrot.slane %v5899_v42, 3 }
 0x202   : > { %4228 = vmatprep.mubr.msk.bf16.mxu0 %vm5170_vm0, %v5169_v2 }
 0x203   : > { %3088 = vperm.xlu1 %4819, %v2960_v4   ;;  %v2695_v58 = vsel %vm1244_vm6, %v2692_v7, %v2694_v38 }
 0x208   : > { %3933 = vmatmul.mubr.bf16.gmra.mrb[24].mxu1 %v1259_v11 }
 0x209   : > { %4229 = vmatmul.mubr.bf16.gmra.mrb[48].mxu0 %v2450_v32  ;;  %3936 = vmatprep.mubr.msk.bf16.mxu1 %vm5170_vm0, %v5169_v2 }
 0x20a   : > { %4248 = vmatprep.mubr.msk.bf16.mxu0 %vm5170_vm0, %v5169_v2 }
 0x210   : > { %3937 = vmatmul.mubr.bf16.gmra.mrb[28].mxu1 %v1261_v55 }
 0x211   : > { %4249 = vmatmul.mubr.bf16.vlgmr.msra.gmra.mrb[0].mxu0 %v6016_v3  ;;  %3940 = vmatprep.mubr.msk.bf16.mxu1 %vm5170_vm0, %v5169_v2  ;;  %v1264_v3 = vrot.slane %v5850_v43, 3 }
 0x212   : > { %4252 = vmatprep.mubr.msk.bf16.mxu0 %vm5170_vm0, %v5169_v2 }
 0x213   : > { %v1265_v27 = vsel %vm1244_vm6, %v1262_v49, %v1264_v3 }
 0x218   : > { %3941 = vmatmul.mubr.bf16.gmra.mrb[32].mxu1 %v1263_v26 }
 0x219   : > { %4253 = vmatmul.mubr.bf16.gmra.mrb[4].mxu0 %v6034_v36  ;;  %3944 = vmatprep.mubr.msk.bf16.mxu1 %vm5170_vm0, %v5169_v2  ;;  %v1267_v36 = vsel %vm1244_vm6, %v1264_v3, %v1266_v46 }
 0x21a   : > { %4256 = vmatprep.mubr.msk.bf16.mxu0 %vm5170_vm0, %v5169_v2 }
 0x220   : > { %3945 = vmatmul.mubr.bf16.gmra.mrb[36].mxu1 %v1265_v27 }
 0x221   : > { %4257 = vmatmul.mubr.bf16.gmra.mrb[8].mxu0 %v6052_v41  ;;  %3948 = vmatprep.mubr.msk.bf16.mxu1 %vm5170_vm0, %v5169_v2  ;;  %v3439_v41 = vcombine.low %v5766_v48, %v5766_v48  ;;  %v1591_v48 = vrot.slane %v1589_v31, 4 }
 0x222   : > { %4260 = vmatprep.mubr.msk.bf16.mxu0 %vm5170_vm0, %v5169_v2 }
 0x223   : > { %v1592_v57 = vor.u32 %v1591_v48, %v1588_v21  ;;  %v1634_v17 = vshll.u32 %v3439_v41, 16 }
 0x225   : > { %v1593_v13 = vsel %vm1513_vm2, %v5617_v5, %v1592_v57  ;;  %v1602_v31 = vsel %vm1513_vm2, %v1592_v57, %v1601_v12  ;;  %v1606_v5 = vrot.slane %v1604_v1, 3  ;;  %v1618_v1 = vrot.slane %v1616_v29, 4 }
 0x226   : > { %v1631_v29 = vshrl.u32 %v3439_v41, 16 }
 0x227   : > { %v1610_v8 = vor.u32 %v1609_v45, %v1606_v5  ;;  %v1619_v43 = vor.u32 %v1618_v1, %v1615_v37 }
 0x228   : > { %3949 = vmatmul.mubr.bf16.gmra.mrb[40].mxu1 %v1267_v36  ;;  %v1633_v24 = vrot.slane %v1631_v29, 3 }
 0x229   : > { %4261 = vmatmul.mubr.bf16.gmra.mrb[12].mxu0 %v6070_v9  ;;  %3952 = vmatprep.mubr.msk.bf16.mxu1 %vm5170_vm0, %v5169_v2  ;;  %v1270_v9 = vrot.slane %v3439_v41, 3  ;;  %v1611_v62 = vsel %vm1513_vm2, %v1601_v12, %v1610_v8  ;;  %v1620_v10 = vsel %vm1513_vm2, %v1610_v8, %v1619_v43  ;;  %v1629_v23 = vsel %vm1513_vm2, %v1619_v43, %v1628_v63 }
 0x22a   : > { %4264 = vmatprep.mubr.msk.bf16.mxu0 %vm5170_vm0, %v5169_v2 }
 0x22b   : > { %v1271_v18 = vsel %vm1244_vm6, %v1268_v40, %v1270_v9 }
 0x230   : > { %3953 = vmatmul.mubr.bf16.gmra.mrb[44].mxu1 %v1269_v54 }
 0x231   : > { %4265 = vmatmul.mubr.bf16.gmra.mrb[16].mxu0 %v6082_v25  ;;  %3956 = vmatprep.mubr.msk.bf16.mxu1 %vm5170_vm0, %v5169_v2  ;;  %v1636_v25 = vrot.slane %v1634_v17, 4 }
 0x232   : > { %4268 = vmatprep.mubr.msk.bf16.mxu0 %vm5170_vm0, %v5169_v2 }
 0x233   : > { %v1637_v59 = vor.u32 %v1636_v25, %v1633_v24 }
 0x235   : > { %v1638_v19 = vsel %vm1513_vm2, %v1628_v63, %v1637_v59 }
 0x238   : > { %3957 = vmatmul.mubr.bf16.gmra.mrb[48].mxu1 %v1271_v18 }
 0x239   : > { %4269 = vmatmul.mubr.bf16.gmra.mrb[20].mxu0 %v1259_v11  ;;  %4004 = vmatprep.mubr.msk.bf16.mxu1 %vm5170_vm0, %v5169_v2 }
 0x23a   : > { %4272 = vmatprep.mubr.msk.bf16.mxu0 %vm5170_vm0, %v5169_v2 }
 0x23c   : > { %v2974_v56 = vpop.permute.xlu1 %2973 }
 0x240   : > { %4005 = vmatmul.mubr.bf16.vlgmr.msra.gmra.mrb[28].mxu1 %v1593_v13 }
 0x241   : > { %4273 = vmatmul.mubr.bf16.gmra.mrb[24].mxu0 %v1261_v55  ;;  %4008 = vmatprep.mubr.msk.bf16.mxu1 %vm5170_vm0, %v5169_v2 }
 0x242   : > { %4276 = vmatprep.mubr.msk.bf16.mxu0 %vm5170_vm0, %v5169_v2 }
 0x248   : > { %4009 = vmatmul.mubr.bf16.gmra.mrb[32].mxu1 %v1602_v31 }
 0x249   : > { %4277 = vmatmul.mubr.bf16.gmra.mrb[28].mxu0 %v1263_v26  ;;  %4012 = vmatprep.mubr.msk.bf16.mxu1 %vm5170_vm0, %v5169_v2  ;;  %v2979_v15 = vpop.permute.xlu1 %2978 }
 0x24a   : > { %4280 = vmatprep.mubr.msk.bf16.mxu0 %vm5170_vm0, %v5169_v2 }
 0x250   : > { %4013 = vmatmul.mubr.bf16.gmra.mrb[36].mxu1 %v1611_v62 }
 0x251   : > { %4281 = vmatmul.mubr.bf16.gmra.mrb[32].mxu0 %v1265_v27  ;;  %4016 = vmatprep.mubr.msk.bf16.mxu1 %vm5170_vm0, %v5169_v2 }
 0x252   : > { %4284 = vmatprep.mubr.msk.bf16.mxu0 %vm5170_vm0, %v5169_v2 }
 0x258   : > { %4017 = vmatmul.mubr.bf16.gmra.mrb[40].mxu1 %v1620_v10 }
 0x259   : > { %4285 = vmatmul.mubr.bf16.gmra.mrb[36].mxu0 %v1267_v36  ;;  %4020 = vmatprep.mubr.msk.bf16.mxu1 %vm5170_vm0, %v5169_v2  ;;  %v2964_v36 = vpop.permute.xlu0 %2963 }
 0x25a   : > { %4288 = vmatprep.mubr.msk.bf16.mxu0 %vm5170_vm0, %v5169_v2 }
 0x25d   : > { %v2969_v18 = vpop.permute.xlu0 %2968 }
 0x260   : > { %4021 = vmatmul.mubr.bf16.gmra.mrb[44].mxu1 %v1629_v23 }
 0x261   : > { %4289 = vmatmul.mubr.bf16.gmra.mrb[40].mxu0 %v1269_v54  ;;  %4024 = vmatprep.mubr.msk.bf16.mxu1 %vm5170_vm0, %v5169_v2 }
 0x262   : > { %4292 = vmatprep.mubr.msk.bf16.mxu0 %vm5170_vm0, %v5169_v2 }
 0x268   : > { %4025 = vmatmul.mubr.bf16.gmra.mrb[48].mxu1 %v1638_v19 }
 0x269   : > { %4293 = vmatmul.mubr.bf16.gmra.mrb[44].mxu0 %v2693_v34  ;;  %v2984_v34 = vpop.permute.xlu0 %2983 }
 0x26a   : > { %4296 = vmatprep.mubr.msk.bf16.mxu0 %vm5170_vm0, %v5169_v2 }
 0x271   : > { %4297 = vmatmul.mubr.bf16.gmra.mrb[48].mxu0 %v2695_v58 }
 0x2ab   : > { %v1367_v6 = vpop.f32.mrb[0].mxu1 }
 0x2ac   : > { %v3910_v44 = vpop.f32.mrb[1].mxu1 }
 0x2ad   : > { %v1370_v51 = vpop.f32.mrb[2].mxu1 }
 0x2ae   : > { %v3911_v52 = vpop.f32.mrb[3].mxu1 }
 0x2b3   : > { %v1375_v16 = vpop.f32.mrb[4].mxu1 }
 0x2b4   : > { %v3914_v39 = vpop.f32.mrb[5].mxu1 }
 0x2b5   : > { %v1378_v20 = vpop.f32.mrb[6].mxu1 }
 0x2b6   : > { %v3915_v11 = vpop.f32.mrb[7].mxu1 }
 0x2bb   : > { %v1383_v0 = vpop.f32.mrb[8].mxu1 }
 0x2bc   : > { %v3918_v32 = vpop.f32.mrb[9].mxu1 }
 0x2bd   : > { %v1386_v22 = vpop.f32.mrb[10].mxu1 }
 0x2be   : > { %v3919_v35 = vpop.f32.mrb[11].mxu1 }
 0x2c3   : > { %v6192_v47 = vpop.f32.mrb[12].mxu1 }
 0x2c4   : > { %v3922_v2 = vpop.f32.mrb[13].mxu1 }
 0x2c5   : > { %v6194_v14 = vpop.f32.mrb[14].mxu1 }
 0x2c6   : > { %v3923_v42 = vpop.f32.mrb[15].mxu1 }
 0x2cb   : > { %v6196_v55 = vpop.f32.mrb[16].mxu1 }
 0x2cc   : > { %v3926_v30 = vpop.f32.mrb[17].mxu1 }
 0x2cd   : > { %v6198_v61 = vpop.f32.mrb[18].mxu1  ;;  %v2994_v30 = vpop.permute.xlu0 %2993 }
 0x2ce   : > { %v3927_v49 = vpop.f32.mrb[19].mxu1 }
 0x2d3   : > { %v6200_v50 = vpop.f32.mrb[20].mxu1 }
 0x2d4   : > { %v3930_v53 = vpop.f32.mrb[21].mxu1 }
 0x2d5   : > { %v6202_v26 = vpop.f32.mrb[22].mxu1 }
 0x2d6   : > { %v3931_v60 = vpop.f32.mrb[23].mxu1 }
 0x2db   : > { %v6204_v4 = vpop.f32.mrb[24].mxu1 }
 0x2dc   : > { %v3934_v3 = vpop.f32.mrb[25].mxu1 }
 0x2dd   : > { %v6206_v27 = vpop.f32.mrb[26].mxu1 }
 0x2de   : > { %v3935_v46 = vpop.f32.mrb[27].mxu1 }
 0x2e4   : > { %v2780_v40 = vpop.f32.mrb[0].mxu0 }
 0x2e5   : > { %v4316_v41 = vadd.f32 %v2780_v40, %v1367_v6  ;;  %v4250_v54 = vpop.f32.mrb[1].mxu0 }
 0x2e6   : > { %v2783_v9 = vpop.f32.mrb[2].mxu0 }
 0x2e7   : > { %2909 = vst [vmem:[%s5415_s6] sm:$0xff] %v4316_v41  ;;  %v4317_v21 = vadd.f32 %v2783_v9, %v1370_v51  ;;  %v4251_v48 = vpop.f32.mrb[3].mxu0  ;;  %v3091_v57 = vmul.f32 %v4316_v41, %v2964_v36  ;;  %v2989_v51 = vpop.permute.xlu1 %2988 }
 0x2e9   : > { %2910 = vst [vmem:[%s5415_s6 + $0x8] sm:$0xff] %v4317_v21  ;;  %v3092_v13 = vmul.f32 %v4317_v21, %v2969_v18  ;;  %v3152_v12 = vmul.f32 %v4316_v41, %v3091_v57 }
 0x2eb   : > { %v3118_v33 = vadd.f32 %v3092_v13, %v3091_v57  ;;  %v3153_v31 = vmul.f32 %v4317_v21, %v3092_v13  ;;  %v2999_v3 = vpop.permute.xlu1 %2998  ;;  %v3004_v57 = vpop.permute.xlu0 %3003 }
 0x2ec   : > { %v2788_v5 = vpop.f32.mrb[4].mxu0 }
 0x2ed   : > { %v3178_v45 = vadd.f32 %v3153_v31, %v3152_v12  ;;  %v4318_v8 = vadd.f32 %v2788_v5, %v1375_v16  ;;  %v4254_v62 = vpop.f32.mrb[5].mxu0 }
 0x2ee   : > { %v2791_v37 = vpop.f32.mrb[6].mxu0 }
 0x2ef   : > { %2911 = vst [vmem:[%s5415_s6 + $0x10] sm:$0xff] %v4318_v8  ;;  %v3093_v1 = vmul.f32 %v4318_v8, %v2974_v56  ;;  %v4319_v43 = vadd.f32 %v2791_v37, %v1378_v20  ;;  %v4255_v10 = vpop.f32.mrb[7].mxu0  ;;  %v3009_v12 = vpop.permute.xlu1 %3008 }
 0x2f1   : > { %v3119_v28 = vadd.f32 %v3118_v33, %v3093_v1  ;;  %v3154_v63 = vmul.f32 %v4318_v8, %v3093_v1  ;;  %2912 = vst [vmem:[%s5415_s6 + $0x18] sm:$0xff] %v4319_v43  ;;  %v3094_v29 = vmul.f32 %v4319_v43, %v2979_v15 }
 0x2f3   : > { %v3179_v17 = vadd.f32 %v3178_v45, %v3154_v63  ;;  %v3120_v23 = vadd.f32 %v3119_v28, %v3094_v29  ;;  %v3155_v24 = vmul.f32 %v4319_v43, %v3094_v29 }
 0x2f4   : > { %v2796_v25 = vpop.f32.mrb[8].mxu0 }
 0x2f5   : > { %v3180_v59 = vadd.f32 %v3179_v17, %v3155_v24  ;;  %v4320_v7 = vadd.f32 %v2796_v25, %v1383_v0  ;;  %v4258_v19 = vpop.f32.mrb[9].mxu0  ;;  %v3019_v17 = vpop.permute.xlu1 %3018 }
 0x2f6   : > { %v2799_v38 = vpop.f32.mrb[10].mxu0 }
 0x2f7   : > { %2913 = vst [vmem:[%s5415_s6 + $0x20] sm:$0xff] %v4320_v7  ;;  %v3095_v58 = vmul.f32 %v4320_v7, %v2984_v34  ;;  %v4321_v6 = vadd.f32 %v2799_v38, %v1386_v22  ;;  %v4259_v44 = vpop.f32.mrb[11].mxu0 }
 0x2f9   : > { %v3121_v52 = vadd.f32 %v3120_v23, %v3095_v58  ;;  %v3156_v16 = vmul.f32 %v4320_v7, %v3095_v58  ;;  %2914 = vst [vmem:[%s5415_s6 + $0x28] sm:$0xff] %v4321_v6  ;;  %v3096_v39 = vmul.f32 %v4321_v6, %v2989_v51 }
 0x2fb   : > { %v3181_v20 = vadd.f32 %v3180_v59, %v3156_v16  ;;  %v3122_v11 = vadd.f32 %v3121_v52, %v3096_v39  ;;  %v3157_v32 = vmul.f32 %v4321_v6, %v3096_v39 }
 0x2fc   : > { %v2804_v35 = vpop.f32.mrb[12].mxu0 }
 0x2fd   : > { %v3182_v2 = vadd.f32 %v3181_v20, %v3157_v32  ;;  %v4322_v0 = vadd.f32 %v2804_v35, %v6192_v47  ;;  %v4262_v42 = vpop.f32.mrb[13].mxu0  ;;  %v3029_v32 = vpop.permute.xlu1 %3028 }
 0x2fe   : > { %v2807_v49 = vpop.f32.mrb[14].mxu0 }
 0x2ff   : > { %2915 = vst [vmem:[%s5415_s6 + $0x30] sm:$0xff] %v4322_v0  ;;  %v3097_v22 = vmul.f32 %v4322_v0, %v2994_v30  ;;  %v4323_v53 = vadd.f32 %v2807_v49, %v6194_v14  ;;  %v4263_v60 = vpop.f32.mrb[15].mxu0 }
 0x301   : > { %v3123_v46 = vadd.f32 %v3122_v11, %v3097_v22  ;;  %v3158_v36 = vmul.f32 %v4322_v0, %v3097_v22  ;;  %2916 = vst [vmem:[%s5415_s6 + $0x38] sm:$0xff] %v4323_v53  ;;  %v3098_v40 = vmul.f32 %v4323_v53, %v2999_v3 }
 0x303   : > { %v3183_v41 = vadd.f32 %v3182_v2, %v3158_v36  ;;  %v3124_v54 = vadd.f32 %v3123_v46, %v3098_v40  ;;  %v3159_v9 = vmul.f32 %v4323_v53, %v3098_v40 }
 0x304   : > { %v2812_v18 = vpop.f32.mrb[16].mxu0 }
 0x305   : > { %v3184_v47 = vadd.f32 %v3183_v41, %v3159_v9  ;;  %v4324_v21 = vadd.f32 %v2812_v18, %v6196_v55  ;;  %v4266_v48 = vpop.f32.mrb[17].mxu0  ;;  %v3014_v55 = vpop.permute.xlu0 %3013 }
 0x306   : > { %v2815_v13 = vpop.f32.mrb[18].mxu0 }
 0x307   : > { %2917 = vst [vmem:[%s5415_s6 + $0x40] sm:$0xff] %v4324_v21  ;;  %v3099_v14 = vmul.f32 %v4324_v21, %v3004_v57  ;;  %v4325_v56 = vadd.f32 %v2815_v13, %v6198_v61  ;;  %v4267_v33 = vpop.f32.mrb[19].mxu0 }
 0x309   : > { %v3125_v31 = vadd.f32 %v3124_v54, %v3099_v14  ;;  %v3160_v5 = vmul.f32 %v4324_v21, %v3099_v14  ;;  %2918 = vst [vmem:[%s5415_s6 + $0x48] sm:$0xff] %v4325_v56  ;;  %v3100_v45 = vmul.f32 %v4325_v56, %v3009_v12  ;;  %v3024_v59 = vpop.permute.xlu0 %3023 }
 0x30b   : > { %v3185_v8 = vadd.f32 %v3184_v47, %v3160_v5  ;;  %v3126_v62 = vadd.f32 %v3125_v31, %v3100_v45  ;;  %v3161_v37 = vmul.f32 %v4325_v56, %v3100_v45  ;;  %v3039_v47 = vpop.permute.xlu1 %3038 }
 0x30c   : > { %v2820_v1 = vpop.f32.mrb[20].mxu0 }
 0x30d   : > { %v3186_v43 = vadd.f32 %v3185_v8, %v3161_v37  ;;  %v4326_v10 = vadd.f32 %v2820_v1, %v6200_v50  ;;  %v4270_v15 = vpop.f32.mrb[21].mxu0  ;;  %v3034_v42 = vpop.permute.xlu0 %3033 }
 0x30e   : > { %v2823_v28 = vpop.f32.mrb[22].mxu0 }
 0x30f   : > { %2919 = vst [vmem:[%s5415_s6 + $0x50] sm:$0xff] %v4326_v10  ;;  %v3101_v61 = vmul.f32 %v4326_v10, %v3014_v55  ;;  %v4327_v63 = vadd.f32 %v2823_v28, %v6202_v26  ;;  %v4271_v29 = vpop.f32.mrb[23].mxu0  ;;  %v3049_v28 = vpop.permute.xlu1 %3048 }
 0x311   : > { %v3127_v23 = vadd.f32 %v3126_v62, %v3101_v61  ;;  %v3162_v24 = vmul.f32 %v4326_v10, %v3101_v61  ;;  %2920 = vst [vmem:[%s5415_s6 + $0x58] sm:$0xff] %v4327_v63  ;;  %v3102_v25 = vmul.f32 %v4327_v63, %v3019_v17  ;;  %v3044_v13 = vpop.permute.xlu0 %3043 }
 0x313   : > { %v3187_v7 = vadd.f32 %v3186_v43, %v3162_v24  ;;  %v3128_v19 = vadd.f32 %v3127_v23, %v3102_v25  ;;  %v3163_v34 = vmul.f32 %v4327_v63, %v3102_v25  ;;  %v1790_v38 = vpop.f32.mrb[28].mxu1 }
 0x314   : > { %v2828_v50 = vpop.f32.mrb[24].mxu0  ;;  %v4006_v58 = vpop.f32.mrb[29].mxu1 }
 0x315   : > { %v3188_v6 = vadd.f32 %v3187_v7, %v3163_v34  ;;  %v4328_v44 = vadd.f32 %v2828_v50, %v6204_v4  ;;  %v4274_v51 = vpop.f32.mrb[25].mxu0  ;;  %v1793_v26 = vpop.f32.mrb[30].mxu1 }
 0x316   : > { %v2831_v52 = vpop.f32.mrb[26].mxu0  ;;  %v4007_v16 = vpop.f32.mrb[31].mxu1 }
 0x317   : > { %2921 = vst [vmem:[%s5415_s6 + $0x60] sm:$0xff] %v4328_v44  ;;  %v3103_v39 = vmul.f32 %v4328_v44, %v3024_v59  ;;  %v4329_v20 = vadd.f32 %v2831_v52, %v6206_v27  ;;  %v4275_v11 = vpop.f32.mrb[27].mxu0  ;;  %v3054_v17 = vpop.permute.xlu0 %3053 }
 0x318   : > { %v3059_v16 = vpop.permute.xlu1 %3058 }
 0x319   : > { %v3129_v35 = vadd.f32 %v3128_v19, %v3103_v39  ;;  %v3164_v2 = vmul.f32 %v4328_v44, %v3103_v39  ;;  %2922 = vst [vmem:[%s5415_s6 + $0x68] sm:$0xff] %v4329_v20  ;;  %v3104_v0 = vmul.f32 %v4329_v20, %v3029_v32 }
 0x31b   : > { %v3189_v30 = vadd.f32 %v3188_v6, %v3164_v2  ;;  %v3130_v49 = vadd.f32 %v3129_v35, %v3104_v0  ;;  %v3165_v22 = vmul.f32 %v4329_v20, %v3104_v0  ;;  %v1798_v4 = vpop.f32.mrb[32].mxu1  ;;  %v3064_v32 = vpop.permute.xlu0 %3063 }
 0x31c   : > { %v2836_v53 = vpop.f32.mrb[28].mxu0  ;;  %v4010_v60 = vpop.f32.mrb[33].mxu1 }
 0x31d   : > { %v3190_v3 = vadd.f32 %v3189_v30, %v3165_v22  ;;  %v4330_v46 = vadd.f32 %v2836_v53, %v1790_v38  ;;  %v4278_v36 = vpop.f32.mrb[29].mxu0  ;;  %v1801_v40 = vpop.f32.mrb[34].mxu1 }
 0x31e   : > { %v2839_v27 = vpop.f32.mrb[30].mxu0  ;;  %v4011_v41 = vpop.f32.mrb[35].mxu1 }
 0x31f   : > { %2923 = vst [vmem:[%s5415_s6 + $0x70] sm:$0xff] %v4330_v46  ;;  %v3105_v54 = vmul.f32 %v4330_v46, %v3034_v42  ;;  %v4331_v9 = vadd.f32 %v2839_v27, %v1793_v26  ;;  %v4279_v18 = vpop.f32.mrb[31].mxu0  ;;  %v3069_v41 = vpop.permute.xlu1 %3068 }
 0x321   : > { %v3131_v21 = vadd.f32 %v3130_v49, %v3105_v54  ;;  %v3166_v48 = vmul.f32 %v4330_v46, %v3105_v54  ;;  %2924 = vst [vmem:[%s5415_s6 + $0x78] sm:$0xff] %v4331_v9  ;;  %v3106_v57 = vmul.f32 %v4331_v9, %v3039_v47  ;;  %v3074_v47 = vpop.permute.xlu0 %3073 }
 0x323   : > { %v3191_v14 = vadd.f32 %v3190_v3, %v3166_v48  ;;  %v3132_v56 = vadd.f32 %v3131_v21, %v3106_v57  ;;  %v3167_v33 = vmul.f32 %v4331_v9, %v3106_v57  ;;  %v1806_v12 = vpop.f32.mrb[36].mxu1 }
 0x324   : > { %v2844_v31 = vpop.f32.mrb[32].mxu0  ;;  %v4014_v5 = vpop.f32.mrb[37].mxu1 }
 0x325   : > { %v3192_v45 = vadd.f32 %v3191_v14, %v3167_v33  ;;  %v4332_v8 = vadd.f32 %v2844_v31, %v1798_v4  ;;  %v4282_v62 = vpop.f32.mrb[33].mxu0  ;;  %v1809_v37 = vpop.f32.mrb[38].mxu1 }
 0x326   : > { %v2847_v1 = vpop.f32.mrb[34].mxu0  ;;  %v4015_v55 = vpop.f32.mrb[39].mxu1 }
 0x327   : > { %2925 = vst [vmem:[%s5415_s6 + $0x80] sm:$0xff] %v4332_v8  ;;  %v3107_v43 = vmul.f32 %v4332_v8, %v3044_v13  ;;  %v4333_v10 = vadd.f32 %v2847_v1, %v1801_v40  ;;  %v4283_v15 = vpop.f32.mrb[35].mxu0  ;;  %v3079_v55 = vpop.permute.xlu1 %3078 }
 0x329   : > { %v3133_v61 = vadd.f32 %v3132_v56, %v3107_v43  ;;  %v3168_v63 = vmul.f32 %v4332_v8, %v3107_v43  ;;  %2926 = vst [vmem:[%s5415_s6 + $0x88] sm:$0xff] %v4333_v10  ;;  %v3108_v29 = vmul.f32 %v4333_v10, %v3049_v28 }
 0x32b   : > { %v3193_v23 = vadd.f32 %v3192_v45, %v3168_v63  ;;  %v3134_v24 = vadd.f32 %v3133_v61, %v3108_v29  ;;  %v3169_v25 = vmul.f32 %v4333_v10, %v3108_v29  ;;  %v1814_v59 = vpop.f32.mrb[40].mxu1 }
 0x32c   : > { %v2852_v7 = vpop.f32.mrb[36].mxu0  ;;  %v4018_v19 = vpop.f32.mrb[41].mxu1 }
 0x32d   : > { %v3194_v34 = vadd.f32 %v3193_v23, %v3169_v25  ;;  %v4334_v38 = vadd.f32 %v2852_v7, %v1806_v12  ;;  %v4286_v50 = vpop.f32.mrb[37].mxu0  ;;  %v1817_v58 = vpop.f32.mrb[42].mxu1 }
 0x32e   : > { %v2855_v6 = vpop.f32.mrb[38].mxu0  ;;  %v4019_v44 = vpop.f32.mrb[43].mxu1 }
 0x32f   : > { %2927 = vst [vmem:[%s5415_s6 + $0x90] sm:$0xff] %v4334_v38  ;;  %v3109_v51 = vmul.f32 %v4334_v38, %v3054_v17  ;;  %v4335_v26 = vadd.f32 %v2855_v6, %v1809_v37  ;;  %v4287_v52 = vpop.f32.mrb[39].mxu0  ;;  %v3084_v25 = vpop.permute.xlu0 %3083 }
 0x331   : > { %v3135_v39 = vadd.f32 %v3134_v24, %v3109_v51  ;;  %v3170_v20 = vmul.f32 %v4334_v38, %v3109_v51  ;;  %2928 = vst [vmem:[%s5415_s6 + $0x98] sm:$0xff] %v4335_v26  ;;  %v3110_v11 = vmul.f32 %v4335_v26, %v3059_v16  ;;  %v3089_v38 = vpop.permute.xlu1 %3088 }
 0x333   : > { %v3195_v35 = vadd.f32 %v3194_v34, %v3170_v20  ;;  %v3136_v2 = vadd.f32 %v3135_v39, %v3110_v11  ;;  %v3171_v0 = vmul.f32 %v4335_v26, %v3110_v11  ;;  %v1822_v42 = vpop.f32.mrb[44].mxu1 }
 0x334   : > { %v2860_v30 = vpop.f32.mrb[40].mxu0  ;;  %v4022_v49 = vpop.f32.mrb[45].mxu1 }
 0x335   : > { %v3196_v22 = vadd.f32 %v3195_v35, %v3171_v0  ;;  %v4336_v4 = vadd.f32 %v2860_v30, %v1814_v59  ;;  %v4290_v53 = vpop.f32.mrb[41].mxu0  ;;  %v1825_v60 = vpop.f32.mrb[46].mxu1 }
 0x336   : > { %v2863_v3 = vpop.f32.mrb[42].mxu0  ;;  %v4023_v46 = vpop.f32.mrb[47].mxu1 }
 0x337   : > { %2929 = vst [vmem:[%s5415_s6 + $0xa0] sm:$0xff] %v4336_v4  ;;  %v3111_v36 = vmul.f32 %v4336_v4, %v3064_v32  ;;  %v4337_v40 = vadd.f32 %v2863_v3, %v1817_v58  ;;  %v4291_v27 = vpop.f32.mrb[43].mxu0 }
 0x339   : > { %v3137_v54 = vadd.f32 %v3136_v2, %v3111_v36  ;;  %v3172_v9 = vmul.f32 %v4336_v4, %v3111_v36  ;;  %2930 = vst [vmem:[%s5415_s6 + $0xa8] sm:$0xff] %v4337_v40  ;;  %v3112_v18 = vmul.f32 %v4337_v40, %v3069_v41 }
 0x33b   : > { %v3197_v21 = vadd.f32 %v3196_v22, %v3172_v9  ;;  %v3138_v48 = vadd.f32 %v3137_v54, %v3112_v18  ;;  %v3173_v57 = vmul.f32 %v4337_v40, %v3112_v18  ;;  %v1830_v13 = vpop.f32.mrb[48].mxu1 }
 0x33c   : > { %v2868_v14 = vpop.f32.mrb[44].mxu0  ;;  %v4026_v56 = vpop.f32.mrb[49].mxu1 }
 0x33d   : > { %v3198_v33 = vadd.f32 %v3197_v21, %v3173_v57  ;;  %v4338_v12 = vadd.f32 %v2868_v14, %v1822_v42  ;;  %v4294_v31 = vpop.f32.mrb[45].mxu0  ;;  %v1833_v5 = vpop.f32.mrb[50].mxu1 }
 0x33e   : > { %v2871_v45 = vpop.f32.mrb[46].mxu0  ;;  %v4027_v8 = vpop.f32.mrb[51].mxu1 }
 0x33f   : > { %2931 = vst [vmem:[%s5415_s6 + $0xb0] sm:$0xff] %v4338_v12  ;;  %v3113_v62 = vmul.f32 %v4338_v12, %v3074_v47  ;;  %v4339_v37 = vadd.f32 %v2871_v45, %v1825_v60  ;;  %v4295_v1 = vpop.f32.mrb[47].mxu0 }
 0x341   : > { %v3139_v43 = vadd.f32 %v3138_v48, %v3113_v62  ;;  %v3174_v10 = vmul.f32 %v4338_v12, %v3113_v62  ;;  %2932 = vst [vmem:[%s5415_s6 + $0xb8] sm:$0xff] %v4339_v37  ;;  %v3114_v15 = vmul.f32 %v4339_v37, %v3079_v55 }
 0x343   : > { %v3199_v28 = vadd.f32 %v3198_v33, %v3174_v10  ;;  %v3140_v61 = vadd.f32 %v3139_v43, %v3114_v15  ;;  %v3175_v63 = vmul.f32 %v4339_v37, %v3114_v15 }
 0x344   : > { %v2876_v29 = vpop.f32.mrb[48].mxu0 }
 0x345   : > { %v3200_v17 = vadd.f32 %v3199_v28, %v3175_v63  ;;  %v4340_v23 = vadd.f32 %v2876_v29, %v1830_v13  ;;  %v4298_v24 = vpop.f32.mrb[49].mxu0 }
 0x346   : > { %v2879_v59 = vpop.f32.mrb[50].mxu0 }
 0x347   : > { %2933 = vst [vmem:[%s5415_s6 + $0xc0] sm:$0xff] %v4340_v23  ;;  %v3115_v7 = vmul.f32 %v4340_v23, %v3084_v25  ;;  %v4341_v19 = vadd.f32 %v2879_v59, %v1833_v5  ;;  %v4299_v34 = vpop.f32.mrb[51].mxu0 }
 0x349   : > { %v3141_v50 = vadd.f32 %v3140_v61, %v3115_v7  ;;  %v3176_v58 = vmul.f32 %v4340_v23, %v3115_v7  ;;  %2934 = vst [vmem:[%s5415_s6 + $0xc8] sm:$0xff] %v4341_v19  ;;  %v3116_v6 = vmul.f32 %v4341_v19, %v3089_v38 }
 0x34a   : > { %5030 = shalt.err (!%p5027_p1)
}
 0x34b   : > { %s5031_s11 = scalar_lea.hbm %s6245_s8, 3328  ;;  %s5035_s30 = scalar_lea.hbm %s6349_s3, 6656 }
 0x34c   : > { %p5032_p13 = scmp.ne.s32.totalorder %s6245_s8, %s5031_s11  ;;  %p5036_p2 = scmp.lt.u32.totalorder %s6245_s8, %s6349_s3 }
 0x34d   : > { %p5037_p7 = scmp.lt.u32.totalorder %s5035_s30, %s5031_s11  ;;  %p5039_p11 = scmp.lt.u32.totalorder %s5031_s11, %s6245_s8 }
 0x34e   : > { %p5033_p6 = pnand %p5032_p13, %p6374_p0 }
 0x34f   : > { %p5038_p8 = por %p5037_p7, %p5036_p2 }
 0x350   : > { %p5034_p10 = pneg %p5033_p6 }
 0x351   : > { %p5040_p4 = por %p5039_p11, %p5038_p8 }
 0x353   : > { %p5041_p3 = pnand %p5040_p4, %p5034_p10 }
 0x355   : > { %5044 = shalt.err (!%p5041_p3)
}
 0x356   : > { %s5173_s24 = smov 128   ;;  %s5174_s12 = smov 8   ;;  %v3201_v44 = vadd.f32 %v3200_v17, %v3176_v58  ;;  %v3142_v51 = vadd.f32 %v3141_v50, %v3116_v6  ;;  %v3177_v26 = vmul.f32 %v4341_v19, %v3116_v6  ;;  %v3117_v30 = vld [vmem:[#allocation9] sm:$0x1]  ;;  %v3151_v4 = vld [vmem:[#allocation11] sm:$0x1] }
 0x357   : > { %4721 = dma.vmem_to_hbm [thread:$0]  (%p6374_p0), %s6247_s28, 3328, %s6245_s8, %s3212_s21, %s5173_s24, %s5173_s24, %s5174_s12  }
 0x358   : > { %v3143_v52 = vrot.slane %v3142_v51, 4  ;;  %v3202_v16 = vadd.f32 %v3201_v44, %v3177_v26  ;;  %s5175_s15 = smov [#allocation9]   ;;  %s5176_s16 = smov [#allocation11]  }
 0x359   : > { %s3241_s25 = sshll.u32 %s5175_s15, 4  ;;  %s3252_s9 = sshll.u32 %s5176_s16, 4  ;;  %s3242_s25 = int_to_ptr.vmem [resolvable:$true] %s3241_s25  ;;  %s6275_s9 = int_to_ptr.vmem [resolvable:$true] %s3252_s9 }
 0x35a   : > { %v3203_v39 = vrot.slane %v3202_v16, 4  ;;  %v3144_v20 = vadd.f32 %v3143_v52, %v3142_v51  ;;  %s5045_s28 = scalar_lea.vmem %s3242_s25, 16  ;;  %p6375_p5 = scmp.ne.s32.totalorder %s6362_s27, 0 }
 0x35b   : > { %p5046_p0 = scmp.ne.s32.totalorder %s3242_s25, %s5045_s28  ;;  %s5051_s8 = scalar_lea.vmem %s3242_s25, 32 }
 0x35c   : > { %v3204_v11 = vadd.f32 %v3203_v39, %v3202_v16  ;;  %v3145_v32 = vrot.slane %v3144_v20, 2  ;;  %p5052_p1 = scmp.lt.s32.totalorder %s3242_s25, %s3242_s25  ;;  %p5053_p13 = scmp.lt.s32.totalorder %s5051_s8, %s5045_s28 }
 0x35d   : > { %p5047_p9 = pnand %p5046_p0, %p6375_p5 }
 0x35e   : > { %v3146_v35 = vadd.f32 %v3145_v32, %v3144_v20  ;;  %v3205_v2 = vrot.slane %v3204_v11, 2  ;;  %p5054_p6 = por %p5053_p13, %p5052_p1 }
 0x35f   : > { %p5048_p12 = pneg %p5047_p9 }
 0x360   : > { %v3147_v0 = vrot.slane %v3146_v35, 1  ;;  %v3206_v42 = vadd.f32 %v3205_v2, %v3204_v11 }
 0x361   : > { %p5055_p10 = pnand %p5054_p6, %p5048_p12 }
 0x362   : > { %v3148_v49 = vadd.f32 %v3147_v0, %v3146_v35  ;;  %v3207_v22 = vrot.slane %v3206_v42, 1 }
 0x364   : > { %v3149_v53 = vadd.f32 %v3148_v49, %v3117_v30  ;;  %v3208_v60 = vadd.f32 %v3207_v22, %v3206_v42 }
 0x366   : > { %3150 = vst [vmem:[#allocation9] sm:$0x1] %v3149_v53  ;;  %v3209_v3 = vadd.f32 %v3208_v60, %v3151_v4 }
 0x367   : > { %5058 = shalt.err (!%p5055_p10)
}
 0x368   : > { %s5059_s10 = scalar_lea.hbm %s6350_s4, 16 }
 0x369   : > { %p5060_p2 = scmp.ne.s32.totalorder %s6350_s4, %s5059_s10  ;;  %p5065_p11 = scmp.lt.u32.totalorder %s5059_s10, %s6350_s4 }
 0x36b   : > { %p5061_p7 = pnand %p5060_p2, %p6375_p5 }
 0x36d   : > { %p5062_p8 = pneg %p5061_p7 }
 0x36f   : > { %p5067_p4 = pnand %p5065_p11, %p5062_p8 }
 0x371   : > { %5070 = shalt.err (!%p5067_p4)
}
 0x372   : > { %4723 = dma.vmem_to_hbm [thread:$0]  (%p6375_p5), %s3242_s25, 16, %s6350_s4, [#allocation10]   ;;  %3210 = vst [vmem:[#allocation11] sm:$0x1] %v3209_v3 }
 0x373   : > { %s5071_s24 = scalar_lea.vmem %s6275_s9, 16  ;;  %s5077_s12 = scalar_lea.vmem %s6275_s9, 32 }
 0x374   : > { %p5072_p3 = scmp.ne.s32.totalorder %s6275_s9, %s5071_s24  ;;  %p5078_p12 = scmp.lt.s32.totalorder %s6275_s9, %s6275_s9 }
 0x375   : > { %p5079_p1 = scmp.lt.s32.totalorder %s5077_s12, %s5071_s24 }
 0x376   : > { %p5073_p0 = pnand %p5072_p3, %p6375_p5 }
 0x377   : > { %p5080_p13 = por %p5079_p1, %p5078_p12 }
 0x378   : > { %p5074_p9 = pneg %p5073_p0 }
 0x37a   : > { %p5081_p6 = pnand %p5080_p13, %p5074_p9 }
 0x37c   : > { %5084 = shalt.err (!%p5081_p6)
}
 0x37d   : > { %s5085_s28 = scalar_lea.hbm %s6351_s5, 16 }
 0x37e   : > { %p5086_p10 = scmp.ne.s32.totalorder %s6351_s5, %s5085_s28  ;;  %p5091_p8 = scmp.lt.u32.totalorder %s5085_s28, %s6351_s5 }
 0x380   : > { %p5087_p2 = pnand %p5086_p10, %p6375_p5 }
 0x382   : > { %p5088_p7 = pneg %p5087_p2 }
 0x384   : > { %p5093_p11 = pnand %p5091_p8, %p5088_p7 }
 0x386   : > { %5096 = shalt.err (!%p5093_p11)
}
 0x387   : > { %4725 = dma.vmem_to_hbm [thread:$0]  (%p6375_p5), %s6275_s9, 16, %s6351_s5, [#allocation10]  }
 0x388   : > { %5130 = dma.done.wait (%p6375_p5), [#allocation10], 32  }
 0x389   : > { %5132 = vsyncadd (%p6375_p5), [#allocation10], 4294967264 }
 0x38a PF: > { %s3272_s17 = sand.u32 1, %s5139_s18   ;;  %p6376_p4 = scmp.ne.s32.totalorder %s6364_s29, 0 }
 0x38b   : > { %p6377_p3 = scmp.ge.s32.totalorder %s5159_s23, 2  ;;  %s3273_s13 = scalar_lea.sflag [#allocation4], %s3272_s17 }
 0x38d   : > { %p4743_p0 = pnand %p6377_p3, %p6376_p4 }
 0x38f   : > { %5134 = dma.done.wait (!%p4743_p0), %s3273_s13, 3328  }
 0x390   : > { %5136 = vsyncadd (!%p4743_p0), %s3273_s13, 4294963968  ;;  %s24_s23 = sadd.s32 1, %s5159_s23   ;;  %s6378_s18 = smov %s5143_s19 }
 0x391   : > { %p21_p9 = scmp.ge.s32.totalorder %s24_s23, 4   ;;  %s6379_s19 = smov %s5147_s20 }
 0x392   : > { %s6380_s20 = smov %s5355_s7  ;;  %s6381_s21 = smov %s5155_s22 }
 0x393   : > { %s6382_s22 = smov %s6384_s14  ;;  %23 = sbr.rel (!%p21_p9) target bundleno = 10 (0xa), region = 115 }
 0x39a   :  { %3278 = vsyncpa [#allocation3], 1 }
 0x39b   :  { %3280 = vsyncpa [#allocation3 + $0x1], 1 }
 0x39c   :  { %3281 = vsyncpa [#allocation6], 1 }
 0x39d   :  { %3282 = vsyncpa [#allocation4], 1 }
 0x39e   :  { %3284 = vsyncpa [#allocation4 + $0x1], 1 }
 0x39f   :  { %3285 = vsyncpa [#allocation10], 1 }

</bundles_post_ra>
